<compile_context>
chip_gen: v7x
topology: tpu7x:2x2x1
jax: 0.10.0
libtpu: 0.0.40
codegen_flags: <defaults>
</compile_context>

<pallas_src>
import functools

import jax
import jax.numpy as jnp
from jax.experimental import pallas as pl
from jax.experimental.pallas import tpu as pltpu

OC_PAD = 128  # lane-dense output-channel padding for every matmul


def _vmem_specs(n):
    return [pl.BlockSpec(memory_space=pltpu.MemorySpace.VMEM) for _ in range(n)]


# ----------------------------------------------------------------------------- kernels

def _conv_bn_relu_pool_kernel(p00_ref, p01_ref, p10_ref, p11_ref,
                              w_ref, gamma_ref, beta_ref, o_ref, *, eps, inv_m):
    """Fused conv (matmul over im2col quadrants) + BN(train) + ReLU + 2x2 maxpool.

    p*_ref : (Mq, K_pad) bf16 im2col patches, one slab per 2x2-pool quadrant
    w_ref  : (K_pad, 128) bf16 conv weights (output channels zero-padded to 128)
    gamma_ref / beta_ref : (1, 128) f32 BN affine (zero in the padded lanes)
    o_ref  : (Mq, 128) f32 pooled activation (padded lanes come out exactly 0)
    Conv bias is intentionally omitted: it cancels with the BN mean subtraction.
    """
    w = w_ref[...]
    ys = [jnp.dot(p_ref[...], w, preferred_element_type=jnp.float32)
          for p_ref in (p00_ref, p01_ref, p10_ref, p11_ref)]

    # Batch statistics over ALL conv-output rows (all 4 quadrants together);
    # single pass, biased variance = E[y^2] - mean^2 (nn.BatchNorm2d training).
    s = (jnp.sum(ys[0], axis=0, keepdims=True) + jnp.sum(ys[1], axis=0, keepdims=True)
         + jnp.sum(ys[2], axis=0, keepdims=True) + jnp.sum(ys[3], axis=0, keepdims=True))
    ss = (jnp.sum(ys[0] * ys[0], axis=0, keepdims=True)
          + jnp.sum(ys[1] * ys[1], axis=0, keepdims=True)
          + jnp.sum(ys[2] * ys[2], axis=0, keepdims=True)
          + jnp.sum(ys[3] * ys[3], axis=0, keepdims=True))
    mean = s * inv_m
    var = ss * inv_m - mean * mean
    scale = gamma_ref[...] * jax.lax.rsqrt(var + eps)   # fold gamma into one scale
    shift = beta_ref[...] - mean * scale

    z0 = jnp.maximum(ys[0] * scale + shift, 0.0)
    z1 = jnp.maximum(ys[1] * scale + shift, 0.0)
    z2 = jnp.maximum(ys[2] * scale + shift, 0.0)
    z3 = jnp.maximum(ys[3] * scale + shift, 0.0)
    # 2x2 / stride-2 max pool == elementwise max of the 4 quadrant activations.
    o_ref[...] = jnp.maximum(jnp.maximum(z0, z1), jnp.maximum(z2, z3))


def _fc_stack_kernel(x_ref, w0_ref, b0_ref, w1_ref, b1_ref, w2_ref, b2_ref, o_ref):
    """fc -> ReLU -> fc1 -> ReLU -> fc2, all weights resident in VMEM, one kernel."""
    h = jnp.dot(x_ref[...], w0_ref[...], preferred_element_type=jnp.float32) + b0_ref[...]
    h = jnp.maximum(h, 0.0).astype(jnp.bfloat16)
    h = jnp.dot(h, w1_ref[...], preferred_element_type=jnp.float32) + b1_ref[...]
    h = jnp.maximum(h, 0.0).astype(jnp.bfloat16)
    o_ref[...] = jnp.dot(h, w2_ref[...], preferred_element_type=jnp.float32) + b2_ref[...]


# ----------------------------------------------------------------------------- wrappers

def conv_bn_relu_pool(quads, w_mat, gamma, beta, eps=1e-5):
    mq, _ = quads[0].shape
    kernel = functools.partial(_conv_bn_relu_pool_kernel,
                               eps=eps, inv_m=1.0 / (4.0 * mq))
    return pl.pallas_call(
        kernel,
        out_shape=jax.ShapeDtypeStruct((mq, OC_PAD), jnp.float32),
        in_specs=_vmem_specs(7),
        out_specs=pl.BlockSpec(memory_space=pltpu.MemorySpace.VMEM),
    )(quads[0], quads[1], quads[2], quads[3], w_mat, gamma, beta)


def fc_stack(x, pp):
    n = x.shape[0]
    return pl.pallas_call(
        _fc_stack_kernel,
        out_shape=jax.ShapeDtypeStruct((n, OC_PAD), jnp.float32),
        in_specs=_vmem_specs(7),
        out_specs=pl.BlockSpec(memory_space=pltpu.MemorySpace.VMEM),
    )(x, pp["fw0"], pp["fb0"], pp["fw1"], pp["fb1"], pp["fw2"], pp["fb2"])


def im2col_pool_quadrants(x_nhwc, k, k_pad):
    """im2col of a valid kxk conv, split into the 4 offsets of a 2x2/stride-2 pool.

    Returns 4 slabs of shape (N*PH*PW, k_pad) in bf16 (rows ordered (n, ph, pw),
    columns flattened (kh, kw, ic) then zero-padded to k_pad) plus (N, PH, PW).
    """
    n, h, w, c = x_nhwc.shape
    oh, ow = h - k + 1, w - k + 1
    ph, pw = oh // 2, ow // 2
    cols = [x_nhwc[:, i:i + oh, j:j + ow, :] for i in range(k) for j in range(k)]
    patches = jnp.concatenate(cols, axis=-1)                 # (N, OH, OW, k*k*C)
    kk = k * k * c
    if k_pad > kk:
        patches = jnp.pad(patches, ((0, 0), (0, 0), (0, 0), (0, k_pad - kk)))
    quads = []
    for dy in range(2):
        for dx in range(2):
            q = patches[:, dy:2 * ph:2, dx:2 * pw:2, :]      # (N, PH, PW, k_pad)
            quads.append(q.reshape(n * ph * pw, k_pad).astype(jnp.bfloat16))
    return quads, (n, ph, pw)


# ----------------------------------------------------------------------------- params

def init_params(key, num_classes):
    ks = jax.random.split(key, 14)
    p = {}
    # Conv weights kept in PyTorch OIHW layout; repacked once in prep_params().
    p["w1"] = 0.1 * jax.random.normal(ks[0], (6, 1, 5, 5), jnp.float32)
    p["b1"] = 0.1 * jax.random.normal(ks[1], (6,), jnp.float32)     # unused: cancels with BN
    p["gamma1"] = 1.0 + 0.1 * jax.random.normal(ks[2], (6,), jnp.float32)
    p["beta1"] = 0.1 * jax.random.normal(ks[3], (6,), jnp.float32)
    p["w2"] = 0.1 * jax.random.normal(ks[4], (16, 6, 5, 5), jnp.float32)
    p["b2"] = 0.1 * jax.random.normal(ks[5], (16,), jnp.float32)    # unused: cancels with BN
    p["gamma2"] = 1.0 + 0.1 * jax.random.normal(ks[6], (16,), jnp.float32)
    p["beta2"] = 0.1 * jax.random.normal(ks[7], (16,), jnp.float32)
    # FC weights stored as (in, out) = transposed nn.Linear weight.
    p["fc_w"] = 0.05 * jax.random.normal(ks[8], (400, 120), jnp.float32)
    p["fc_b"] = 0.05 * jax.random.normal(ks[9], (120,), jnp.float32)
    p["fc1_w"] = 0.05 * jax.random.normal(ks[10], (120, 84), jnp.float32)
    p["fc1_b"] = 0.05 * jax.random.normal(ks[11], (84,), jnp.float32)
    p["fc2_w"] = 0.05 * jax.random.normal(ks[12], (84, num_classes), jnp.float32)
    p["fc2_b"] = 0.05 * jax.random.normal(ks[13], (num_classes,), jnp.float32)
    return p


def prep_params(p, num_classes):
    """One-time repack of PyTorch-layout params into kernel-ready, lane-padded form."""
    pp = {}
    # layer1 conv: OIHW -> (kh,kw,ic)xOC, flat K 25 -> 32, OC 6 -> 128.
    w1 = jnp.transpose(p["w1"], (2, 3, 1, 0)).reshape(25, 6)
    pp["w1"] = jnp.pad(w1, ((0, 32 - 25), (0, OC_PAD - 6))).astype(jnp.bfloat16)
    pp["g1"] = jnp.pad(p["gamma1"], (0, OC_PAD - 6)).reshape(1, OC_PAD)
    pp["be1"] = jnp.pad(p["beta1"], (0, OC_PAD - 6)).reshape(1, OC_PAD)
    # Conv biases b1/b2 intentionally unused: bias + training-mode BN mean
    # subtraction cancels exactly.

    # layer2 conv: OIHW -> (kh,kw,ic_pad=8)xOC, K = 200, OC 16 -> 128.
    w2 = jnp.transpose(p["w2"], (2, 3, 1, 0))                       # (5,5,6,16)
    w2 = jnp.pad(w2, ((0, 0), (0, 0), (0, 2), (0, 0))).reshape(200, 16)
    pp["w2"] = jnp.pad(w2, ((0, 0), (0, OC_PAD - 16))).astype(jnp.bfloat16)
    pp["g2"] = jnp.pad(p["gamma2"], (0, OC_PAD - 16)).reshape(1, OC_PAD)
    pp["be2"] = jnp.pad(p["beta2"], (0, OC_PAD - 16)).reshape(1, OC_PAD)

    # fc: fold PyTorch's NCHW flatten (k = c*25 + h*5 + w) into a row permutation
    # of fc_w so the activation can stay in its natural (n, h, w, c) order
    # (feature index j = (h*5 + w)*16 + c).
    fw0 = jnp.transpose(p["fc_w"].reshape(16, 5, 5, 120), (1, 2, 0, 3)).reshape(400, 120)
    pp["fw0"] = jnp.pad(fw0, ((0, 0), (0, OC_PAD - 120))).astype(jnp.bfloat16)
    pp["fb0"] = jnp.pad(p["fc_b"], (0, OC_PAD - 120)).reshape(1, OC_PAD)
    pp["fw1"] = jnp.pad(p["fc1_w"], ((0, OC_PAD - 120), (0, OC_PAD - 84))).astype(jnp.bfloat16)
    pp["fb1"] = jnp.pad(p["fc1_b"], (0, OC_PAD - 84)).reshape(1, OC_PAD)
    pp["fw2"] = jnp.pad(p["fc2_w"], ((0, OC_PAD - 84), (0, OC_PAD - num_classes))).astype(jnp.bfloat16)
    pp["fb2"] = jnp.pad(p["fc2_b"], (0, OC_PAD - num_classes)).reshape(1, OC_PAD)
    return pp


# ----------------------------------------------------------------------------- model

def lenet5_forward(x_nchw, pp, num_classes):
    x = jnp.transpose(x_nchw, (0, 2, 3, 1)).astype(jnp.float32)     # NCHW -> NHWC (N,32,32,1)

    # layer1: Conv(1->6,k5) + BN + ReLU + MaxPool2x2 (one fused kernel).
    quads, (n, ph, pw) = im2col_pool_quadrants(x, 5, 32)            # 4 x (N*196, 32)
    y = conv_bn_relu_pool(quads, pp["w1"], pp["g1"], pp["be1"])     # (N*196, 128)
    # Carry only 8 channels (6 real + 2 zero) into layer2's im2col.
    y = y.reshape(n, ph, pw, OC_PAD)[..., :8]                       # (N, 14, 14, 8)

    # layer2: Conv(6->16,k5) + BN + ReLU + MaxPool2x2 (one fused kernel).
    quads, (n, ph, pw) = im2col_pool_quadrants(y, 5, 200)           # 4 x (N*25, 200)
    y = conv_bn_relu_pool(quads, pp["w2"], pp["g2"], pp["be2"])     # (N*25, 128)

    # Flatten in natural (h, w, c) order; the NCHW permutation lives in fw0.
    x_fc = y.reshape(n, ph * pw, OC_PAD)[..., :16].reshape(n, 400).astype(jnp.bfloat16)

    out = fc_stack(x_fc, pp)                                        # (N, 128)
    return out[:, :num_classes]


if __name__ == "__main__":
    num_classes = 10
    key = jax.random.PRNGKey(0)
    pkey, xkey = jax.random.split(key)
    raw_params = init_params(pkey, num_classes)
    packed_params = prep_params(raw_params, num_classes)

    # Input implied by fc(400): 1-channel 32x32 images. Small batch of 2.
    x = jax.random.normal(xkey, (2, 1, 32, 32), jnp.float32)

    fwd = jax.jit(functools.partial(lenet5_forward, num_classes=num_classes))
    out = fwd(x, packed_params)
    out = jax.block_until_ready(out)

    assert out.shape == (2, num_classes), out.shape
    assert bool(jnp.all(jnp.isfinite(out)))
    print("KERNEL_OK")
</pallas_src>

<mosaic_0001>
module attributes {stable_mosaic.version = 11 : i64} {
  func.func @_conv_bn_relu_pool_kernel(%arg0: memref<392x32xbf16, #tpu.memory_space<vmem>>, %arg1: memref<392x32xbf16, #tpu.memory_space<vmem>>, %arg2: memref<392x32xbf16, #tpu.memory_space<vmem>>, %arg3: memref<392x32xbf16, #tpu.memory_space<vmem>>, %arg4: memref<32x128xbf16, #tpu.memory_space<vmem>>, %arg5: memref<1x128xf32, #tpu.memory_space<vmem>>, %arg6: memref<1x128xf32, #tpu.memory_space<vmem>>, %arg7: memref<392x128xf32, #tpu.memory_space<vmem>>) attributes {dimension_semantics = [], scalar_prefetch = 0 : i64, scratch_operands = 0 : i64, tpu.core_type = #tpu.core_type<tc>} {
    %c0 = arith.constant 0 : index
    %c0_0 = arith.constant 0 : index
    %0 = vector.load %arg4[%c0, %c0_0] : memref<32x128xbf16, #tpu.memory_space<vmem>>, vector<32x128xbf16>
    %c0_1 = arith.constant 0 : index
    %c0_2 = arith.constant 0 : index
    %1 = vector.load %arg0[%c0_1, %c0_2] : memref<392x32xbf16, #tpu.memory_space<vmem>>, vector<392x32xbf16>
    %cst = arith.constant dense<0.000000e+00> : vector<392x128xf32>
    %2 = tpu.matmul %1, %0, %cst {dimension_numbers = #tpu.dot_dimension_numbers<[1], [0], [0], [1], [0, 0, 1, 1], [], []>} : vector<392x32xbf16>, vector<32x128xbf16>, vector<392x128xf32> -> vector<392x128xf32>
    %c0_3 = arith.constant 0 : index
    %c0_4 = arith.constant 0 : index
    %3 = vector.load %arg1[%c0_3, %c0_4] : memref<392x32xbf16, #tpu.memory_space<vmem>>, vector<392x32xbf16>
    %cst_5 = arith.constant dense<0.000000e+00> : vector<392x128xf32>
    %4 = tpu.matmul %3, %0, %cst_5 {dimension_numbers = #tpu.dot_dimension_numbers<[1], [0], [0], [1], [0, 0, 1, 1], [], []>} : vector<392x32xbf16>, vector<32x128xbf16>, vector<392x128xf32> -> vector<392x128xf32>
    %c0_6 = arith.constant 0 : index
    %c0_7 = arith.constant 0 : index
    %5 = vector.load %arg2[%c0_6, %c0_7] : memref<392x32xbf16, #tpu.memory_space<vmem>>, vector<392x32xbf16>
    %cst_8 = arith.constant dense<0.000000e+00> : vector<392x128xf32>
    %6 = tpu.matmul %5, %0, %cst_8 {dimension_numbers = #tpu.dot_dimension_numbers<[1], [0], [0], [1], [0, 0, 1, 1], [], []>} : vector<392x32xbf16>, vector<32x128xbf16>, vector<392x128xf32> -> vector<392x128xf32>
    %c0_9 = arith.constant 0 : index
    %c0_10 = arith.constant 0 : index
    %7 = vector.load %arg3[%c0_9, %c0_10] : memref<392x32xbf16, #tpu.memory_space<vmem>>, vector<392x32xbf16>
    %cst_11 = arith.constant dense<0.000000e+00> : vector<392x128xf32>
    %8 = tpu.matmul %7, %0, %cst_11 {dimension_numbers = #tpu.dot_dimension_numbers<[1], [0], [0], [1], [0, 0, 1, 1], [], []>} : vector<392x32xbf16>, vector<32x128xbf16>, vector<392x128xf32> -> vector<392x128xf32>
    %cst_12 = arith.constant dense<0.000000e+00> : vector<128xf32>
    %9 = vector.multi_reduction <add>, %2, %cst_12 [0] : vector<392x128xf32> to vector<128xf32>
    %10 = vector.shape_cast %9 : vector<128xf32> to vector<1x128xf32>
    %cst_13 = arith.constant dense<0.000000e+00> : vector<128xf32>
    %11 = vector.multi_reduction <add>, %4, %cst_13 [0] : vector<392x128xf32> to vector<128xf32>
    %12 = vector.shape_cast %11 : vector<128xf32> to vector<1x128xf32>
    %13 = arith.addf %10, %12 : vector<1x128xf32>
    %cst_14 = arith.constant dense<0.000000e+00> : vector<128xf32>
    %14 = vector.multi_reduction <add>, %6, %cst_14 [0] : vector<392x128xf32> to vector<128xf32>
    %15 = vector.shape_cast %14 : vector<128xf32> to vector<1x128xf32>
    %16 = arith.addf %13, %15 : vector<1x128xf32>
    %cst_15 = arith.constant dense<0.000000e+00> : vector<128xf32>
    %17 = vector.multi_reduction <add>, %8, %cst_15 [0] : vector<392x128xf32> to vector<128xf32>
    %18 = vector.shape_cast %17 : vector<128xf32> to vector<1x128xf32>
    %19 = arith.addf %16, %18 : vector<1x128xf32>
    %20 = arith.mulf %2, %2 : vector<392x128xf32>
    %cst_16 = arith.constant dense<0.000000e+00> : vector<128xf32>
    %21 = vector.multi_reduction <add>, %20, %cst_16 [0] : vector<392x128xf32> to vector<128xf32>
    %22 = vector.shape_cast %21 : vector<128xf32> to vector<1x128xf32>
    %23 = arith.mulf %4, %4 : vector<392x128xf32>
    %cst_17 = arith.constant dense<0.000000e+00> : vector<128xf32>
    %24 = vector.multi_reduction <add>, %23, %cst_17 [0] : vector<392x128xf32> to vector<128xf32>
    %25 = vector.shape_cast %24 : vector<128xf32> to vector<1x128xf32>
    %26 = arith.addf %22, %25 : vector<1x128xf32>
    %27 = arith.mulf %6, %6 : vector<392x128xf32>
    %cst_18 = arith.constant dense<0.000000e+00> : vector<128xf32>
    %28 = vector.multi_reduction <add>, %27, %cst_18 [0] : vector<392x128xf32> to vector<128xf32>
    %29 = vector.shape_cast %28 : vector<128xf32> to vector<1x128xf32>
    %30 = arith.addf %26, %29 : vector<1x128xf32>
    %31 = arith.mulf %8, %8 : vector<392x128xf32>
    %cst_19 = arith.constant dense<0.000000e+00> : vector<128xf32>
    %32 = vector.multi_reduction <add>, %31, %cst_19 [0] : vector<392x128xf32> to vector<128xf32>
    %33 = vector.shape_cast %32 : vector<128xf32> to vector<1x128xf32>
    %34 = arith.addf %30, %33 : vector<1x128xf32>
    %cst_20 = arith.constant 6.37755089E-4 : f32
    %35 = vector.broadcast %cst_20 : f32 to vector<1x128xf32>
    %36 = arith.mulf %19, %35 : vector<1x128xf32>
    %cst_21 = arith.constant 6.37755089E-4 : f32
    %37 = vector.broadcast %cst_21 : f32 to vector<1x128xf32>
    %38 = arith.mulf %34, %37 : vector<1x128xf32>
    %39 = arith.mulf %36, %36 : vector<1x128xf32>
    %40 = arith.subf %38, %39 : vector<1x128xf32>
    %c0_22 = arith.constant 0 : index
    %c0_23 = arith.constant 0 : index
    %41 = vector.load %arg5[%c0_22, %c0_23] : memref<1x128xf32, #tpu.memory_space<vmem>>, vector<1x128xf32>
    %cst_24 = arith.constant 9.99999974E-6 : f32
    %42 = vector.broadcast %cst_24 : f32 to vector<1x128xf32>
    %43 = arith.addf %40, %42 : vector<1x128xf32>
    %44 = math.rsqrt %43 : vector<1x128xf32>
    %45 = arith.mulf %41, %44 : vector<1x128xf32>
    %c0_25 = arith.constant 0 : index
    %c0_26 = arith.constant 0 : index
    %46 = vector.load %arg6[%c0_25, %c0_26] : memref<1x128xf32, #tpu.memory_space<vmem>>, vector<1x128xf32>
    %47 = arith.mulf %36, %45 : vector<1x128xf32>
    %48 = arith.subf %46, %47 : vector<1x128xf32>
    %49 = vector.broadcast %45 : vector<1x128xf32> to vector<392x128xf32>
    %50 = arith.mulf %2, %49 : vector<392x128xf32>
    %51 = vector.broadcast %48 : vector<1x128xf32> to vector<392x128xf32>
    %52 = arith.addf %50, %51 : vector<392x128xf32>
    %cst_27 = arith.constant 0.000000e+00 : f32
    %53 = vector.broadcast %cst_27 : f32 to vector<392x128xf32>
    %54 = arith.maximumf %52, %53 : vector<392x128xf32>
    %55 = vector.broadcast %45 : vector<1x128xf32> to vector<392x128xf32>
    %56 = arith.mulf %4, %55 : vector<392x128xf32>
    %57 = vector.broadcast %48 : vector<1x128xf32> to vector<392x128xf32>
    %58 = arith.addf %56, %57 : vector<392x128xf32>
    %cst_28 = arith.constant 0.000000e+00 : f32
    %59 = vector.broadcast %cst_28 : f32 to vector<392x128xf32>
    %60 = arith.maximumf %58, %59 : vector<392x128xf32>
    %61 = vector.broadcast %45 : vector<1x128xf32> to vector<392x128xf32>
    %62 = arith.mulf %6, %61 : vector<392x128xf32>
    %63 = vector.broadcast %48 : vector<1x128xf32> to vector<392x128xf32>
    %64 = arith.addf %62, %63 : vector<392x128xf32>
    %cst_29 = arith.constant 0.000000e+00 : f32
    %65 = vector.broadcast %cst_29 : f32 to vector<392x128xf32>
    %66 = arith.maximumf %64, %65 : vector<392x128xf32>
    %67 = vector.broadcast %45 : vector<1x128xf32> to vector<392x128xf32>
    %68 = arith.mulf %8, %67 : vector<392x128xf32>
    %69 = vector.broadcast %48 : vector<1x128xf32> to vector<392x128xf32>
    %70 = arith.addf %68, %69 : vector<392x128xf32>
    %cst_30 = arith.constant 0.000000e+00 : f32
    %71 = vector.broadcast %cst_30 : f32 to vector<392x128xf32>
    %72 = arith.maximumf %70, %71 : vector<392x128xf32>
    %73 = arith.maximumf %54, %60 : vector<392x128xf32>
    %74 = arith.maximumf %66, %72 : vector<392x128xf32>
    %75 = arith.maximumf %73, %74 : vector<392x128xf32>
    %c0_31 = arith.constant 0 : index
    %c0_32 = arith.constant 0 : index
    %76 = vector.load %arg7[%c0_31, %c0_32] : memref<392x128xf32, #tpu.memory_space<vmem>>, vector<392x128xf32>
    tpu.vector_store %arg7[%c0_31, %c0_32], %75 {strides = array<i32>} : memref<392x128xf32, #tpu.memory_space<vmem>>, vector<392x128xf32>,
    return
  }
}

module attributes {stable_mosaic.version = 11 : i64} {
  func.func @_conv_bn_relu_pool_kernel(%arg0: memref<50x200xbf16, #tpu.memory_space<vmem>>, %arg1: memref<50x200xbf16, #tpu.memory_space<vmem>>, %arg2: memref<50x200xbf16, #tpu.memory_space<vmem>>, %arg3: memref<50x200xbf16, #tpu.memory_space<vmem>>, %arg4: memref<200x128xbf16, #tpu.memory_space<vmem>>, %arg5: memref<1x128xf32, #tpu.memory_space<vmem>>, %arg6: memref<1x128xf32, #tpu.memory_space<vmem>>, %arg7: memref<50x128xf32, #tpu.memory_space<vmem>>) attributes {dimension_semantics = [], scalar_prefetch = 0 : i64, scratch_operands = 0 : i64, tpu.core_type = #tpu.core_type<tc>} {
    %c0 = arith.constant 0 : index
    %c0_0 = arith.constant 0 : index
    %0 = vector.load %arg4[%c0, %c0_0] : memref<200x128xbf16, #tpu.memory_space<vmem>>, vector<200x128xbf16>
    %c0_1 = arith.constant 0 : index
    %c0_2 = arith.constant 0 : index
    %1 = vector.load %arg0[%c0_1, %c0_2] : memref<50x200xbf16, #tpu.memory_space<vmem>>, vector<50x200xbf16>
    %cst = arith.constant dense<0.000000e+00> : vector<50x128xf32>
    %2 = tpu.matmul %1, %0, %cst {dimension_numbers = #tpu.dot_dimension_numbers<[1], [0], [0], [1], [0, 0, 1, 1], [], []>} : vector<50x200xbf16>, vector<200x128xbf16>, vector<50x128xf32> -> vector<50x128xf32>
    %c0_3 = arith.constant 0 : index
    %c0_4 = arith.constant 0 : index
    %3 = vector.load %arg1[%c0_3, %c0_4] : memref<50x200xbf16, #tpu.memory_space<vmem>>, vector<50x200xbf16>
    %cst_5 = arith.constant dense<0.000000e+00> : vector<50x128xf32>
    %4 = tpu.matmul %3, %0, %cst_5 {dimension_numbers = #tpu.dot_dimension_numbers<[1], [0], [0], [1], [0, 0, 1, 1], [], []>} : vector<50x200xbf16>, vector<200x128xbf16>, vector<50x128xf32> -> vector<50x128xf32>
    %c0_6 = arith.constant 0 : index
    %c0_7 = arith.constant 0 : index
    %5 = vector.load %arg2[%c0_6, %c0_7] : memref<50x200xbf16, #tpu.memory_space<vmem>>, vector<50x200xbf16>
    %cst_8 = arith.constant dense<0.000000e+00> : vector<50x128xf32>
    %6 = tpu.matmul %5, %0, %cst_8 {dimension_numbers = #tpu.dot_dimension_numbers<[1], [0], [0], [1], [0, 0, 1, 1], [], []>} : vector<50x200xbf16>, vector<200x128xbf16>, vector<50x128xf32> -> vector<50x128xf32>
    %c0_9 = arith.constant 0 : index
    %c0_10 = arith.constant 0 : index
    %7 = vector.load %arg3[%c0_9, %c0_10] : memref<50x200xbf16, #tpu.memory_space<vmem>>, vector<50x200xbf16>
    %cst_11 = arith.constant dense<0.000000e+00> : vector<50x128xf32>
    %8 = tpu.matmul %7, %0, %cst_11 {dimension_numbers = #tpu.dot_dimension_numbers<[1], [0], [0], [1], [0, 0, 1, 1], [], []>} : vector<50x200xbf16>, vector<200x128xbf16>, vector<50x128xf32> -> vector<50x128xf32>
    %cst_12 = arith.constant dense<0.000000e+00> : vector<128xf32>
    %9 = vector.multi_reduction <add>, %2, %cst_12 [0] : vector<50x128xf32> to vector<128xf32>
    %10 = vector.shape_cast %9 : vector<128xf32> to vector<1x128xf32>
    %cst_13 = arith.constant dense<0.000000e+00> : vector<128xf32>
    %11 = vector.multi_reduction <add>, %4, %cst_13 [0] : vector<50x128xf32> to vector<128xf32>
    %12 = vector.shape_cast %11 : vector<128xf32> to vector<1x128xf32>
    %13 = arith.addf %10, %12 : vector<1x128xf32>
    %cst_14 = arith.constant dense<0.000000e+00> : vector<128xf32>
    %14 = vector.multi_reduction <add>, %6, %cst_14 [0] : vector<50x128xf32> to vector<128xf32>
    %15 = vector.shape_cast %14 : vector<128xf32> to vector<1x128xf32>
    %16 = arith.addf %13, %15 : vector<1x128xf32>
    %cst_15 = arith.constant dense<0.000000e+00> : vector<128xf32>
    %17 = vector.multi_reduction <add>, %8, %cst_15 [0] : vector<50x128xf32> to vector<128xf32>
    %18 = vector.shape_cast %17 : vector<128xf32> to vector<1x128xf32>
    %19 = arith.addf %16, %18 : vector<1x128xf32>
    %20 = arith.mulf %2, %2 : vector<50x128xf32>
    %cst_16 = arith.constant dense<0.000000e+00> : vector<128xf32>
    %21 = vector.multi_reduction <add>, %20, %cst_16 [0] : vector<50x128xf32> to vector<128xf32>
    %22 = vector.shape_cast %21 : vector<128xf32> to vector<1x128xf32>
    %23 = arith.mulf %4, %4 : vector<50x128xf32>
    %cst_17 = arith.constant dense<0.000000e+00> : vector<128xf32>
    %24 = vector.multi_reduction <add>, %23, %cst_17 [0] : vector<50x128xf32> to vector<128xf32>
    %25 = vector.shape_cast %24 : vector<128xf32> to vector<1x128xf32>
    %26 = arith.addf %22, %25 : vector<1x128xf32>
    %27 = arith.mulf %6, %6 : vector<50x128xf32>
    %cst_18 = arith.constant dense<0.000000e+00> : vector<128xf32>
    %28 = vector.multi_reduction <add>, %27, %cst_18 [0] : vector<50x128xf32> to vector<128xf32>
    %29 = vector.shape_cast %28 : vector<128xf32> to vector<1x128xf32>
    %30 = arith.addf %26, %29 : vector<1x128xf32>
    %31 = arith.mulf %8, %8 : vector<50x128xf32>
    %cst_19 = arith.constant dense<0.000000e+00> : vector<128xf32>
    %32 = vector.multi_reduction <add>, %31, %cst_19 [0] : vector<50x128xf32> to vector<128xf32>
    %33 = vector.shape_cast %32 : vector<128xf32> to vector<1x128xf32>
    %34 = arith.addf %30, %33 : vector<1x128xf32>
    %cst_20 = arith.constant 5.000000e-03 : f32
    %35 = vector.broadcast %cst_20 : f32 to vector<1x128xf32>
    %36 = arith.mulf %19, %35 : vector<1x128xf32>
    %cst_21 = arith.constant 5.000000e-03 : f32
    %37 = vector.broadcast %cst_21 : f32 to vector<1x128xf32>
    %38 = arith.mulf %34, %37 : vector<1x128xf32>
    %39 = arith.mulf %36, %36 : vector<1x128xf32>
    %40 = arith.subf %38, %39 : vector<1x128xf32>
    %c0_22 = arith.constant 0 : index
    %c0_23 = arith.constant 0 : index
    %41 = vector.load %arg5[%c0_22, %c0_23] : memref<1x128xf32, #tpu.memory_space<vmem>>, vector<1x128xf32>
    %cst_24 = arith.constant 9.99999974E-6 : f32
    %42 = vector.broadcast %cst_24 : f32 to vector<1x128xf32>
    %43 = arith.addf %40, %42 : vector<1x128xf32>
    %44 = math.rsqrt %43 : vector<1x128xf32>
    %45 = arith.mulf %41, %44 : vector<1x128xf32>
    %c0_25 = arith.constant 0 : index
    %c0_26 = arith.constant 0 : index
    %46 = vector.load %arg6[%c0_25, %c0_26] : memref<1x128xf32, #tpu.memory_space<vmem>>, vector<1x128xf32>
    %47 = arith.mulf %36, %45 : vector<1x128xf32>
    %48 = arith.subf %46, %47 : vector<1x128xf32>
    %49 = vector.broadcast %45 : vector<1x128xf32> to vector<50x128xf32>
    %50 = arith.mulf %2, %49 : vector<50x128xf32>
    %51 = vector.broadcast %48 : vector<1x128xf32> to vector<50x128xf32>
    %52 = arith.addf %50, %51 : vector<50x128xf32>
    %cst_27 = arith.constant 0.000000e+00 : f32
    %53 = vector.broadcast %cst_27 : f32 to vector<50x128xf32>
    %54 = arith.maximumf %52, %53 : vector<50x128xf32>
    %55 = vector.broadcast %45 : vector<1x128xf32> to vector<50x128xf32>
    %56 = arith.mulf %4, %55 : vector<50x128xf32>
    %57 = vector.broadcast %48 : vector<1x128xf32> to vector<50x128xf32>
    %58 = arith.addf %56, %57 : vector<50x128xf32>
    %cst_28 = arith.constant 0.000000e+00 : f32
    %59 = vector.broadcast %cst_28 : f32 to vector<50x128xf32>
    %60 = arith.maximumf %58, %59 : vector<50x128xf32>
    %61 = vector.broadcast %45 : vector<1x128xf32> to vector<50x128xf32>
    %62 = arith.mulf %6, %61 : vector<50x128xf32>
    %63 = vector.broadcast %48 : vector<1x128xf32> to vector<50x128xf32>
    %64 = arith.addf %62, %63 : vector<50x128xf32>
    %cst_29 = arith.constant 0.000000e+00 : f32
    %65 = vector.broadcast %cst_29 : f32 to vector<50x128xf32>
    %66 = arith.maximumf %64, %65 : vector<50x128xf32>
    %67 = vector.broadcast %45 : vector<1x128xf32> to vector<50x128xf32>
    %68 = arith.mulf %8, %67 : vector<50x128xf32>
    %69 = vector.broadcast %48 : vector<1x128xf32> to vector<50x128xf32>
    %70 = arith.addf %68, %69 : vector<50x128xf32>
    %cst_30 = arith.constant 0.000000e+00 : f32
    %71 = vector.broadcast %cst_30 : f32 to vector<50x128xf32>
    %72 = arith.maximumf %70, %71 : vector<50x128xf32>
    %73 = arith.maximumf %54, %60 : vector<50x128xf32>
    %74 = arith.maximumf %66, %72 : vector<50x128xf32>
    %75 = arith.maximumf %73, %74 : vector<50x128xf32>
    %c0_31 = arith.constant 0 : index
    %c0_32 = arith.constant 0 : index
    %76 = vector.load %arg7[%c0_31, %c0_32] : memref<50x128xf32, #tpu.memory_space<vmem>>, vector<50x128xf32>
    tpu.vector_store %arg7[%c0_31, %c0_32], %75 {strides = array<i32>} : memref<50x128xf32, #tpu.memory_space<vmem>>, vector<50x128xf32>,
    return
  }
}

module attributes {stable_mosaic.version = 11 : i64} {
  func.func @_fc_stack_kernel(%arg0: memref<2x400xbf16, #tpu.memory_space<vmem>>, %arg1: memref<400x128xbf16, #tpu.memory_space<vmem>>, %arg2: memref<1x128xf32, #tpu.memory_space<vmem>>, %arg3: memref<128x128xbf16, #tpu.memory_space<vmem>>, %arg4: memref<1x128xf32, #tpu.memory_space<vmem>>, %arg5: memref<128x128xbf16, #tpu.memory_space<vmem>>, %arg6: memref<1x128xf32, #tpu.memory_space<vmem>>, %arg7: memref<2x128xf32, #tpu.memory_space<vmem>>) attributes {dimension_semantics = [], scalar_prefetch = 0 : i64, scratch_operands = 0 : i64, tpu.core_type = #tpu.core_type<tc>} {
    %c0 = arith.constant 0 : index
    %c0_0 = arith.constant 0 : index
    %0 = vector.load %arg0[%c0, %c0_0] : memref<2x400xbf16, #tpu.memory_space<vmem>>, vector<2x400xbf16>
    %c0_1 = arith.constant 0 : index
    %c0_2 = arith.constant 0 : index
    %1 = vector.load %arg1[%c0_1, %c0_2] : memref<400x128xbf16, #tpu.memory_space<vmem>>, vector<400x128xbf16>
    %cst = arith.constant dense<0.000000e+00> : vector<2x128xf32>
    %2 = tpu.matmul %0, %1, %cst {dimension_numbers = #tpu.dot_dimension_numbers<[1], [0], [0], [1], [0, 0, 1, 1], [], []>} : vector<2x400xbf16>, vector<400x128xbf16>, vector<2x128xf32> -> vector<2x128xf32>
    %c0_3 = arith.constant 0 : index
    %c0_4 = arith.constant 0 : index
    %3 = vector.load %arg2[%c0_3, %c0_4] : memref<1x128xf32, #tpu.memory_space<vmem>>, vector<1x128xf32>
    %4 = vector.broadcast %3 : vector<1x128xf32> to vector<2x128xf32>
    %5 = arith.addf %2, %4 : vector<2x128xf32>
    %cst_5 = arith.constant 0.000000e+00 : f32
    %6 = vector.broadcast %cst_5 : f32 to vector<2x128xf32>
    %7 = arith.maximumf %5, %6 : vector<2x128xf32>
    %8 = arith.truncf %7 : vector<2x128xf32> to vector<2x128xbf16>
    %c0_6 = arith.constant 0 : index
    %c0_7 = arith.constant 0 : index
    %9 = vector.load %arg3[%c0_6, %c0_7] : memref<128x128xbf16, #tpu.memory_space<vmem>>, vector<128x128xbf16>
    %cst_8 = arith.constant dense<0.000000e+00> : vector<2x128xf32>
    %10 = tpu.matmul %8, %9, %cst_8 {dimension_numbers = #tpu.dot_dimension_numbers<[1], [0], [0], [1], [0, 0, 1, 1], [], []>} : vector<2x128xbf16>, vector<128x128xbf16>, vector<2x128xf32> -> vector<2x128xf32>
    %c0_9 = arith.constant 0 : index
    %c0_10 = arith.constant 0 : index
    %11 = vector.load %arg4[%c0_9, %c0_10] : memref<1x128xf32, #tpu.memory_space<vmem>>, vector<1x128xf32>
    %12 = vector.broadcast %11 : vector<1x128xf32> to vector<2x128xf32>
    %13 = arith.addf %10, %12 : vector<2x128xf32>
    %cst_11 = arith.constant 0.000000e+00 : f32
    %14 = vector.broadcast %cst_11 : f32 to vector<2x128xf32>
    %15 = arith.maximumf %13, %14 : vector<2x128xf32>
    %16 = arith.truncf %15 : vector<2x128xf32> to vector<2x128xbf16>
    %c0_12 = arith.constant 0 : index
    %c0_13 = arith.constant 0 : index
    %17 = vector.load %arg5[%c0_12, %c0_13] : memref<128x128xbf16, #tpu.memory_space<vmem>>, vector<128x128xbf16>
    %cst_14 = arith.constant dense<0.000000e+00> : vector<2x128xf32>
    %18 = tpu.matmul %16, %17, %cst_14 {dimension_numbers = #tpu.dot_dimension_numbers<[1], [0], [0], [1], [0, 0, 1, 1], [], []>} : vector<2x128xbf16>, vector<128x128xbf16>, vector<2x128xf32> -> vector<2x128xf32>
    %c0_15 = arith.constant 0 : index
    %c0_16 = arith.constant 0 : index
    %19 = vector.load %arg6[%c0_15, %c0_16] : memref<1x128xf32, #tpu.memory_space<vmem>>, vector<1x128xf32>
    %20 = vector.broadcast %19 : vector<1x128xf32> to vector<2x128xf32>
    %21 = arith.addf %18, %20 : vector<2x128xf32>
    %c0_17 = arith.constant 0 : index
    %c0_18 = arith.constant 0 : index
    %22 = vector.load %arg7[%c0_17, %c0_18] : memref<2x128xf32, #tpu.memory_space<vmem>>, vector<2x128xf32>
    tpu.vector_store %arg7[%c0_17, %c0_18], %21 {strides = array<i32>} : memref<2x128xf32, #tpu.memory_space<vmem>>, vector<2x128xf32>,
    return
  }
}

</mosaic_0001>

<bundles_post_ra>
// kernel: lenet5_forward.3
= control target key start
LH: loop header
LB: loop body
LE: loop exit
PB: predicated region body
PF: predicated region fallthrough
CT: control target
= control target key end

     0   :  { %v7909_v0 = vmov 0.0   ;;  %vm4238_vm0 = vmmov 0   ;;  %vm215_vm1 = vcmask 261120   ;;  %s7901_s4 = inlined_call_operand.vmem [shape: bf16[32,128], index: 4, kind: input, shape index: {}]   ;;  %s7902_s0 = inlined_call_operand.vmem [shape: bf16[392,32], index: 0, kind: input, shape index: {}]   ;;  %s7903_s1 = inlined_call_operand.vmem [shape: bf16[392,32], index: 1, kind: input, shape index: {}]   ;;  %s7904_s2 = inlined_call_operand.vmem [shape: bf16[392,32], index: 2, kind: input, shape index: {}]   ;;  %s7905_s3 = inlined_call_operand.vmem [shape: bf16[392,32], index: 3, kind: input, shape index: {}]   ;;  %s7906_s5 = inlined_call_operand.vmem [shape: f32[1,128], index: 5, kind: input, shape index: {}]   ;;  %s7907_s6 = inlined_call_operand.vmem [shape: f32[1,128], index: 6, kind: input, shape index: {}]   ;;  %s7908_s7 = inlined_call_operand.vmem [shape: f32[392,128], index: 7, kind: output, shape index: {}]  }
   0x1   :  { %3715 = vmatprep.subr.bf16.mxu0 %v7909_v0  ;;  %3819 = vmatprep.subr.bf16.mxu1 %v7909_v0  ;;  %v4133_v1 = vld [vmem:[%s7901_s4] sm:$0xff]   ;;  %v4134_v2 = vld [vmem:[%s7901_s4 + $0x8] sm:$0xff]   ;;  %v4139_v7 = vld [vmem:[%s7902_s0 + $0x10] sm:$0xff]  }
   0x2   :  { %3719 = vmatprep.mubr.msk.bf16.mxu0 %vm4238_vm0, %v7909_v0  ;;  %3823 = vmatprep.mubr.msk.bf16.mxu1 %vm4238_vm0, %v7909_v0  ;;  %v4135_v3 = vld [vmem:[%s7902_s0] sm:$0xff]   ;;  %v4137_v5 = vld [vmem:[%s7902_s0 + $0x8] sm:$0xff]   ;;  %v4140_v8 = vld [vmem:[%s7903_s1 + $0x10] sm:$0xff]  }
   0x3   :  { %3716 = vmatpush3.bf16.msra.mxu0 %v4133_v1  ;;  %3820 = vmatpush3.bf16.msra.mxu1 %v4133_v1  ;;  %v4136_v4 = vld [vmem:[%s7903_s1] sm:$0xff]   ;;  %v4138_v6 = vld [vmem:[%s7903_s1 + $0x8] sm:$0xff]   ;;  %v4141_v9 = vld [vmem:[%s7902_s0 + $0x18] sm:$0xff]  }
   0x4   :  { %3717 = vmatprep.subr.bf16.mxu0 %v7909_v0  ;;  %3821 = vmatprep.subr.bf16.mxu1 %v7909_v0  ;;  %v4142_v10 = vld [vmem:[%s7903_s1 + $0x18] sm:$0xff]   ;;  %v4143_v11 = vld [vmem:[%s7902_s0 + $0x20] sm:$0xff]   ;;  %v4145_v13 = vld [vmem:[%s7902_s0 + $0x28] sm:$0xff]  }
   0x5   :  { %v4144_v12 = vld [vmem:[%s7903_s1 + $0x20] sm:$0xff]   ;;  %v4146_v14 = vld [vmem:[%s7903_s1 + $0x28] sm:$0xff]   ;;  %v4147_v15 = vld [vmem:[%s7902_s0 + $0x30] sm:$0xff]  }
   0x6   :  { %v4148_v16 = vld [vmem:[%s7903_s1 + $0x30] sm:$0xff]   ;;  %v4149_v17 = vld [vmem:[%s7902_s0 + $0x38] sm:$0xff]   ;;  %v4151_v19 = vld [vmem:[%s7902_s0 + $0x40] sm:$0xff]  }
   0x7   :  { %3718 = vmatpush3.bf16.msra.mxu0 %v4134_v2  ;;  %3822 = vmatpush3.bf16.msra.mxu1 %v4134_v2  ;;  %v4150_v18 = vld [vmem:[%s7903_s1 + $0x38] sm:$0xff]   ;;  %v4152_v20 = vld [vmem:[%s7903_s1 + $0x40] sm:$0xff]   ;;  %v4153_v21 = vld [vmem:[%s7902_s0 + $0x48] sm:$0xff]  }
   0x8   :  { %3923 = vmatprep.subr.bf16.mxu0 %v7909_v0  ;;  %4027 = vmatprep.subr.bf16.mxu1 %v7909_v0  ;;  %v4154_v22 = vld [vmem:[%s7903_s1 + $0x48] sm:$0xff]   ;;  %v4155_v23 = vld [vmem:[%s7902_s0 + $0x50] sm:$0xff]   ;;  %v4157_v25 = vld [vmem:[%s7902_s0 + $0x58] sm:$0xff]  }
   0x9   :  { %v4156_v24 = vld [vmem:[%s7903_s1 + $0x50] sm:$0xff]   ;;  %v4158_v26 = vld [vmem:[%s7903_s1 + $0x58] sm:$0xff]   ;;  %v4159_v27 = vld [vmem:[%s7902_s0 + $0x60] sm:$0xff]  }
   0xa   :  { %3720 = vmatmul.mubr.msk.bf16.vlgmr.msra.gmra.mrb[0].mxu0 %vm215_vm1, %v4135_v3  ;;  %3824 = vmatmul.mubr.msk.bf16.vlgmr.msra.gmra.mrb[0].mxu1 %vm215_vm1, %v4136_v4  ;;  %v4160_v28 = vld [vmem:[%s7903_s1 + $0x60] sm:$0xff]   ;;  %v4161_v29 = vld [vmem:[%s7902_s0 + $0x68] sm:$0xff]   ;;  %v4163_v31 = vld [vmem:[%s7902_s0 + $0x70] sm:$0xff]  }
   0xb   :  { %3924 = vmatpush3.bf16.msra.mxu0 %v4133_v1  ;;  %4028 = vmatpush3.bf16.msra.mxu1 %v4133_v1  ;;  %v4162_v30 = vld [vmem:[%s7903_s1 + $0x68] sm:$0xff]   ;;  %v4164_v32 = vld [vmem:[%s7903_s1 + $0x70] sm:$0xff]   ;;  %v4165_v33 = vld [vmem:[%s7902_s0 + $0x78] sm:$0xff]  }
   0xc   :  { %3723 = vmatprep.mubr.msk.bf16.mxu0 %vm4238_vm0, %v7909_v0  ;;  %3827 = vmatprep.mubr.msk.bf16.mxu1 %vm4238_vm0, %v7909_v0  ;;  %v4166_v34 = vld [vmem:[%s7903_s1 + $0x78] sm:$0xff]   ;;  %v4167_v35 = vld [vmem:[%s7902_s0 + $0x80] sm:$0xff]   ;;  %v4169_v37 = vld [vmem:[%s7902_s0 + $0x88] sm:$0xff]  }
   0xd   :  { %3925 = vmatprep.subr.bf16.mxu0 %v7909_v0  ;;  %4029 = vmatprep.subr.bf16.mxu1 %v7909_v0  ;;  %v4168_v36 = vld [vmem:[%s7903_s1 + $0x80] sm:$0xff]   ;;  %v4170_v38 = vld [vmem:[%s7903_s1 + $0x88] sm:$0xff]   ;;  %v4171_v39 = vld [vmem:[%s7902_s0 + $0x90] sm:$0xff]  }
   0xe   :  { %v4172_v40 = vld [vmem:[%s7903_s1 + $0x90] sm:$0xff]   ;;  %v4173_v41 = vld [vmem:[%s7902_s0 + $0x98] sm:$0xff]   ;;  %v4175_v43 = vld [vmem:[%s7902_s0 + $0xa0] sm:$0xff]  }
   0xf   :  { %3926 = vmatpush3.bf16.msra.mxu0 %v4134_v2  ;;  %4030 = vmatpush3.bf16.msra.mxu1 %v4134_v2  ;;  %v4174_v42 = vld [vmem:[%s7903_s1 + $0x98] sm:$0xff]   ;;  %v4176_v44 = vld [vmem:[%s7903_s1 + $0xa0] sm:$0xff]   ;;  %v4177_v45 = vld [vmem:[%s7902_s0 + $0xa8] sm:$0xff]  }
  0x10   :  { %v4178_v46 = vld [vmem:[%s7903_s1 + $0xa8] sm:$0xff]   ;;  %v4179_v47 = vld [vmem:[%s7902_s0 + $0xb0] sm:$0xff]   ;;  %v4181_v49 = vld [vmem:[%s7902_s0 + $0xb8] sm:$0xff]  }
  0x11   :  { %v4180_v48 = vld [vmem:[%s7903_s1 + $0xb0] sm:$0xff]   ;;  %v4182_v50 = vld [vmem:[%s7903_s1 + $0xb8] sm:$0xff]   ;;  %v4183_v51 = vld [vmem:[%s7902_s0 + $0xc0] ss:$0 sps:$4 sm:$0xff]  }
  0x12   :  { %3724 = vmatmul.mubr.msk.bf16.gmra.mrb[4].mxu0 %vm215_vm1, %v4137_v5  ;;  %3828 = vmatmul.mubr.msk.bf16.gmra.mrb[4].mxu1 %vm215_vm1, %v4138_v6  ;;  %v4184_v52 = vld [vmem:[%s7903_s1 + $0xc0] ss:$0 sps:$4 sm:$0xff]   ;;  %v4187_v55 = vld [vmem:[%s7904_s2 + $0x8] sm:$0xff]   ;;  %v4189_v62 = vld [vmem:[%s7904_s2 + $0x10] sm:$0xff]  }
  0x13   :  { %3727 = vmatprep.mubr.msk.bf16.mxu0 %vm4238_vm0, %v7909_v0  ;;  %3831 = vmatprep.mubr.msk.bf16.mxu1 %vm4238_vm0, %v7909_v0  ;;  %v4185_v53 = vld [vmem:[%s7904_s2] sm:$0xff]   ;;  %v4188_v56 = vld [vmem:[%s7905_s3 + $0x8] sm:$0xff]   ;;  %v4190_v63 = vld [vmem:[%s7905_s3 + $0x10] sm:$0xff]  }
  0x14   :  { %v4186_v54 = vld [vmem:[%s7905_s3] sm:$0xff]  }
  0x1a   :  { %3728 = vmatmul.mubr.msk.bf16.gmra.mrb[8].mxu0 %vm215_vm1, %v4139_v7  ;;  %3832 = vmatmul.mubr.msk.bf16.gmra.mrb[8].mxu1 %vm215_vm1, %v4140_v8 }
  0x1b   :  { %3731 = vmatprep.mubr.msk.bf16.mxu0 %vm4238_vm0, %v7909_v0  ;;  %3835 = vmatprep.mubr.msk.bf16.mxu1 %vm4238_vm0, %v7909_v0 }
  0x22   :  { %3732 = vmatmul.mubr.msk.bf16.gmra.mrb[12].mxu0 %vm215_vm1, %v4141_v9  ;;  %3836 = vmatmul.mubr.msk.bf16.gmra.mrb[12].mxu1 %vm215_vm1, %v4142_v10 }
  0x23   :  { %3735 = vmatprep.mubr.msk.bf16.mxu0 %vm4238_vm0, %v7909_v0  ;;  %3839 = vmatprep.mubr.msk.bf16.mxu1 %vm4238_vm0, %v7909_v0 }
  0x2a   :  { %3736 = vmatmul.mubr.msk.bf16.gmra.mrb[16].mxu0 %vm215_vm1, %v4143_v11  ;;  %3840 = vmatmul.mubr.msk.bf16.gmra.mrb[16].mxu1 %vm215_vm1, %v4144_v12 }
  0x2b   :  { %3739 = vmatprep.mubr.msk.bf16.mxu0 %vm4238_vm0, %v7909_v0  ;;  %3843 = vmatprep.mubr.msk.bf16.mxu1 %vm4238_vm0, %v7909_v0 }
  0x32   :  { %3740 = vmatmul.mubr.msk.bf16.gmra.mrb[20].mxu0 %vm215_vm1, %v4145_v13  ;;  %3844 = vmatmul.mubr.msk.bf16.gmra.mrb[20].mxu1 %vm215_vm1, %v4146_v14 }
  0x33   :  { %3743 = vmatprep.mubr.msk.bf16.mxu0 %vm4238_vm0, %v7909_v0  ;;  %3847 = vmatprep.mubr.msk.bf16.mxu1 %vm4238_vm0, %v7909_v0 }
  0x3a   :  { %3744 = vmatmul.mubr.msk.bf16.gmra.mrb[24].mxu0 %vm215_vm1, %v4147_v15  ;;  %3848 = vmatmul.mubr.msk.bf16.gmra.mrb[24].mxu1 %vm215_vm1, %v4148_v16 }
  0x3b   :  { %3747 = vmatprep.mubr.msk.bf16.mxu0 %vm4238_vm0, %v7909_v0  ;;  %3851 = vmatprep.mubr.msk.bf16.mxu1 %vm4238_vm0, %v7909_v0 }
  0x42   :  { %3748 = vmatmul.mubr.msk.bf16.gmra.mrb[28].mxu0 %vm215_vm1, %v4149_v17  ;;  %3852 = vmatmul.mubr.msk.bf16.gmra.mrb[28].mxu1 %vm215_vm1, %v4150_v18 }
  0x43   :  { %3751 = vmatprep.mubr.msk.bf16.mxu0 %vm4238_vm0, %v7909_v0  ;;  %3855 = vmatprep.mubr.msk.bf16.mxu1 %vm4238_vm0, %v7909_v0 }
  0x4a   :  { %3752 = vmatmul.mubr.msk.bf16.gmra.mrb[32].mxu0 %vm215_vm1, %v4151_v19  ;;  %3856 = vmatmul.mubr.msk.bf16.gmra.mrb[32].mxu1 %vm215_vm1, %v4152_v20  ;;  %v4191_v20 = vld [vmem:[%s7904_s2 + $0x18] sm:$0xff]  }
  0x4b   :  { %3755 = vmatprep.mubr.msk.bf16.mxu0 %vm4238_vm0, %v7909_v0  ;;  %3859 = vmatprep.mubr.msk.bf16.mxu1 %vm4238_vm0, %v7909_v0 }
  0x52   :  { %3756 = vmatmul.mubr.msk.bf16.gmra.mrb[36].mxu0 %vm215_vm1, %v4153_v21  ;;  %3860 = vmatmul.mubr.msk.bf16.gmra.mrb[36].mxu1 %vm215_vm1, %v4154_v22  ;;  %v4192_v21 = vld [vmem:[%s7905_s3 + $0x18] sm:$0xff]  }
  0x53   :  { %3759 = vmatprep.mubr.msk.bf16.mxu0 %vm4238_vm0, %v7909_v0  ;;  %3863 = vmatprep.mubr.msk.bf16.mxu1 %vm4238_vm0, %v7909_v0 }
  0x5a   :  { %3760 = vmatmul.mubr.msk.bf16.gmra.mrb[40].mxu0 %vm215_vm1, %v4155_v23  ;;  %3864 = vmatmul.mubr.msk.bf16.gmra.mrb[40].mxu1 %vm215_vm1, %v4156_v24 }
  0x5b   :  { %3763 = vmatprep.mubr.msk.bf16.mxu0 %vm4238_vm0, %v7909_v0  ;;  %3867 = vmatprep.mubr.msk.bf16.mxu1 %vm4238_vm0, %v7909_v0 }
  0x62   :  { %3764 = vmatmul.mubr.msk.bf16.gmra.mrb[44].mxu0 %vm215_vm1, %v4157_v25  ;;  %3868 = vmatmul.mubr.msk.bf16.gmra.mrb[44].mxu1 %vm215_vm1, %v4158_v26 }
  0x63   :  { %3767 = vmatprep.mubr.msk.bf16.mxu0 %vm4238_vm0, %v7909_v0  ;;  %3871 = vmatprep.mubr.msk.bf16.mxu1 %vm4238_vm0, %v7909_v0 }
  0x6a   :  { %3768 = vmatmul.mubr.msk.bf16.gmra.mrb[48].mxu0 %vm215_vm1, %v4159_v27  ;;  %3872 = vmatmul.mubr.msk.bf16.gmra.mrb[48].mxu1 %vm215_vm1, %v4160_v28 }
  0x6b   :  { %3771 = vmatprep.mubr.msk.bf16.mxu0 %vm4238_vm0, %v7909_v0  ;;  %3875 = vmatprep.mubr.msk.bf16.mxu1 %vm4238_vm0, %v7909_v0 }
  0x72   :  { %3772 = vmatmul.mubr.msk.bf16.gmra.mrb[52].mxu0 %vm215_vm1, %v4161_v29  ;;  %3876 = vmatmul.mubr.msk.bf16.gmra.mrb[52].mxu1 %vm215_vm1, %v4162_v30 }
  0x73   :  { %3775 = vmatprep.mubr.msk.bf16.mxu0 %vm4238_vm0, %v7909_v0  ;;  %3879 = vmatprep.mubr.msk.bf16.mxu1 %vm4238_vm0, %v7909_v0 }
  0x7a   :  { %3776 = vmatmul.mubr.msk.bf16.gmra.mrb[56].mxu0 %vm215_vm1, %v4163_v31  ;;  %3880 = vmatmul.mubr.msk.bf16.gmra.mrb[56].mxu1 %vm215_vm1, %v4164_v32 }
  0x7b   :  { %3779 = vmatprep.mubr.msk.bf16.mxu0 %vm4238_vm0, %v7909_v0  ;;  %3883 = vmatprep.mubr.msk.bf16.mxu1 %vm4238_vm0, %v7909_v0 }
  0x82   :  { %3780 = vmatmul.mubr.msk.bf16.gmra.mrb[60].mxu0 %vm215_vm1, %v4165_v33  ;;  %3884 = vmatmul.mubr.msk.bf16.gmra.mrb[60].mxu1 %vm215_vm1, %v4166_v34 }
  0x83   :  { %3783 = vmatprep.mubr.msk.bf16.mxu0 %vm4238_vm0, %v7909_v0  ;;  %3887 = vmatprep.mubr.msk.bf16.mxu1 %vm4238_vm0, %v7909_v0 }
  0x8a   :  { %3784 = vmatmul.mubr.msk.bf16.gmra.mrb[64].mxu0 %vm215_vm1, %v4167_v35  ;;  %3888 = vmatmul.mubr.msk.bf16.gmra.mrb[64].mxu1 %vm215_vm1, %v4168_v36 }
  0x8b   :  { %3787 = vmatprep.mubr.msk.bf16.mxu0 %vm4238_vm0, %v7909_v0  ;;  %3891 = vmatprep.mubr.msk.bf16.mxu1 %vm4238_vm0, %v7909_v0 }
  0x92   :  { %3788 = vmatmul.mubr.msk.bf16.gmra.mrb[68].mxu0 %vm215_vm1, %v4169_v37  ;;  %3892 = vmatmul.mubr.msk.bf16.gmra.mrb[68].mxu1 %vm215_vm1, %v4170_v38 }
  0x93   :  { %3791 = vmatprep.mubr.msk.bf16.mxu0 %vm4238_vm0, %v7909_v0  ;;  %3895 = vmatprep.mubr.msk.bf16.mxu1 %vm4238_vm0, %v7909_v0 }
  0x9a   :  { %3792 = vmatmul.mubr.msk.bf16.gmra.mrb[72].mxu0 %vm215_vm1, %v4171_v39  ;;  %3896 = vmatmul.mubr.msk.bf16.gmra.mrb[72].mxu1 %vm215_vm1, %v4172_v40 }
  0x9b   :  { %3795 = vmatprep.mubr.msk.bf16.mxu0 %vm4238_vm0, %v7909_v0  ;;  %3899 = vmatprep.mubr.msk.bf16.mxu1 %vm4238_vm0, %v7909_v0 }
  0xa2   :  { %3796 = vmatmul.mubr.msk.bf16.gmra.mrb[76].mxu0 %vm215_vm1, %v4173_v41  ;;  %3900 = vmatmul.mubr.msk.bf16.gmra.mrb[76].mxu1 %vm215_vm1, %v4174_v42  ;;  %v4193_v42 = vld [vmem:[%s7904_s2 + $0x20] sm:$0xff]  }
  0xa3   :  { %3799 = vmatprep.mubr.msk.bf16.mxu0 %vm4238_vm0, %v7909_v0  ;;  %3903 = vmatprep.mubr.msk.bf16.mxu1 %vm4238_vm0, %v7909_v0 }
  0xaa   :  { %3800 = vmatmul.mubr.msk.bf16.gmra.mrb[80].mxu0 %vm215_vm1, %v4175_v43  ;;  %3904 = vmatmul.mubr.msk.bf16.gmra.mrb[80].mxu1 %vm215_vm1, %v4176_v44  ;;  %v4194_v43 = vld [vmem:[%s7905_s3 + $0x20] sm:$0xff]  }
  0xab   :  { %3803 = vmatprep.mubr.msk.bf16.mxu0 %vm4238_vm0, %v7909_v0  ;;  %3907 = vmatprep.mubr.msk.bf16.mxu1 %vm4238_vm0, %v7909_v0 }
  0xb2   :  { %3804 = vmatmul.mubr.msk.bf16.gmra.mrb[84].mxu0 %vm215_vm1, %v4177_v45  ;;  %3908 = vmatmul.mubr.msk.bf16.gmra.mrb[84].mxu1 %vm215_vm1, %v4178_v46 }
  0xb3   :  { %3807 = vmatprep.mubr.msk.bf16.mxu0 %vm4238_vm0, %v7909_v0  ;;  %3911 = vmatprep.mubr.msk.bf16.mxu1 %vm4238_vm0, %v7909_v0 }
  0xba   :  { %3808 = vmatmul.mubr.msk.bf16.gmra.mrb[88].mxu0 %vm215_vm1, %v4179_v47  ;;  %3912 = vmatmul.mubr.msk.bf16.gmra.mrb[88].mxu1 %vm215_vm1, %v4180_v48 }
  0xbb   :  { %3811 = vmatprep.mubr.msk.bf16.mxu0 %vm4238_vm0, %v7909_v0  ;;  %3915 = vmatprep.mubr.msk.bf16.mxu1 %vm4238_vm0, %v7909_v0 }
  0xc2   :  { %3812 = vmatmul.mubr.msk.bf16.gmra.mrb[92].mxu0 %vm215_vm1, %v4181_v49  ;;  %3916 = vmatmul.mubr.msk.bf16.gmra.mrb[92].mxu1 %vm215_vm1, %v4182_v50 }
  0xc3   :  { %3815 = vmatprep.mubr.msk.bf16.mxu0 %vm4238_vm0, %v7909_v0  ;;  %3919 = vmatprep.mubr.msk.bf16.mxu1 %vm4238_vm0, %v7909_v0 }
  0xca   :  { %3816 = vmatmul.mubr.msk.bf16.gmra.mrb[96].mxu0 %vm215_vm1, %v4183_v51  ;;  %3920 = vmatmul.mubr.msk.bf16.gmra.mrb[96].mxu1 %vm215_vm1, %v4184_v52 }
  0xcb   :  { %3927 = vmatprep.mubr.msk.bf16.mxu0 %vm4238_vm0, %v7909_v0  ;;  %4031 = vmatprep.mubr.msk.bf16.mxu1 %vm4238_vm0, %v7909_v0 }
  0xd2   :  { %3928 = vmatmul.mubr.msk.bf16.vlgmr.msra.gmra.mrb[100].mxu0 %vm215_vm1, %v4185_v53  ;;  %4032 = vmatmul.mubr.msk.bf16.vlgmr.msra.gmra.mrb[100].mxu1 %vm215_vm1, %v4186_v54 }
  0xd3   :  { %3931 = vmatprep.mubr.msk.bf16.mxu0 %vm4238_vm0, %v7909_v0  ;;  %4035 = vmatprep.mubr.msk.bf16.mxu1 %vm4238_vm0, %v7909_v0 }
  0xda   :  { %3932 = vmatmul.mubr.msk.bf16.gmra.mrb[104].mxu0 %vm215_vm1, %v4187_v55  ;;  %4036 = vmatmul.mubr.msk.bf16.gmra.mrb[104].mxu1 %vm215_vm1, %v4188_v56 }
  0xdb   :  { %3935 = vmatprep.mubr.msk.bf16.mxu0 %vm4238_vm0, %v7909_v0  ;;  %4039 = vmatprep.mubr.msk.bf16.mxu1 %vm4238_vm0, %v7909_v0 }
  0xdd   :  { %v4621_v57 = vpop.f32.mrb[0].mxu0  ;;  %v4623_v58 = vpop.f32.mrb[0].mxu1 }
  0xde   :  { %8220 = vst [vmem:[#allocation2_spill] sm:$0xff] %v4623_v58  ;;  %v2282_v59 = vmul.f32 %v4623_v58, %v4623_v58  ;;  %v3721_v60 = vpop.f32.mrb[1].mxu0  ;;  %v3825_v61 = vpop.f32.mrb[1].mxu1  ;;  %v2179_v1 = vmul.f32 %v4621_v57, %v4621_v57 }
  0xdf   :  { %v4635_v2 = vpop.f32.mrb[2].mxu0  ;;  %v4637_v3 = vpop.f32.mrb[2].mxu1 }
  0xe0   :  { %8221 = vst [vmem:[#allocation3_spill] sm:$0xff] %v4637_v3  ;;  %v1960_v4 = vadd.f32 %v4635_v2, %v4621_v57  ;;  %v2180_v5 = vmul.f32 %v4635_v2, %v4635_v2  ;;  %v2014_v6 = vadd.f32 %v4637_v3, %v4623_v58  ;;  %v2283_v7 = vmul.f32 %v4637_v3, %v4637_v3  ;;  %v3722_v8 = vpop.f32.mrb[3].mxu0  ;;  %v3826_v9 = vpop.f32.mrb[3].mxu1 }
  0xe2   :  { %v2228_v10 = vadd.f32 %v2180_v5, %v2179_v1  ;;  %v2331_v11 = vadd.f32 %v2283_v7, %v2282_v59  ;;  %3936 = vmatmul.mubr.msk.bf16.gmra.mrb[108].mxu0 %vm215_vm1, %v4189_v62  ;;  %4040 = vmatmul.mubr.msk.bf16.gmra.mrb[108].mxu1 %vm215_vm1, %v4190_v63  ;;  %v4195_v5 = vld [vmem:[%s7904_s2 + $0x28] sm:$0xff]  }
  0xe3   :  { %3939 = vmatprep.mubr.msk.bf16.mxu0 %vm4238_vm0, %v7909_v0  ;;  %4043 = vmatprep.mubr.msk.bf16.mxu1 %vm4238_vm0, %v7909_v0 }
  0xe5   :  { %v4653_v12 = vpop.f32.mrb[4].mxu0  ;;  %v4655_v13 = vpop.f32.mrb[4].mxu1 }
  0xe6   :  { %8222 = vst [vmem:[#allocation4_spill] sm:$0xff] %v4655_v13  ;;  %v1961_v14 = vadd.f32 %v1960_v4, %v4653_v12  ;;  %v2181_v15 = vmul.f32 %v4653_v12, %v4653_v12  ;;  %v2015_v16 = vadd.f32 %v2014_v6, %v4655_v13  ;;  %v2284_v17 = vmul.f32 %v4655_v13, %v4655_v13  ;;  %v3725_v18 = vpop.f32.mrb[5].mxu0  ;;  %v3829_v19 = vpop.f32.mrb[5].mxu1  ;;  %v4196_v6 = vld [vmem:[%s7905_s3 + $0x28] sm:$0xff]  }
  0xe7   :  { %v4669_v22 = vpop.f32.mrb[6].mxu0  ;;  %v4671_v23 = vpop.f32.mrb[6].mxu1 }
  0xe8   :  { %8223 = vst [vmem:[#allocation5_spill] sm:$0xff] %v4671_v23  ;;  %v2229_v24 = vadd.f32 %v2228_v10, %v2181_v15  ;;  %v2332_v25 = vadd.f32 %v2331_v11, %v2284_v17  ;;  %v1962_v26 = vadd.f32 %v1961_v14, %v4669_v22  ;;  %v2182_v27 = vmul.f32 %v4669_v22, %v4669_v22  ;;  %v3726_v28 = vpop.f32.mrb[7].mxu0  ;;  %v3830_v29 = vpop.f32.mrb[7].mxu1 }
  0xe9   :  { %v2016_v30 = vadd.f32 %v2015_v16, %v4671_v23  ;;  %v2285_v31 = vmul.f32 %v4671_v23, %v4671_v23 }
  0xea   :  { %v2230_v32 = vadd.f32 %v2229_v24, %v2182_v27  ;;  %3940 = vmatmul.mubr.msk.bf16.gmra.mrb[112].mxu0 %vm215_vm1, %v4191_v20  ;;  %4044 = vmatmul.mubr.msk.bf16.gmra.mrb[112].mxu1 %vm215_vm1, %v4192_v21 }
  0xeb   :  { %v2333_v33 = vadd.f32 %v2332_v25, %v2285_v31  ;;  %3943 = vmatprep.mubr.msk.bf16.mxu0 %vm4238_vm0, %v7909_v0  ;;  %4047 = vmatprep.mubr.msk.bf16.mxu1 %vm4238_vm0, %v7909_v0  ;;  %v4197_v31 = vld [vmem:[%s7904_s2 + $0x30] sm:$0xff]  }
  0xed   :  { %v4685_v34 = vpop.f32.mrb[8].mxu0  ;;  %v4687_v35 = vpop.f32.mrb[8].mxu1 }
  0xee   :  { %8224 = vst [vmem:[#allocation6_spill] sm:$0xff] %v4687_v35  ;;  %v1963_v36 = vadd.f32 %v1962_v26, %v4685_v34  ;;  %v2183_v37 = vmul.f32 %v4685_v34, %v4685_v34  ;;  %v2017_v38 = vadd.f32 %v2016_v30, %v4687_v35  ;;  %v2286_v39 = vmul.f32 %v4687_v35, %v4687_v35  ;;  %v3729_v40 = vpop.f32.mrb[9].mxu0  ;;  %v3833_v41 = vpop.f32.mrb[9].mxu1 }
  0xef   :  { %v4701_v44 = vpop.f32.mrb[10].mxu0  ;;  %v4703_v45 = vpop.f32.mrb[10].mxu1 }
  0xf0   :  { %8225 = vst [vmem:[#allocation7_spill] sm:$0xff] %v4703_v45  ;;  %v2231_v46 = vadd.f32 %v2230_v32, %v2183_v37  ;;  %v2334_v47 = vadd.f32 %v2333_v33, %v2286_v39  ;;  %v1964_v48 = vadd.f32 %v1963_v36, %v4701_v44  ;;  %v2184_v49 = vmul.f32 %v4701_v44, %v4701_v44  ;;  %v3730_v50 = vpop.f32.mrb[11].mxu0  ;;  %v3834_v51 = vpop.f32.mrb[11].mxu1  ;;  %v4198_v32 = vld [vmem:[%s7905_s3 + $0x30] sm:$0xff]  }
  0xf1   :  { %v2018_v52 = vadd.f32 %v2017_v38, %v4703_v45  ;;  %v2287_v53 = vmul.f32 %v4703_v45, %v4703_v45 }
  0xf2   :  { %v2232_v54 = vadd.f32 %v2231_v46, %v2184_v49  ;;  %3944 = vmatmul.mubr.msk.bf16.gmra.mrb[116].mxu0 %vm215_vm1, %v4193_v42  ;;  %4048 = vmatmul.mubr.msk.bf16.gmra.mrb[116].mxu1 %vm215_vm1, %v4194_v43 }
  0xf3   :  { %v2335_v55 = vadd.f32 %v2334_v47, %v2287_v53  ;;  %3947 = vmatprep.mubr.msk.bf16.mxu0 %vm4238_vm0, %v7909_v0  ;;  %4051 = vmatprep.mubr.msk.bf16.mxu1 %vm4238_vm0, %v7909_v0 }
  0xf5   :  { %v4717_v56 = vpop.f32.mrb[12].mxu0  ;;  %v4719_v59 = vpop.f32.mrb[12].mxu1 }
  0xf6   :  { %8226 = vst [vmem:[#allocation8_spill] sm:$0xff] %v4719_v59  ;;  %v1965_v60 = vadd.f32 %v1964_v48, %v4717_v56  ;;  %v2185_v61 = vmul.f32 %v4717_v56, %v4717_v56  ;;  %v2019_v62 = vadd.f32 %v2018_v52, %v4719_v59  ;;  %v2288_v63 = vmul.f32 %v4719_v59, %v4719_v59  ;;  %v3733_v1 = vpop.f32.mrb[13].mxu0  ;;  %v3837_v4 = vpop.f32.mrb[13].mxu1 }
  0xf7   :  { %v4733_v7 = vpop.f32.mrb[14].mxu0  ;;  %v4735_v8 = vpop.f32.mrb[14].mxu1 }
  0xf8   :  { %8227 = vst [vmem:[#allocation9_spill] sm:$0xff] %v4735_v8  ;;  %v2233_v9 = vadd.f32 %v2232_v54, %v2185_v61  ;;  %v2336_v10 = vadd.f32 %v2335_v55, %v2288_v63  ;;  %v1966_v11 = vadd.f32 %v1965_v60, %v4733_v7  ;;  %v2186_v14 = vmul.f32 %v4733_v7, %v4733_v7  ;;  %v3734_v15 = vpop.f32.mrb[15].mxu0  ;;  %v3838_v16 = vpop.f32.mrb[15].mxu1  ;;  %v4199_v61 = vld [vmem:[%s7904_s2 + $0x38] sm:$0xff]  }
  0xf9   :  { %v2020_v17 = vadd.f32 %v2019_v62, %v4735_v8  ;;  %v2289_v18 = vmul.f32 %v4735_v8, %v4735_v8  ;;  %v4200_v62 = vld [vmem:[%s7905_s3 + $0x38] sm:$0xff]  }
  0xfa   :  { %v2234_v19 = vadd.f32 %v2233_v9, %v2186_v14  ;;  %3948 = vmatmul.mubr.msk.bf16.gmra.mrb[120].mxu0 %vm215_vm1, %v4195_v5  ;;  %4052 = vmatmul.mubr.msk.bf16.gmra.mrb[120].mxu1 %vm215_vm1, %v4196_v6 }
  0xfb   :  { %v2337_v20 = vadd.f32 %v2336_v10, %v2289_v18  ;;  %3951 = vmatprep.mubr.msk.bf16.mxu0 %vm4238_vm0, %v7909_v0  ;;  %4055 = vmatprep.mubr.msk.bf16.mxu1 %vm4238_vm0, %v7909_v0 }
  0xfd   :  { %v4749_v21 = vpop.f32.mrb[16].mxu0  ;;  %v4751_v24 = vpop.f32.mrb[16].mxu1 }
  0xfe   :  { %8228 = vst [vmem:[#allocation10_spill] sm:$0xff] %v4751_v24  ;;  %v1967_v25 = vadd.f32 %v1966_v11, %v4749_v21  ;;  %v2187_v26 = vmul.f32 %v4749_v21, %v4749_v21  ;;  %v2021_v27 = vadd.f32 %v2020_v17, %v4751_v24  ;;  %v2290_v28 = vmul.f32 %v4751_v24, %v4751_v24  ;;  %v3737_v29 = vpop.f32.mrb[17].mxu0  ;;  %v3841_v30 = vpop.f32.mrb[17].mxu1 }
  0xff   :  { %v4765_v33 = vpop.f32.mrb[18].mxu0  ;;  %v4767_v36 = vpop.f32.mrb[18].mxu1  ;;  %v4201_v30 = vld [vmem:[%s7904_s2 + $0x40] sm:$0xff]  }
 0x100   :  { %8229 = vst [vmem:[#allocation11_spill] sm:$0xff] %v4767_v36  ;;  %v2235_v37 = vadd.f32 %v2234_v19, %v2187_v26  ;;  %v2338_v38 = vadd.f32 %v2337_v20, %v2290_v28  ;;  %v1968_v39 = vadd.f32 %v1967_v25, %v4765_v33  ;;  %v2188_v40 = vmul.f32 %v4765_v33, %v4765_v33  ;;  %v3738_v41 = vpop.f32.mrb[19].mxu0  ;;  %v3842_v42 = vpop.f32.mrb[19].mxu1 }
 0x101   :  { %v2022_v43 = vadd.f32 %v2021_v27, %v4767_v36  ;;  %v2291_v46 = vmul.f32 %v4767_v36, %v4767_v36 }
 0x102   :  { %v2236_v47 = vadd.f32 %v2235_v37, %v2188_v40  ;;  %3952 = vmatmul.mubr.msk.bf16.gmra.mrb[124].mxu0 %vm215_vm1, %v4197_v31  ;;  %4056 = vmatmul.mubr.msk.bf16.gmra.mrb[124].mxu1 %vm215_vm1, %v4198_v32  ;;  %v4202_v31 = vld [vmem:[%s7905_s3 + $0x40] sm:$0xff]  }
 0x103   :  { %v2339_v48 = vadd.f32 %v2338_v38, %v2291_v46  ;;  %3955 = vmatprep.mubr.msk.bf16.mxu0 %vm4238_vm0, %v7909_v0  ;;  %4059 = vmatprep.mubr.msk.bf16.mxu1 %vm4238_vm0, %v7909_v0 }
 0x105   :  { %v4781_v49 = vpop.f32.mrb[20].mxu0  ;;  %v4783_v50 = vpop.f32.mrb[20].mxu1 }
 0x106   :  { %8230 = vst [vmem:[#allocation12_spill] sm:$0xff] %v4783_v50  ;;  %v1969_v51 = vadd.f32 %v1968_v39, %v4781_v49  ;;  %v2189_v52 = vmul.f32 %v4781_v49, %v4781_v49  ;;  %v2023_v53 = vadd.f32 %v2022_v43, %v4783_v50  ;;  %v2292_v54 = vmul.f32 %v4783_v50, %v4783_v50  ;;  %v3741_v55 = vpop.f32.mrb[21].mxu0  ;;  %v3845_v60 = vpop.f32.mrb[21].mxu1 }
 0x107   :  { %v4797_v63 = vpop.f32.mrb[22].mxu0  ;;  %v4799_v1 = vpop.f32.mrb[22].mxu1 }
 0x108   :  { %8231 = vst [vmem:[#allocation13_spill] sm:$0xff] %v4799_v1  ;;  %v2237_v4 = vadd.f32 %v2236_v47, %v2189_v52  ;;  %v2340_v5 = vadd.f32 %v2339_v48, %v2292_v54  ;;  %v1970_v6 = vadd.f32 %v1969_v51, %v4797_v63  ;;  %v2190_v9 = vmul.f32 %v4797_v63, %v4797_v63  ;;  %v3742_v10 = vpop.f32.mrb[23].mxu0  ;;  %v3846_v11 = vpop.f32.mrb[23].mxu1 }
 0x109   :  { %v2024_v14 = vadd.f32 %v2023_v53, %v4799_v1  ;;  %v2293_v15 = vmul.f32 %v4799_v1, %v4799_v1 }
 0x10a   :  { %v2238_v16 = vadd.f32 %v2237_v4, %v2190_v9  ;;  %3956 = vmatmul.mubr.msk.bf16.gmra.mrb[128].mxu0 %vm215_vm1, %v4199_v61  ;;  %4060 = vmatmul.mubr.msk.bf16.gmra.mrb[128].mxu1 %vm215_vm1, %v4200_v62 }
 0x10b   :  { %v2341_v17 = vadd.f32 %v2340_v5, %v2293_v15  ;;  %3959 = vmatprep.mubr.msk.bf16.mxu0 %vm4238_vm0, %v7909_v0  ;;  %4063 = vmatprep.mubr.msk.bf16.mxu1 %vm4238_vm0, %v7909_v0  ;;  %v4203_v5 = vld [vmem:[%s7904_s2 + $0x48] sm:$0xff]  }
 0x10d   :  { %v4813_v18 = vpop.f32.mrb[24].mxu0  ;;  %v4815_v19 = vpop.f32.mrb[24].mxu1 }
 0x10e   :  { %8232 = vst [vmem:[#allocation14_spill] sm:$0xff] %v4815_v19  ;;  %v1971_v20 = vadd.f32 %v1970_v6, %v4813_v18  ;;  %v2191_v25 = vmul.f32 %v4813_v18, %v4813_v18  ;;  %v2025_v26 = vadd.f32 %v2024_v14, %v4815_v19  ;;  %v2294_v27 = vmul.f32 %v4815_v19, %v4815_v19  ;;  %v3745_v28 = vpop.f32.mrb[25].mxu0  ;;  %v3849_v29 = vpop.f32.mrb[25].mxu1  ;;  %v4204_v6 = vld [vmem:[%s7905_s3 + $0x48] sm:$0xff]  }
 0x10f   :  { %v4829_v32 = vpop.f32.mrb[26].mxu0  ;;  %v4831_v37 = vpop.f32.mrb[26].mxu1 }
 0x110   :  { %8233 = vst [vmem:[#allocation15_spill] sm:$0xff] %v4831_v37  ;;  %v2239_v38 = vadd.f32 %v2238_v16, %v2191_v25  ;;  %v2342_v39 = vadd.f32 %v2341_v17, %v2294_v27  ;;  %v1972_v40 = vadd.f32 %v1971_v20, %v4829_v32  ;;  %v2192_v41 = vmul.f32 %v4829_v32, %v4829_v32  ;;  %v3746_v42 = vpop.f32.mrb[27].mxu0  ;;  %v3850_v43 = vpop.f32.mrb[27].mxu1 }
 0x111   :  { %v2026_v46 = vadd.f32 %v2025_v26, %v4831_v37  ;;  %v2295_v47 = vmul.f32 %v4831_v37, %v4831_v37  ;;  %v4205_v43 = vld [vmem:[%s7904_s2 + $0x50] sm:$0xff]  }
 0x112   :  { %v2240_v48 = vadd.f32 %v2239_v38, %v2192_v41  ;;  %3960 = vmatmul.mubr.msk.bf16.gmra.mrb[132].mxu0 %vm215_vm1, %v4201_v30  ;;  %4064 = vmatmul.mubr.msk.bf16.gmra.mrb[132].mxu1 %vm215_vm1, %v4202_v31 }
 0x113   :  { %v2343_v51 = vadd.f32 %v2342_v39, %v2295_v47  ;;  %3963 = vmatprep.mubr.msk.bf16.mxu0 %vm4238_vm0, %v7909_v0  ;;  %4067 = vmatprep.mubr.msk.bf16.mxu1 %vm4238_vm0, %v7909_v0 }
 0x115   :  { %v4845_v52 = vpop.f32.mrb[28].mxu0  ;;  %v4847_v53 = vpop.f32.mrb[28].mxu1 }
 0x116   :  { %8234 = vst [vmem:[#allocation16_spill] sm:$0xff] %v4847_v53  ;;  %v1973_v54 = vadd.f32 %v1972_v40, %v4845_v52  ;;  %v2193_v55 = vmul.f32 %v4845_v52, %v4845_v52  ;;  %v2027_v60 = vadd.f32 %v2026_v46, %v4847_v53  ;;  %v2296_v61 = vmul.f32 %v4847_v53, %v4847_v53  ;;  %v3749_v62 = vpop.f32.mrb[29].mxu0  ;;  %v3853_v4 = vpop.f32.mrb[29].mxu1  ;;  %v4206_v46 = vld [vmem:[%s7905_s3 + $0x50] sm:$0xff]  }
 0x117   :  { %v4861_v9 = vpop.f32.mrb[30].mxu0  ;;  %v4863_v10 = vpop.f32.mrb[30].mxu1 }
 0x118   :  { %8235 = vst [vmem:[#allocation17_spill] sm:$0xff] %v4863_v10  ;;  %v2241_v11 = vadd.f32 %v2240_v48, %v2193_v55  ;;  %v2344_v14 = vadd.f32 %v2343_v51, %v2296_v61  ;;  %v1974_v15 = vadd.f32 %v1973_v54, %v4861_v9  ;;  %v2194_v16 = vmul.f32 %v4861_v9, %v4861_v9  ;;  %v3750_v17 = vpop.f32.mrb[31].mxu0  ;;  %v3854_v20 = vpop.f32.mrb[31].mxu1 }
 0x119   :  { %v2028_v25 = vadd.f32 %v2027_v60, %v4863_v10  ;;  %v2297_v26 = vmul.f32 %v4863_v10, %v4863_v10 }
 0x11a   :  { %v2242_v27 = vadd.f32 %v2241_v11, %v2194_v16  ;;  %3964 = vmatmul.mubr.msk.bf16.gmra.mrb[136].mxu0 %vm215_vm1, %v4203_v5  ;;  %4068 = vmatmul.mubr.msk.bf16.gmra.mrb[136].mxu1 %vm215_vm1, %v4204_v6 }
 0x11b   :  { %v2345_v28 = vadd.f32 %v2344_v14, %v2297_v26  ;;  %3967 = vmatprep.mubr.msk.bf16.mxu0 %vm4238_vm0, %v7909_v0  ;;  %4071 = vmatprep.mubr.msk.bf16.mxu1 %vm4238_vm0, %v7909_v0 }
 0x11d   :  { %v4877_v29 = vpop.f32.mrb[32].mxu0  ;;  %v4879_v30 = vpop.f32.mrb[32].mxu1 }
 0x11e   :  { %8236 = vst [vmem:[#allocation18_spill] sm:$0xff] %v4879_v30  ;;  %v1975_v31 = vadd.f32 %v1974_v15, %v4877_v29  ;;  %v2195_v38 = vmul.f32 %v4877_v29, %v4877_v29  ;;  %v2029_v39 = vadd.f32 %v2028_v25, %v4879_v30  ;;  %v2298_v40 = vmul.f32 %v4879_v30, %v4879_v30  ;;  %v3753_v41 = vpop.f32.mrb[33].mxu0  ;;  %v3857_v42 = vpop.f32.mrb[33].mxu1 }
 0x11f   :  { %v4893_v47 = vpop.f32.mrb[34].mxu0  ;;  %v4895_v48 = vpop.f32.mrb[34].mxu1 }
 0x120   :  { %8237 = vst [vmem:[#allocation19_spill] sm:$0xff] %v4895_v48  ;;  %v2243_v51 = vadd.f32 %v2242_v27, %v2195_v38  ;;  %v2346_v54 = vadd.f32 %v2345_v28, %v2298_v40  ;;  %v1976_v55 = vadd.f32 %v1975_v31, %v4893_v47  ;;  %v2196_v60 = vmul.f32 %v4893_v47, %v4893_v47  ;;  %v3754_v61 = vpop.f32.mrb[35].mxu0  ;;  %v3858_v62 = vpop.f32.mrb[35].mxu1  ;;  %v4207_v28 = vld [vmem:[%s7904_s2 + $0x58] sm:$0xff]  }
 0x121   :  { %v2030_v4 = vadd.f32 %v2029_v39, %v4895_v48  ;;  %v2299_v5 = vmul.f32 %v4895_v48, %v4895_v48  ;;  %v4208_v31 = vld [vmem:[%s7905_s3 + $0x58] sm:$0xff]  }
 0x122   :  { %v2244_v6 = vadd.f32 %v2243_v51, %v2196_v60  ;;  %3968 = vmatmul.mubr.msk.bf16.gmra.mrb[140].mxu0 %vm215_vm1, %v4205_v43  ;;  %4072 = vmatmul.mubr.msk.bf16.gmra.mrb[140].mxu1 %vm215_vm1, %v4206_v46 }
 0x123   :  { %v2347_v11 = vadd.f32 %v2346_v54, %v2299_v5  ;;  %3971 = vmatprep.mubr.msk.bf16.mxu0 %vm4238_vm0, %v7909_v0  ;;  %4075 = vmatprep.mubr.msk.bf16.mxu1 %vm4238_vm0, %v7909_v0 }
 0x125   :  { %v4909_v14 = vpop.f32.mrb[36].mxu0  ;;  %v4911_v15 = vpop.f32.mrb[36].mxu1 }
 0x126   :  { %8238 = vst [vmem:[#allocation20_spill] sm:$0xff] %v4911_v15  ;;  %v1977_v16 = vadd.f32 %v1976_v55, %v4909_v14  ;;  %v2197_v17 = vmul.f32 %v4909_v14, %v4909_v14  ;;  %v2031_v20 = vadd.f32 %v2030_v4, %v4911_v15  ;;  %v2300_v25 = vmul.f32 %v4911_v15, %v4911_v15  ;;  %v3757_v26 = vpop.f32.mrb[37].mxu0  ;;  %v3861_v27 = vpop.f32.mrb[37].mxu1 }
 0x127   :  { %v4925_v38 = vpop.f32.mrb[38].mxu0  ;;  %v4927_v39 = vpop.f32.mrb[38].mxu1  ;;  %v4210_v26 = vld [vmem:[%s7905_s3 + $0x60] sm:$0xff]  }
 0x128   :  { %8239 = vst [vmem:[#allocation21_spill] sm:$0xff] %v4927_v39  ;;  %v2245_v40 = vadd.f32 %v2244_v6, %v2197_v17  ;;  %v2348_v41 = vadd.f32 %v2347_v11, %v2300_v25  ;;  %v1978_v42 = vadd.f32 %v1977_v16, %v4925_v38  ;;  %v2198_v43 = vmul.f32 %v4925_v38, %v4925_v38  ;;  %v3758_v46 = vpop.f32.mrb[39].mxu0  ;;  %v3862_v51 = vpop.f32.mrb[39].mxu1  ;;  %v4209_v25 = vld [vmem:[%s7904_s2 + $0x60] sm:$0xff]  }
 0x129   :  { %v2032_v54 = vadd.f32 %v2031_v20, %v4927_v39  ;;  %v2301_v55 = vmul.f32 %v4927_v39, %v4927_v39 }
 0x12a   :  { %v2246_v60 = vadd.f32 %v2245_v40, %v2198_v43  ;;  %3972 = vmatmul.mubr.msk.bf16.gmra.mrb[144].mxu0 %vm215_vm1, %v4207_v28  ;;  %4076 = vmatmul.mubr.msk.bf16.gmra.mrb[144].mxu1 %vm215_vm1, %v4208_v31 }
 0x12b   :  { %v2349_v61 = vadd.f32 %v2348_v41, %v2301_v55  ;;  %3975 = vmatprep.mubr.msk.bf16.mxu0 %vm4238_vm0, %v7909_v0  ;;  %4079 = vmatprep.mubr.msk.bf16.mxu1 %vm4238_vm0, %v7909_v0 }
 0x12d   :  { %v4941_v62 = vpop.f32.mrb[40].mxu0  ;;  %v4943_v4 = vpop.f32.mrb[40].mxu1 }
 0x12e   :  { %8240 = vst [vmem:[#allocation22_spill] sm:$0xff] %v4943_v4  ;;  %v1979_v5 = vadd.f32 %v1978_v42, %v4941_v62  ;;  %v2199_v6 = vmul.f32 %v4941_v62, %v4941_v62  ;;  %v2033_v11 = vadd.f32 %v2032_v54, %v4943_v4  ;;  %v2302_v16 = vmul.f32 %v4943_v4, %v4943_v4  ;;  %v3761_v17 = vpop.f32.mrb[41].mxu0  ;;  %v3865_v20 = vpop.f32.mrb[41].mxu1 }
 0x12f   :  { %v4957_v27 = vpop.f32.mrb[42].mxu0  ;;  %v4959_v28 = vpop.f32.mrb[42].mxu1 }
 0x130   :  { %8241 = vst [vmem:[#allocation23_spill] sm:$0xff] %v4959_v28  ;;  %v2247_v31 = vadd.f32 %v2246_v60, %v2199_v6  ;;  %v2350_v40 = vadd.f32 %v2349_v61, %v2302_v16  ;;  %v1980_v41 = vadd.f32 %v1979_v5, %v4957_v27  ;;  %v2200_v42 = vmul.f32 %v4957_v27, %v4957_v27  ;;  %v3762_v43 = vpop.f32.mrb[43].mxu0  ;;  %v3866_v46 = vpop.f32.mrb[43].mxu1 }
 0x131   :  { %v2034_v51 = vadd.f32 %v2033_v11, %v4959_v28  ;;  %v2303_v54 = vmul.f32 %v4959_v28, %v4959_v28 }
 0x132   :  { %v2248_v55 = vadd.f32 %v2247_v31, %v2200_v42  ;;  %3976 = vmatmul.mubr.msk.bf16.gmra.mrb[148].mxu0 %vm215_vm1, %v4209_v25  ;;  %4080 = vmatmul.mubr.msk.bf16.gmra.mrb[148].mxu1 %vm215_vm1, %v4210_v26  ;;  %v4211_v26 = vld [vmem:[%s7904_s2 + $0x68] sm:$0xff]  }
 0x133   :  { %v2351_v17 = vadd.f32 %v2350_v40, %v2303_v54  ;;  %3979 = vmatprep.mubr.msk.bf16.mxu0 %vm4238_vm0, %v7909_v0  ;;  %4083 = vmatprep.mubr.msk.bf16.mxu1 %vm4238_vm0, %v7909_v0  ;;  %v4212_v31 = vld [vmem:[%s7905_s3 + $0x68] sm:$0xff]  }
 0x135   :  { %v4973_v60 = vpop.f32.mrb[44].mxu0  ;;  %v4975_v61 = vpop.f32.mrb[44].mxu1 }
 0x136   :  { %8242 = vst [vmem:[#allocation24_spill] sm:$0xff] %v4975_v61  ;;  %v1981_v5 = vadd.f32 %v1980_v41, %v4973_v60  ;;  %v2201_v6 = vmul.f32 %v4973_v60, %v4973_v60  ;;  %v2035_v11 = vadd.f32 %v2034_v51, %v4975_v61  ;;  %v2304_v16 = vmul.f32 %v4975_v61, %v4975_v61  ;;  %v3765_v20 = vpop.f32.mrb[45].mxu0  ;;  %v3869_v25 = vpop.f32.mrb[45].mxu1 }
 0x137   :  { %v4989_v40 = vpop.f32.mrb[46].mxu0  ;;  %v4991_v41 = vpop.f32.mrb[46].mxu1 }
 0x138   :  { %8243 = vst [vmem:[#allocation25_spill] sm:$0xff] %v4991_v41  ;;  %v2249_v42 = vadd.f32 %v2248_v55, %v2201_v6  ;;  %v2352_v43 = vadd.f32 %v2351_v17, %v2304_v16  ;;  %v1982_v46 = vadd.f32 %v1981_v5, %v4989_v40  ;;  %v2202_v51 = vmul.f32 %v4989_v40, %v4989_v40  ;;  %v3766_v54 = vpop.f32.mrb[47].mxu0  ;;  %v3870_v20 = vpop.f32.mrb[47].mxu1 }
 0x139   :  { %v2036_v25 = vadd.f32 %v2035_v11, %v4991_v41  ;;  %v2305_v0 = vmul.f32 %v4991_v41, %v4991_v41  ;;  %v8244_v55 = vmov 0.0  }
 0x13a   :  { %v2250_v61 = vadd.f32 %v2249_v42, %v2202_v51  ;;  %3980 = vmatmul.mubr.msk.bf16.gmra.mrb[152].mxu0 %vm215_vm1, %v4211_v26  ;;  %4084 = vmatmul.mubr.msk.bf16.gmra.mrb[152].mxu1 %vm215_vm1, %v4212_v31  ;;  %v4213_v42 = vld [vmem:[%s7904_s2 + $0x70] sm:$0xff]  }
 0x13b   :  { %v2353_v28 = vadd.f32 %v2352_v43, %v2305_v0  ;;  %3983 = vmatprep.mubr.msk.bf16.mxu0 %vm4238_vm0, %v8244_v55  ;;  %4087 = vmatprep.mubr.msk.bf16.mxu1 %vm4238_vm0, %v8244_v55  ;;  %v4214_v43 = vld [vmem:[%s7905_s3 + $0x70] sm:$0xff]  }
 0x13d   :  { %v5005_v17 = vpop.f32.mrb[48].mxu0  ;;  %v5007_v5 = vpop.f32.mrb[48].mxu1 }
 0x13e   :  { %8245 = vst [vmem:[#allocation26_spill] sm:$0xff] %v5007_v5  ;;  %v1983_v6 = vadd.f32 %v1982_v46, %v5005_v17  ;;  %v2203_v11 = vmul.f32 %v5005_v17, %v5005_v17  ;;  %v2037_v16 = vadd.f32 %v2036_v25, %v5007_v5  ;;  %v2306_v0 = vmul.f32 %v5007_v5, %v5007_v5  ;;  %v3769_v26 = vpop.f32.mrb[49].mxu0  ;;  %v3873_v31 = vpop.f32.mrb[49].mxu1 }
 0x13f   :  { %v5021_v51 = vpop.f32.mrb[50].mxu0  ;;  %v5023_v46 = vpop.f32.mrb[50].mxu1 }
 0x140   :  { %8246 = vst [vmem:[#allocation27_spill] sm:$0xff] %v5023_v46  ;;  %v2251_v54 = vadd.f32 %v2250_v61, %v2203_v11  ;;  %v2354_v20 = vadd.f32 %v2353_v28, %v2306_v0  ;;  %v1984_v25 = vadd.f32 %v1983_v6, %v5021_v51  ;;  %v2204_v26 = vmul.f32 %v5021_v51, %v5021_v51  ;;  %v3770_v31 = vpop.f32.mrb[51].mxu0  ;;  %v3874_v5 = vpop.f32.mrb[51].mxu1 }
 0x141   :  { %v2038_v41 = vadd.f32 %v2037_v16, %v5023_v46  ;;  %v2307_v4 = vmul.f32 %v5023_v46, %v5023_v46 }
 0x142   :  { %v2252_v39 = vadd.f32 %v2251_v54, %v2204_v26  ;;  %3984 = vmatmul.mubr.msk.bf16.gmra.mrb[156].mxu0 %vm215_vm1, %v4213_v42  ;;  %4088 = vmatmul.mubr.msk.bf16.gmra.mrb[156].mxu1 %vm215_vm1, %v4214_v43  ;;  %v4215_v42 = vld [vmem:[%s7904_s2 + $0x78] sm:$0xff]  }
 0x143   :  { %v2355_v15 = vadd.f32 %v2354_v20, %v2307_v4  ;;  %3987 = vmatprep.mubr.msk.bf16.mxu0 %vm4238_vm0, %v8244_v55  ;;  %4091 = vmatprep.mubr.msk.bf16.mxu1 %vm4238_vm0, %v8244_v55  ;;  %v4216_v43 = vld [vmem:[%s7905_s3 + $0x78] sm:$0xff]  }
 0x145   :  { %v5037_v28 = vpop.f32.mrb[52].mxu0  ;;  %v5039_v61 = vpop.f32.mrb[52].mxu1 }
 0x146   :  { %8247 = vst [vmem:[#allocation28_spill] sm:$0xff] %v5039_v61  ;;  %v1985_v5 = vadd.f32 %v1984_v25, %v5037_v28  ;;  %v2205_v6 = vmul.f32 %v5037_v28, %v5037_v28  ;;  %v2039_v11 = vadd.f32 %v2038_v41, %v5039_v61  ;;  %v2308_v4 = vmul.f32 %v5039_v61, %v5039_v61  ;;  %v3773_v16 = vpop.f32.mrb[53].mxu0  ;;  %v3877_v0 = vpop.f32.mrb[53].mxu1 }
 0x147   :  { %v5053_v54 = vpop.f32.mrb[54].mxu0  ;;  %v5055_v20 = vpop.f32.mrb[54].mxu1 }
 0x148   :  { %8248 = vst [vmem:[#allocation29_spill] sm:$0xff] %v5055_v20  ;;  %v2253_v25 = vadd.f32 %v2252_v39, %v2205_v6  ;;  %v2356_v26 = vadd.f32 %v2355_v15, %v2308_v4  ;;  %v1986_v41 = vadd.f32 %v1985_v5, %v5053_v54  ;;  %v2206_v31 = vmul.f32 %v5053_v54, %v5053_v54  ;;  %v3774_v16 = vpop.f32.mrb[55].mxu0  ;;  %v3878_v0 = vpop.f32.mrb[55].mxu1 }
 0x149   :  { %v2040_v61 = vadd.f32 %v2039_v11, %v5055_v20  ;;  %v2309_v46 = vmul.f32 %v5055_v20, %v5055_v20 }
 0x14a   :  { %v2254_v48 = vadd.f32 %v2253_v25, %v2206_v31  ;;  %3988 = vmatmul.mubr.msk.bf16.gmra.mrb[160].mxu0 %vm215_vm1, %v4215_v42  ;;  %4092 = vmatmul.mubr.msk.bf16.gmra.mrb[160].mxu1 %vm215_vm1, %v4216_v43  ;;  %v4217_v43 = vld [vmem:[%s7904_s2 + $0x80] sm:$0xff]  }
 0x14b   :  { %v2357_v30 = vadd.f32 %v2356_v26, %v2309_v46  ;;  %3991 = vmatprep.mubr.msk.bf16.mxu0 %vm4238_vm0, %v8244_v55  ;;  %4095 = vmatprep.mubr.msk.bf16.mxu1 %vm4238_vm0, %v8244_v55  ;;  %v4218_v25 = vld [vmem:[%s7905_s3 + $0x80] sm:$0xff]  }
 0x14d   :  { %v5069_v15 = vpop.f32.mrb[56].mxu0  ;;  %v5071_v39 = vpop.f32.mrb[56].mxu1 }
 0x14e   :  { %8249 = vst [vmem:[#allocation30_spill] sm:$0xff] %v5071_v39  ;;  %v1987_v5 = vadd.f32 %v1986_v41, %v5069_v15  ;;  %v2207_v6 = vmul.f32 %v5069_v15, %v5069_v15  ;;  %v2041_v11 = vadd.f32 %v2040_v61, %v5071_v39  ;;  %v2310_v46 = vmul.f32 %v5071_v39, %v5071_v39  ;;  %v3777_v4 = vpop.f32.mrb[57].mxu0  ;;  %v3881_v42 = vpop.f32.mrb[57].mxu1 }
 0x14f   :  { %v5085_v26 = vpop.f32.mrb[58].mxu0  ;;  %v5087_v41 = vpop.f32.mrb[58].mxu1 }
 0x150   :  { %8250 = vst [vmem:[#allocation31_spill] sm:$0xff] %v5087_v41  ;;  %v2255_v31 = vadd.f32 %v2254_v48, %v2207_v6  ;;  %v2358_v16 = vadd.f32 %v2357_v30, %v2310_v46  ;;  %v1988_v61 = vadd.f32 %v1987_v5, %v5085_v26  ;;  %v2208_v0 = vmul.f32 %v5085_v26, %v5085_v26  ;;  %v3778_v4 = vpop.f32.mrb[59].mxu0  ;;  %v3882_v42 = vpop.f32.mrb[59].mxu1 }
 0x151   :  { %v2042_v39 = vadd.f32 %v2041_v11, %v5087_v41  ;;  %v2311_v20 = vmul.f32 %v5087_v41, %v5087_v41 }
 0x152   :  { %v2256_v10 = vadd.f32 %v2255_v31, %v2208_v0  ;;  %3992 = vmatmul.mubr.msk.bf16.gmra.mrb[164].mxu0 %vm215_vm1, %v4217_v43  ;;  %4096 = vmatmul.mubr.msk.bf16.gmra.mrb[164].mxu1 %vm215_vm1, %v4218_v25  ;;  %v4219_v25 = vld [vmem:[%s7904_s2 + $0x88] sm:$0xff]  }
 0x153   :  { %v2359_v53 = vadd.f32 %v2358_v16, %v2311_v20  ;;  %3995 = vmatprep.mubr.msk.bf16.mxu0 %vm4238_vm0, %v8244_v55  ;;  %4099 = vmatprep.mubr.msk.bf16.mxu1 %vm4238_vm0, %v8244_v55  ;;  %v4220_v31 = vld [vmem:[%s7905_s3 + $0x88] sm:$0xff]  }
 0x155   :  { %v5101_v30 = vpop.f32.mrb[60].mxu0  ;;  %v5103_v48 = vpop.f32.mrb[60].mxu1 }
 0x156   :  { %8251 = vst [vmem:[#allocation32_spill] sm:$0xff] %v5103_v48  ;;  %v1989_v5 = vadd.f32 %v1988_v61, %v5101_v30  ;;  %v2209_v6 = vmul.f32 %v5101_v30, %v5101_v30  ;;  %v2043_v11 = vadd.f32 %v2042_v39, %v5103_v48  ;;  %v2312_v20 = vmul.f32 %v5103_v48, %v5103_v48  ;;  %v3781_v46 = vpop.f32.mrb[61].mxu0  ;;  %v3885_v43 = vpop.f32.mrb[61].mxu1 }
 0x157   :  { %v5117_v16 = vpop.f32.mrb[62].mxu0  ;;  %v5119_v61 = vpop.f32.mrb[62].mxu1 }
 0x158   :  { %8252 = vst [vmem:[#allocation33_spill] sm:$0xff] %v5119_v61  ;;  %v2257_v0 = vadd.f32 %v2256_v10, %v2209_v6  ;;  %v2360_v4 = vadd.f32 %v2359_v53, %v2312_v20  ;;  %v1990_v39 = vadd.f32 %v1989_v5, %v5117_v16  ;;  %v2210_v42 = vmul.f32 %v5117_v16, %v5117_v16  ;;  %v3782_v46 = vpop.f32.mrb[63].mxu0  ;;  %v3886_v43 = vpop.f32.mrb[63].mxu1 }
 0x159   :  { %v2044_v48 = vadd.f32 %v2043_v11, %v5119_v61  ;;  %v2313_v41 = vmul.f32 %v5119_v61, %v5119_v61 }
 0x15a   :  { %v2258_v37 = vadd.f32 %v2257_v0, %v2210_v42  ;;  %3996 = vmatmul.mubr.msk.bf16.gmra.mrb[168].mxu0 %vm215_vm1, %v4219_v25  ;;  %4100 = vmatmul.mubr.msk.bf16.gmra.mrb[168].mxu1 %vm215_vm1, %v4220_v31  ;;  %v4221_v31 = vld [vmem:[%s7904_s2 + $0x90] sm:$0xff]  }
 0x15b   :  { %v2361_v19 = vadd.f32 %v2360_v4, %v2313_v41  ;;  %3999 = vmatprep.mubr.msk.bf16.mxu0 %vm4238_vm0, %v8244_v55  ;;  %4103 = vmatprep.mubr.msk.bf16.mxu1 %vm4238_vm0, %v8244_v55  ;;  %v4222_v0 = vld [vmem:[%s7905_s3 + $0x90] sm:$0xff]  }
 0x15d   :  { %v5133_v53 = vpop.f32.mrb[64].mxu0  ;;  %v5135_v10 = vpop.f32.mrb[64].mxu1 }
 0x15e   :  { %8253 = vst [vmem:[#allocation34_spill] sm:$0xff] %v5135_v10  ;;  %v1991_v5 = vadd.f32 %v1990_v39, %v5133_v53  ;;  %v2211_v6 = vmul.f32 %v5133_v53, %v5133_v53  ;;  %v2045_v11 = vadd.f32 %v2044_v48, %v5135_v10  ;;  %v2314_v41 = vmul.f32 %v5135_v10, %v5135_v10  ;;  %v3785_v20 = vpop.f32.mrb[65].mxu0  ;;  %v3889_v25 = vpop.f32.mrb[65].mxu1 }
 0x15f   :  { %v5149_v4 = vpop.f32.mrb[66].mxu0  ;;  %v5151_v39 = vpop.f32.mrb[66].mxu1 }
 0x160   :  { %8254 = vst [vmem:[#allocation35_spill] sm:$0xff] %v5151_v39  ;;  %v2259_v42 = vadd.f32 %v2258_v37, %v2211_v6  ;;  %v2362_v46 = vadd.f32 %v2361_v19, %v2314_v41  ;;  %v1992_v48 = vadd.f32 %v1991_v5, %v5149_v4  ;;  %v2212_v43 = vmul.f32 %v5149_v4, %v5149_v4  ;;  %v3786_v20 = vpop.f32.mrb[67].mxu0  ;;  %v3890_v25 = vpop.f32.mrb[67].mxu1 }
 0x161   :  { %v2046_v10 = vadd.f32 %v2045_v11, %v5151_v39  ;;  %v2315_v61 = vmul.f32 %v5151_v39, %v5151_v39 }
 0x162   :  { %v2260_v1 = vadd.f32 %v2259_v42, %v2212_v43  ;;  %4000 = vmatmul.mubr.msk.bf16.gmra.mrb[172].mxu0 %vm215_vm1, %v4221_v31  ;;  %4104 = vmatmul.mubr.msk.bf16.gmra.mrb[172].mxu1 %vm215_vm1, %v4222_v0  ;;  %v4223_v0 = vld [vmem:[%s7904_s2 + $0x98] sm:$0xff]  }
 0x163   :  { %v2363_v50 = vadd.f32 %v2362_v46, %v2315_v61  ;;  %4003 = vmatprep.mubr.msk.bf16.mxu0 %vm4238_vm0, %v8244_v55  ;;  %4107 = vmatprep.mubr.msk.bf16.mxu1 %vm4238_vm0, %v8244_v55  ;;  %v4224_v42 = vld [vmem:[%s7905_s3 + $0x98] sm:$0xff]  }
 0x165   :  { %v5165_v19 = vpop.f32.mrb[68].mxu0  ;;  %v5167_v37 = vpop.f32.mrb[68].mxu1 }
 0x166   :  { %8255 = vst [vmem:[#allocation36_spill] sm:$0xff] %v5167_v37  ;;  %v1993_v5 = vadd.f32 %v1992_v48, %v5165_v19  ;;  %v2213_v6 = vmul.f32 %v5165_v19, %v5165_v19  ;;  %v2047_v11 = vadd.f32 %v2046_v10, %v5167_v37  ;;  %v2316_v61 = vmul.f32 %v5167_v37, %v5167_v37  ;;  %v3789_v41 = vpop.f32.mrb[69].mxu0  ;;  %v3893_v31 = vpop.f32.mrb[69].mxu1 }
 0x167   :  { %v5181_v46 = vpop.f32.mrb[70].mxu0  ;;  %v5183_v48 = vpop.f32.mrb[70].mxu1 }
 0x168   :  { %8256 = vst [vmem:[#allocation37_spill] sm:$0xff] %v5181_v46  ;;  %8257 = vst [vmem:[#allocation38_spill] sm:$0xff] %v5183_v48  ;;  %v2261_v43 = vadd.f32 %v2260_v1, %v2213_v6  ;;  %v2364_v20 = vadd.f32 %v2363_v50, %v2316_v61  ;;  %v1994_v10 = vadd.f32 %v1993_v5, %v5181_v46  ;;  %v3790_v41 = vpop.f32.mrb[71].mxu0  ;;  %v3894_v31 = vpop.f32.mrb[71].mxu1 }
 0x169   :  { %v2214_v25 = vmul.f32 %v5181_v46, %v5181_v46  ;;  %v2048_v37 = vadd.f32 %v2047_v11, %v5183_v48  ;;  %v2317_v39 = vmul.f32 %v5183_v48, %v5183_v48 }
 0x16a   :  { %4004 = vmatmul.mubr.msk.bf16.gmra.mrb[176].mxu0 %vm215_vm1, %v4223_v0  ;;  %4108 = vmatmul.mubr.msk.bf16.gmra.mrb[176].mxu1 %vm215_vm1, %v4224_v42  ;;  %v4225_v42 = vld [vmem:[%s7904_s2 + $0xa0] sm:$0xff]  }
 0x16b   :  { %v2262_v36 = vadd.f32 %v2261_v43, %v2214_v25  ;;  %v2365_v24 = vadd.f32 %v2364_v20, %v2317_v39  ;;  %4007 = vmatprep.mubr.msk.bf16.mxu0 %vm4238_vm0, %v8244_v55  ;;  %4111 = vmatprep.mubr.msk.bf16.mxu1 %vm4238_vm0, %v8244_v55  ;;  %v4226_v43 = vld [vmem:[%s7905_s3 + $0xa0] sm:$0xff]  }
 0x16d   :  { %v5197_v50 = vpop.f32.mrb[72].mxu0  ;;  %v5199_v1 = vpop.f32.mrb[72].mxu1 }
 0x16e   :  { %8258 = vst [vmem:[#allocation39_spill] sm:$0xff] %v5197_v50  ;;  %8259 = vst [vmem:[#allocation40_spill] sm:$0xff] %v5199_v1  ;;  %v1995_v5 = vadd.f32 %v1994_v10, %v5197_v50  ;;  %v2215_v6 = vmul.f32 %v5197_v50, %v5197_v50  ;;  %v2049_v11 = vadd.f32 %v2048_v37, %v5199_v1  ;;  %v3793_v61 = vpop.f32.mrb[73].mxu0  ;;  %v3897_v0 = vpop.f32.mrb[73].mxu1 }
 0x16f   :  { %v2318_v39 = vmul.f32 %v5199_v1, %v5199_v1  ;;  %v5213_v20 = vpop.f32.mrb[74].mxu0  ;;  %v5215_v10 = vpop.f32.mrb[74].mxu1 }
 0x170   :  { %8260 = vst [vmem:[#allocation41_spill] sm:$0xff] %v5213_v20  ;;  %8261 = vst [vmem:[#allocation42_spill] sm:$0xff] %v5215_v10  ;;  %v2263_v25 = vadd.f32 %v2262_v36, %v2215_v6  ;;  %v1996_v37 = vadd.f32 %v1995_v5, %v5213_v20  ;;  %v2216_v31 = vmul.f32 %v5213_v20, %v5213_v20  ;;  %v3794_v61 = vpop.f32.mrb[75].mxu0  ;;  %v3898_v0 = vpop.f32.mrb[75].mxu1 }
 0x171   :  { %v2366_v41 = vadd.f32 %v2365_v24, %v2318_v39  ;;  %v2050_v1 = vadd.f32 %v2049_v11, %v5215_v10  ;;  %v2319_v48 = vmul.f32 %v5215_v10, %v5215_v10 }
 0x172   :  { %v2264_v8 = vadd.f32 %v2263_v25, %v2216_v31  ;;  %4008 = vmatmul.mubr.msk.bf16.gmra.mrb[180].mxu0 %vm215_vm1, %v4225_v42  ;;  %4112 = vmatmul.mubr.msk.bf16.gmra.mrb[180].mxu1 %vm215_vm1, %v4226_v43  ;;  %v4227_v43 = vld [vmem:[%s7904_s2 + $0xa8] sm:$0xff]  }
 0x173   :  { %v2367_v59 = vadd.f32 %v2366_v41, %v2319_v48  ;;  %4011 = vmatprep.mubr.msk.bf16.mxu0 %vm4238_vm0, %v8244_v55  ;;  %4115 = vmatprep.mubr.msk.bf16.mxu1 %vm4238_vm0, %v8244_v55  ;;  %v4228_v25 = vld [vmem:[%s7905_s3 + $0xa8] sm:$0xff]  }
 0x175   :  { %v5229_v24 = vpop.f32.mrb[76].mxu0  ;;  %v5231_v36 = vpop.f32.mrb[76].mxu1 }
 0x176   :  { %8262 = vst [vmem:[#allocation43_spill] sm:$0xff] %v5229_v24  ;;  %8263 = vst [vmem:[#allocation44_spill] sm:$0xff] %v5231_v36  ;;  %v1997_v5 = vadd.f32 %v1996_v37, %v5229_v24  ;;  %v2217_v6 = vmul.f32 %v5229_v24, %v5229_v24  ;;  %v2051_v11 = vadd.f32 %v2050_v1, %v5231_v36  ;;  %v3797_v39 = vpop.f32.mrb[77].mxu0  ;;  %v3901_v42 = vpop.f32.mrb[77].mxu1 }
 0x177   :  { %v2320_v48 = vmul.f32 %v5231_v36, %v5231_v36  ;;  %v5245_v41 = vpop.f32.mrb[78].mxu0  ;;  %v5247_v37 = vpop.f32.mrb[78].mxu1 }
 0x178   :  { %8264 = vst [vmem:[#allocation45_spill] sm:$0xff] %v5245_v41  ;;  %8265 = vst [vmem:[#allocation46_spill] sm:$0xff] %v5247_v37  ;;  %v2265_v31 = vadd.f32 %v2264_v8, %v2217_v6  ;;  %v1998_v1 = vadd.f32 %v1997_v5, %v5245_v41  ;;  %v2218_v0 = vmul.f32 %v5245_v41, %v5245_v41  ;;  %v3798_v39 = vpop.f32.mrb[79].mxu0  ;;  %v3902_v42 = vpop.f32.mrb[79].mxu1 }
 0x179   :  { %v2368_v61 = vadd.f32 %v2367_v59, %v2320_v48  ;;  %v2052_v36 = vadd.f32 %v2051_v11, %v5247_v37  ;;  %v2321_v10 = vmul.f32 %v5247_v37, %v5247_v37 }
 0x17a   :  { %v2266_v45 = vadd.f32 %v2265_v31, %v2218_v0  ;;  %4012 = vmatmul.mubr.msk.bf16.gmra.mrb[184].mxu0 %vm215_vm1, %v4227_v43  ;;  %4116 = vmatmul.mubr.msk.bf16.gmra.mrb[184].mxu1 %vm215_vm1, %v4228_v25  ;;  %v4229_v25 = vld [vmem:[%s7904_s2 + $0xb0] sm:$0xff]  }
 0x17b   :  { %v2369_v35 = vadd.f32 %v2368_v61, %v2321_v10  ;;  %4015 = vmatprep.mubr.msk.bf16.mxu0 %vm4238_vm0, %v8244_v55  ;;  %4119 = vmatprep.mubr.msk.bf16.mxu1 %vm4238_vm0, %v8244_v55  ;;  %v4230_v31 = vld [vmem:[%s7905_s3 + $0xb0] sm:$0xff]  }
 0x17d   :  { %v5261_v59 = vpop.f32.mrb[80].mxu0  ;;  %v5263_v8 = vpop.f32.mrb[80].mxu1 }
 0x17e   :  { %8266 = vst [vmem:[#allocation47_spill] sm:$0xff] %v5261_v59  ;;  %8267 = vst [vmem:[#allocation48_spill] sm:$0xff] %v5263_v8  ;;  %v1999_v5 = vadd.f32 %v1998_v1, %v5261_v59  ;;  %v2219_v6 = vmul.f32 %v5261_v59, %v5261_v59  ;;  %v2053_v11 = vadd.f32 %v2052_v36, %v5263_v8  ;;  %v3801_v48 = vpop.f32.mrb[81].mxu0  ;;  %v3905_v43 = vpop.f32.mrb[81].mxu1 }
 0x17f   :  { %v2322_v10 = vmul.f32 %v5263_v8, %v5263_v8  ;;  %v5277_v61 = vpop.f32.mrb[82].mxu0  ;;  %v5279_v1 = vpop.f32.mrb[82].mxu1 }
 0x180   :  { %8268 = vst [vmem:[#allocation49_spill] sm:$0xff] %v5277_v61  ;;  %8269 = vst [vmem:[#allocation50_spill] sm:$0xff] %v5279_v1  ;;  %v2267_v0 = vadd.f32 %v2266_v45, %v2219_v6  ;;  %v2000_v36 = vadd.f32 %v1999_v5, %v5277_v61  ;;  %v2220_v42 = vmul.f32 %v5277_v61, %v5277_v61  ;;  %v3802_v48 = vpop.f32.mrb[83].mxu0  ;;  %v3906_v43 = vpop.f32.mrb[83].mxu1 }
 0x181   :  { %v2370_v39 = vadd.f32 %v2369_v35, %v2322_v10  ;;  %v2054_v8 = vadd.f32 %v2053_v11, %v5279_v1  ;;  %v2323_v37 = vmul.f32 %v5279_v1, %v5279_v1 }
 0x182   :  { %v2268_v23 = vadd.f32 %v2267_v0, %v2220_v42  ;;  %4016 = vmatmul.mubr.msk.bf16.gmra.mrb[188].mxu0 %vm215_vm1, %v4229_v25  ;;  %4120 = vmatmul.mubr.msk.bf16.gmra.mrb[188].mxu1 %vm215_vm1, %v4230_v31  ;;  %v4231_v31 = vld [vmem:[%s7904_s2 + $0xb8] sm:$0xff]  }
 0x183   :  { %v2371_v13 = vadd.f32 %v2370_v39, %v2323_v37  ;;  %4019 = vmatprep.mubr.msk.bf16.mxu0 %vm4238_vm0, %v8244_v55  ;;  %4123 = vmatprep.mubr.msk.bf16.mxu1 %vm4238_vm0, %v8244_v55  ;;  %v4232_v0 = vld [vmem:[%s7905_s3 + $0xb8] sm:$0xff]  }
 0x185   :  { %v5293_v35 = vpop.f32.mrb[84].mxu0  ;;  %v5295_v45 = vpop.f32.mrb[84].mxu1 }
 0x186   :  { %8270 = vst [vmem:[#allocation51_spill] sm:$0xff] %v5293_v35  ;;  %8271 = vst [vmem:[#allocation52_spill] sm:$0xff] %v5295_v45  ;;  %v2001_v5 = vadd.f32 %v2000_v36, %v5293_v35  ;;  %v2221_v6 = vmul.f32 %v5293_v35, %v5293_v35  ;;  %v2055_v11 = vadd.f32 %v2054_v8, %v5295_v45  ;;  %v3805_v10 = vpop.f32.mrb[85].mxu0  ;;  %v3909_v25 = vpop.f32.mrb[85].mxu1 }
 0x187   :  { %v2324_v37 = vmul.f32 %v5295_v45, %v5295_v45  ;;  %v5309_v39 = vpop.f32.mrb[86].mxu0  ;;  %v5311_v36 = vpop.f32.mrb[86].mxu1 }
 0x188   :  { %8272 = vst [vmem:[#allocation53_spill] sm:$0xff] %v5309_v39  ;;  %8273 = vst [vmem:[#allocation54_spill] sm:$0xff] %v5311_v36  ;;  %v2269_v42 = vadd.f32 %v2268_v23, %v2221_v6  ;;  %v2002_v8 = vadd.f32 %v2001_v5, %v5309_v39  ;;  %v2222_v43 = vmul.f32 %v5309_v39, %v5309_v39  ;;  %v3806_v10 = vpop.f32.mrb[87].mxu0  ;;  %v3910_v25 = vpop.f32.mrb[87].mxu1 }
 0x189   :  { %v2372_v48 = vadd.f32 %v2371_v13, %v2324_v37  ;;  %v2056_v45 = vadd.f32 %v2055_v11, %v5311_v36  ;;  %v2325_v1 = vmul.f32 %v5311_v36, %v5311_v36 }
 0x18a   :  { %v2270_v3 = vadd.f32 %v2269_v42, %v2222_v43  ;;  %4020 = vmatmul.mubr.msk.bf16.gmra.mrb[192].mxu0 %vm215_vm1, %v4231_v31  ;;  %4124 = vmatmul.mubr.msk.bf16.gmra.mrb[192].mxu1 %vm215_vm1, %v4232_v0  ;;  %v4234_v0 = vld [vmem:[%s7905_s3 + $0xc0] ss:$0 sps:$4 sm:$0xff]  }
 0x18b   :  { %v2373_v58 = vadd.f32 %v2372_v48, %v2325_v1  ;;  %4023 = vmatprep.mubr.msk.bf16.mxu0 %vm4238_vm0, %v8244_v55  ;;  %4127 = vmatprep.mubr.msk.bf16.mxu1 %vm4238_vm0, %v8244_v55  ;;  %v4233_v55 = vld [vmem:[%s7904_s2 + $0xc0] ss:$0 sps:$4 sm:$0xff]  }
 0x18d   :  { %v5325_v13 = vpop.f32.mrb[88].mxu0  ;;  %v5327_v23 = vpop.f32.mrb[88].mxu1 }
 0x18e   :  { %8274 = vst [vmem:[#allocation55_spill] sm:$0xff] %v5325_v13  ;;  %8275 = vst [vmem:[#allocation56_spill] sm:$0xff] %v5327_v23  ;;  %v2003_v5 = vadd.f32 %v2002_v8, %v5325_v13  ;;  %v2223_v6 = vmul.f32 %v5325_v13, %v5325_v13  ;;  %v2057_v11 = vadd.f32 %v2056_v45, %v5327_v23  ;;  %v3809_v37 = vpop.f32.mrb[89].mxu0  ;;  %v3913_v31 = vpop.f32.mrb[89].mxu1 }
 0x18f   :  { %v2326_v1 = vmul.f32 %v5327_v23, %v5327_v23  ;;  %v5341_v42 = vpop.f32.mrb[90].mxu0  ;;  %v5343_v48 = vpop.f32.mrb[90].mxu1 }
 0x190   :  { %8276 = vst [vmem:[#allocation57_spill] sm:$0xff] %v5341_v42  ;;  %8277 = vst [vmem:[#allocation58_spill] sm:$0xff] %v5343_v48  ;;  %v2271_v8 = vadd.f32 %v2270_v3, %v2223_v6  ;;  %v2004_v45 = vadd.f32 %v2003_v5, %v5341_v42  ;;  %v2224_v10 = vmul.f32 %v5341_v42, %v5341_v42  ;;  %v3810_v25 = vpop.f32.mrb[91].mxu0  ;;  %v3914_v37 = vpop.f32.mrb[91].mxu1 }
 0x191   :  { %v2374_v43 = vadd.f32 %v2373_v58, %v2326_v1  ;;  %v2058_v31 = vadd.f32 %v2057_v11, %v5343_v48  ;;  %v2327_v23 = vmul.f32 %v5343_v48, %v5343_v48 }
 0x192   :  { %v2272_v36 = vadd.f32 %v2271_v8, %v2224_v10  ;;  %4024 = vmatmul.mubr.msk.bf16.gmra.mrb[196].mxu0 %vm215_vm1, %v4233_v55  ;;  %4128 = vmatmul.mubr.msk.bf16.gmra.mrb[196].mxu1 %vm215_vm1, %v4234_v0 }
 0x193   :  { %v2375_v13 = vadd.f32 %v2374_v43, %v2327_v23 }
 0x195   :  { %v5353_v3 = vpop.f32.mrb[92].mxu0  ;;  %v5355_v58 = vpop.f32.mrb[92].mxu1 }
 0x196   :  { %8278 = vst [vmem:[#allocation59_spill] sm:$0xff] %v5353_v3  ;;  %8279 = vst [vmem:[#allocation60_spill] sm:$0xff] %v5355_v58  ;;  %v2005_v5 = vadd.f32 %v2004_v45, %v5353_v3  ;;  %v2225_v6 = vmul.f32 %v5353_v3, %v5353_v3  ;;  %v2059_v11 = vadd.f32 %v2058_v31, %v5355_v58  ;;  %v3813_v8 = vpop.f32.mrb[93].mxu0  ;;  %v3917_v10 = vpop.f32.mrb[93].mxu1 }
 0x197   :  { %v2328_v1 = vmul.f32 %v5355_v58, %v5355_v58  ;;  %v5363_v55 = vpop.f32.mrb[94].mxu0  ;;  %v5365_v0 = vpop.f32.mrb[94].mxu1 }
 0x198   :  { %8280 = vst [vmem:[#allocation61_spill] sm:$0xff] %v5363_v55  ;;  %8281 = vst [vmem:[#allocation62_spill] sm:$0xff] %v5365_v0  ;;  %v2273_v23 = vadd.f32 %v2272_v36, %v2225_v6  ;;  %v2006_v25 = vadd.f32 %v2005_v5, %v5363_v55  ;;  %v2226_v45 = vmul.f32 %v5363_v55, %v5363_v55  ;;  %v3814_v37 = vpop.f32.mrb[95].mxu0  ;;  %v3918_v48 = vpop.f32.mrb[95].mxu1 }
 0x199   :  { %v2376_v43 = vadd.f32 %v2375_v13, %v2328_v1  ;;  %v2060_v31 = vadd.f32 %v2059_v11, %v5365_v0  ;;  %v2329_v58 = vmul.f32 %v5365_v0, %v5365_v0 }
 0x19a   :  { %v2274_v8 = vadd.f32 %v2273_v23, %v2226_v45 }
 0x19b   :  { %v2377_v10 = vadd.f32 %v2376_v43, %v2329_v58 }
 0x19d   :  { %v5373_v3 = vpop.f32.mrb[96].mxu0  ;;  %v5375_v42 = vpop.f32.mrb[96].mxu1 }
 0x19e   :  { %8282 = vst [vmem:[#allocation63_spill] sm:$0xff] %v5373_v3  ;;  %8283 = vst [vmem:[#allocation64_spill] sm:$0xff] %v5375_v42  ;;  %v2007_v36 = vadd.f32 %v2006_v25, %v5373_v3  ;;  %v2227_v13 = vmul.f32 %v5373_v3, %v5373_v3  ;;  %v2061_v5 = vadd.f32 %v2060_v31, %v5375_v42  ;;  %v3817_v6 = vpop.f32.mrb[97].mxu0  ;;  %v3921_v11 = vpop.f32.mrb[97].mxu1 }
 0x19f   :  { %v2330_v48 = vmul.f32 %v5375_v42, %v5375_v42  ;;  %v520_v1 = vpop.f32.mrb[98].mxu0  ;;  %v999_v37 = vpop.f32.mrb[98].mxu1 }
 0x1a0   :  { %v2008_v23 = vrot.slane %v2007_v36, 4  ;;  %v2275_v58 = vadd.f32 %v2274_v8, %v2227_v13  ;;  %v2062_v43 = vrot.slane %v2061_v5, 4  ;;  %v3818_v0 = vpop.f32.mrb[99].mxu0  ;;  %v3922_v55 = vpop.f32.mrb[99].mxu1 }
 0x1a1   :  { %v2378_v45 = vadd.f32 %v2377_v10, %v2330_v48 }
 0x1a2   :  { %v2009_v39 = vadd.f32 %v2008_v23, %v2007_v36  ;;  %v2276_v25 = vrot.slane %v2275_v58, 4  ;;  %v2063_v35 = vadd.f32 %v2062_v43, %v2061_v5 }
 0x1a3   :  { %v2379_v61 = vrot.slane %v2378_v45, 4 }
 0x1a4   :  { %v2010_v3 = vrot.slane %v2009_v39, 2  ;;  %v2277_v59 = vadd.f32 %v2276_v25, %v2275_v58  ;;  %v2064_v31 = vrot.slane %v2063_v35, 2 }
 0x1a5   :  { %v2380_v41 = vadd.f32 %v2379_v61, %v2378_v45  ;;  %v5383_v24 = vpop.f32.mrb[100].mxu0  ;;  %v5385_v6 = vpop.f32.mrb[100].mxu1 }
 0x1a6   :  { %8284 = vst [vmem:[#allocation65_spill] sm:$0xff] %v5383_v24  ;;  %8285 = vst [vmem:[#allocation66_spill] sm:$0xff] %v5385_v6  ;;  %v2011_v11 = vadd.f32 %v2010_v3, %v2009_v39  ;;  %v2278_v1 = vrot.slane %v2277_v59, 2  ;;  %v2065_v37 = vadd.f32 %v2064_v31, %v2063_v35  ;;  %v3929_v13 = vpop.f32.mrb[101].mxu0  ;;  %v4033_v10 = vpop.f32.mrb[101].mxu1  ;;  %v2386_v55 = vmul.f32 %v5383_v24, %v5383_v24 }
 0x1a7   :  { %v2381_v8 = vrot.slane %v2380_v41, 2  ;;  %v2490_v0 = vmul.f32 %v5385_v6, %v5385_v6  ;;  %v5391_v36 = vpop.f32.mrb[102].mxu0  ;;  %v5393_v5 = vpop.f32.mrb[102].mxu1 }
 0x1a8   :  { %8286 = vst [vmem:[#allocation67_spill] sm:$0xff] %v5391_v36  ;;  %8287 = vst [vmem:[#allocation68_spill] sm:$0xff] %v5393_v5  ;;  %v2012_v61 = vrot.slane %v2011_v11, 1  ;;  %v2279_v48 = vadd.f32 %v2278_v1, %v2277_v59  ;;  %v2066_v23 = vrot.slane %v2065_v37, 1  ;;  %v3930_v39 = vpop.f32.mrb[103].mxu0  ;;  %v4034_v3 = vpop.f32.mrb[103].mxu1  ;;  %v2069_v35 = vadd.f32 %v5391_v36, %v5383_v24 }
 0x1a9   :  { %v2382_v58 = vadd.f32 %v2381_v8, %v2380_v41  ;;  %v2387_v43 = vmul.f32 %v5391_v36, %v5391_v36  ;;  %v2124_v45 = vadd.f32 %v5393_v5, %v5385_v6  ;;  %v2491_v25 = vmul.f32 %v5393_v5, %v5393_v5 }
 0x1aa   :  { %v2013_v31 = vadd.f32 %v2012_v61, %v2011_v11  ;;  %v2280_v13 = vrot.slane %v2279_v48, 1  ;;  %v2067_v10 = vadd.f32 %v2066_v23, %v2065_v37 }
 0x1ab   :  { %v2383_v59 = vrot.slane %v2382_v58, 1  ;;  %v2435_v1 = vadd.f32 %v2387_v43, %v2386_v55  ;;  %v2539_v41 = vadd.f32 %v2491_v25, %v2490_v0 }
 0x1ac   :  { %v2281_v8 = vadd.f32 %v2280_v13, %v2279_v48  ;;  %v5403_v39 = vadd.f32 %v2067_v10, %v2013_v31 }
 0x1ad   :  { %v2384_v3 = vadd.f32 %v2383_v59, %v2382_v58  ;;  %v5405_v24 = vpop.f32.mrb[104].mxu0  ;;  %v5407_v42 = vpop.f32.mrb[104].mxu1 }
 0x1ae   :  { %8288 = vst [vmem:[#allocation69_spill] sm:$0xff] %v5405_v24  ;;  %8289 = vst [vmem:[#allocation70_spill] sm:$0xff] %v5407_v42  ;;  %v2070_v6 = vadd.f32 %v2069_v35, %v5405_v24  ;;  %v2388_v11 = vmul.f32 %v5405_v24, %v5405_v24  ;;  %v2125_v37 = vadd.f32 %v2124_v45, %v5407_v42  ;;  %v3933_v61 = vpop.f32.mrb[105].mxu0  ;;  %v4037_v55 = vpop.f32.mrb[105].mxu1 }
 0x1af   :  { %v5409_v36 = vadd.f32 %v2384_v3, %v2281_v8  ;;  %v2492_v0 = vmul.f32 %v5407_v42, %v5407_v42  ;;  %v5417_v48 = vpop.f32.mrb[106].mxu0  ;;  %v5419_v23 = vpop.f32.mrb[106].mxu1 }
 0x1b0   :  { %8290 = vst [vmem:[#allocation71_spill] sm:$0xff] %v5417_v48  ;;  %8291 = vst [vmem:[#allocation72_spill] sm:$0xff] %v5419_v23  ;;  %v2436_v58 = vadd.f32 %v2435_v1, %v2388_v11  ;;  %v2071_v43 = vadd.f32 %v2070_v6, %v5417_v48  ;;  %v2389_v35 = vmul.f32 %v5417_v48, %v5417_v48  ;;  %v3934_v31 = vpop.f32.mrb[107].mxu0  ;;  %v4038_v13 = vpop.f32.mrb[107].mxu1 }
 0x1b1   :  { %v2126_v25 = vadd.f32 %v2125_v37, %v5419_v23  ;;  %v2540_v45 = vadd.f32 %v2539_v41, %v2492_v0  ;;  %v2493_v10 = vmul.f32 %v5419_v23, %v5419_v23 }
 0x1b2   :  { %v2437_v59 = vadd.f32 %v2436_v58, %v2389_v35 }
 0x1b3   :  { %v2541_v8 = vadd.f32 %v2540_v45, %v2493_v10 }
 0x1b5   :  { %v5427_v3 = vpop.f32.mrb[108].mxu0  ;;  %v5429_v61 = vpop.f32.mrb[108].mxu1 }
 0x1b6   :  { %8292 = vst [vmem:[#allocation73_spill] sm:$0xff] %v5427_v3  ;;  %8293 = vst [vmem:[#allocation74_spill] sm:$0xff] %v5429_v61  ;;  %v2072_v1 = vadd.f32 %v2071_v43, %v5427_v3  ;;  %v2390_v6 = vmul.f32 %v5427_v3, %v5427_v3  ;;  %v2127_v11 = vadd.f32 %v2126_v25, %v5429_v61  ;;  %v3937_v41 = vpop.f32.mrb[109].mxu0  ;;  %v4041_v55 = vpop.f32.mrb[109].mxu1 }
 0x1b7   :  { %v2494_v37 = vmul.f32 %v5429_v61, %v5429_v61  ;;  %v5437_v0 = vpop.f32.mrb[110].mxu0  ;;  %v5439_v58 = vpop.f32.mrb[110].mxu1 }
 0x1b8   :  { %8294 = vst [vmem:[#allocation75_spill] sm:$0xff] %v5437_v0  ;;  %8295 = vst [vmem:[#allocation76_spill] sm:$0xff] %v5439_v58  ;;  %v2438_v35 = vadd.f32 %v2437_v59, %v2390_v6  ;;  %v2073_v13 = vadd.f32 %v2072_v1, %v5437_v0  ;;  %v2391_v43 = vmul.f32 %v5437_v0, %v5437_v0  ;;  %v3938_v45 = vpop.f32.mrb[111].mxu0  ;;  %v4042_v10 = vpop.f32.mrb[111].mxu1 }
 0x1b9   :  { %v2542_v31 = vadd.f32 %v2541_v8, %v2494_v37  ;;  %v2128_v25 = vadd.f32 %v2127_v11, %v5439_v58  ;;  %v2495_v61 = vmul.f32 %v5439_v58, %v5439_v58 }
 0x1ba   :  { %v2439_v41 = vadd.f32 %v2438_v35, %v2391_v43 }
 0x1bb   :  { %v2543_v55 = vadd.f32 %v2542_v31, %v2495_v61 }
 0x1bd   :  { %v5447_v23 = vpop.f32.mrb[112].mxu0  ;;  %v5449_v42 = vpop.f32.mrb[112].mxu1 }
 0x1be   :  { %8296 = vst [vmem:[#allocation77_spill] sm:$0xff] %v5447_v23  ;;  %8297 = vst [vmem:[#allocation78_spill] sm:$0xff] %v5449_v42  ;;  %v2074_v59 = vadd.f32 %v2073_v13, %v5447_v23  ;;  %v2392_v8 = vmul.f32 %v5447_v23, %v5447_v23  ;;  %v2129_v1 = vadd.f32 %v2128_v25, %v5449_v42  ;;  %v3941_v11 = vpop.f32.mrb[113].mxu0  ;;  %v4045_v37 = vpop.f32.mrb[113].mxu1 }
 0x1bf   :  { %v2496_v6 = vmul.f32 %v5449_v42, %v5449_v42  ;;  %v5457_v45 = vpop.f32.mrb[114].mxu0  ;;  %v5459_v35 = vpop.f32.mrb[114].mxu1 }
 0x1c0   :  { %8298 = vst [vmem:[#allocation79_spill] sm:$0xff] %v5457_v45  ;;  %8299 = vst [vmem:[#allocation80_spill] sm:$0xff] %v5459_v35  ;;  %v2440_v61 = vadd.f32 %v2439_v41, %v2392_v8  ;;  %v2075_v43 = vadd.f32 %v2074_v59, %v5457_v45  ;;  %v2393_v13 = vmul.f32 %v5457_v45, %v5457_v45  ;;  %v3942_v10 = vpop.f32.mrb[115].mxu0  ;;  %v4046_v58 = vpop.f32.mrb[115].mxu1 }
 0x1c1   :  { %v2544_v31 = vadd.f32 %v2543_v55, %v2496_v6  ;;  %v2130_v25 = vadd.f32 %v2129_v1, %v5459_v35  ;;  %v2497_v42 = vmul.f32 %v5459_v35, %v5459_v35 }
 0x1c2   :  { %v2441_v11 = vadd.f32 %v2440_v61, %v2393_v13 }
 0x1c3   :  { %v2545_v37 = vadd.f32 %v2544_v31, %v2497_v42 }
 0x1c5   :  { %v5467_v5 = vpop.f32.mrb[116].mxu0  ;;  %v5469_v23 = vpop.f32.mrb[116].mxu1 }
 0x1c6   :  { %8300 = vst [vmem:[#allocation81_spill] sm:$0xff] %v5467_v5  ;;  %8301 = vst [vmem:[#allocation82_spill] sm:$0xff] %v5469_v23  ;;  %v2076_v41 = vadd.f32 %v2075_v43, %v5467_v5  ;;  %v2394_v55 = vmul.f32 %v5467_v5, %v5467_v5  ;;  %v2131_v59 = vadd.f32 %v2130_v25, %v5469_v23  ;;  %v3945_v8 = vpop.f32.mrb[117].mxu0  ;;  %v4049_v1 = vpop.f32.mrb[117].mxu1 }
 0x1c7   :  { %v2498_v58 = vmul.f32 %v5469_v23, %v5469_v23  ;;  %v5477_v6 = vpop.f32.mrb[118].mxu0  ;;  %v5479_v61 = vpop.f32.mrb[118].mxu1 }
 0x1c8   :  { %8302 = vst [vmem:[#allocation83_spill] sm:$0xff] %v5477_v6  ;;  %8303 = vst [vmem:[#allocation84_spill] sm:$0xff] %v5479_v61  ;;  %v2442_v42 = vadd.f32 %v2441_v11, %v2394_v55  ;;  %v2077_v13 = vadd.f32 %v2076_v41, %v5477_v6  ;;  %v2395_v43 = vmul.f32 %v5477_v6, %v5477_v6  ;;  %v3946_v10 = vpop.f32.mrb[119].mxu0  ;;  %v4050_v35 = vpop.f32.mrb[119].mxu1 }
 0x1c9   :  { %v2546_v31 = vadd.f32 %v2545_v37, %v2498_v58  ;;  %v2132_v25 = vadd.f32 %v2131_v59, %v5479_v61  ;;  %v2499_v23 = vmul.f32 %v5479_v61, %v5479_v61 }
 0x1ca   :  { %v2443_v8 = vadd.f32 %v2442_v42, %v2395_v43 }
 0x1cb   :  { %v2547_v1 = vadd.f32 %v2546_v31, %v2499_v23 }
 0x1cd   :  { %v5487_v5 = vpop.f32.mrb[120].mxu0  ;;  %v5489_v45 = vpop.f32.mrb[120].mxu1 }
 0x1ce   :  { %8304 = vst [vmem:[#allocation85_spill] sm:$0xff] %v5487_v5  ;;  %8305 = vst [vmem:[#allocation86_spill] sm:$0xff] %v5489_v45  ;;  %v2078_v11 = vadd.f32 %v2077_v13, %v5487_v5  ;;  %v2396_v37 = vmul.f32 %v5487_v5, %v5487_v5  ;;  %v2133_v41 = vadd.f32 %v2132_v25, %v5489_v45  ;;  %v3949_v55 = vpop.f32.mrb[121].mxu0  ;;  %v4053_v59 = vpop.f32.mrb[121].mxu1 }
 0x1cf   :  { %v2500_v35 = vmul.f32 %v5489_v45, %v5489_v45  ;;  %v5497_v58 = vpop.f32.mrb[122].mxu0  ;;  %v5499_v42 = vpop.f32.mrb[122].mxu1 }
 0x1d0   :  { %8306 = vst [vmem:[#allocation87_spill] sm:$0xff] %v5497_v58  ;;  %8307 = vst [vmem:[#allocation88_spill] sm:$0xff] %v5499_v42  ;;  %v2444_v23 = vadd.f32 %v2443_v8, %v2396_v37  ;;  %v2079_v43 = vadd.f32 %v2078_v11, %v5497_v58  ;;  %v2397_v13 = vmul.f32 %v5497_v58, %v5497_v58  ;;  %v3950_v10 = vpop.f32.mrb[123].mxu0  ;;  %v4054_v61 = vpop.f32.mrb[123].mxu1 }
 0x1d1   :  { %v2548_v31 = vadd.f32 %v2547_v1, %v2500_v35  ;;  %v2134_v25 = vadd.f32 %v2133_v41, %v5499_v42  ;;  %v2501_v45 = vmul.f32 %v5499_v42, %v5499_v42 }
 0x1d2   :  { %v2445_v55 = vadd.f32 %v2444_v23, %v2397_v13 }
 0x1d3   :  { %v2549_v59 = vadd.f32 %v2548_v31, %v2501_v45 }
 0x1d5   :  { %v5507_v5 = vpop.f32.mrb[124].mxu0  ;;  %v5509_v6 = vpop.f32.mrb[124].mxu1 }
 0x1d6   :  { %8308 = vst [vmem:[#allocation89_spill] sm:$0xff] %v5507_v5  ;;  %8309 = vst [vmem:[#allocation90_spill] sm:$0xff] %v5509_v6  ;;  %v2080_v8 = vadd.f32 %v2079_v43, %v5507_v5  ;;  %v2398_v1 = vmul.f32 %v5507_v5, %v5507_v5  ;;  %v2135_v11 = vadd.f32 %v2134_v25, %v5509_v6  ;;  %v3953_v37 = vpop.f32.mrb[125].mxu0  ;;  %v4057_v41 = vpop.f32.mrb[125].mxu1 }
 0x1d7   :  { %v2502_v61 = vmul.f32 %v5509_v6, %v5509_v6  ;;  %v5517_v35 = vpop.f32.mrb[126].mxu0  ;;  %v5519_v23 = vpop.f32.mrb[126].mxu1 }
 0x1d8   :  { %8310 = vst [vmem:[#allocation91_spill] sm:$0xff] %v5517_v35  ;;  %8311 = vst [vmem:[#allocation92_spill] sm:$0xff] %v5519_v23  ;;  %v2446_v45 = vadd.f32 %v2445_v55, %v2398_v1  ;;  %v2081_v13 = vadd.f32 %v2080_v8, %v5517_v35  ;;  %v2399_v43 = vmul.f32 %v5517_v35, %v5517_v35  ;;  %v3954_v10 = vpop.f32.mrb[127].mxu0  ;;  %v4058_v42 = vpop.f32.mrb[127].mxu1 }
 0x1d9   :  { %v2550_v31 = vadd.f32 %v2549_v59, %v2502_v61  ;;  %v2136_v25 = vadd.f32 %v2135_v11, %v5519_v23  ;;  %v2503_v6 = vmul.f32 %v5519_v23, %v5519_v23 }
 0x1da   :  { %v2447_v37 = vadd.f32 %v2446_v45, %v2399_v43 }
 0x1db   :  { %v2551_v41 = vadd.f32 %v2550_v31, %v2503_v6 }
 0x1dd   :  { %v5527_v5 = vpop.f32.mrb[128].mxu0  ;;  %v5529_v58 = vpop.f32.mrb[128].mxu1 }
 0x1de   :  { %8312 = vst [vmem:[#allocation93_spill] sm:$0xff] %v5527_v5  ;;  %8313 = vst [vmem:[#allocation94_spill] sm:$0xff] %v5529_v58  ;;  %v2082_v55 = vadd.f32 %v2081_v13, %v5527_v5  ;;  %v2400_v59 = vmul.f32 %v5527_v5, %v5527_v5  ;;  %v2137_v8 = vadd.f32 %v2136_v25, %v5529_v58  ;;  %v3957_v1 = vpop.f32.mrb[129].mxu0  ;;  %v4061_v11 = vpop.f32.mrb[129].mxu1 }
 0x1df   :  { %v2504_v42 = vmul.f32 %v5529_v58, %v5529_v58  ;;  %v5537_v61 = vpop.f32.mrb[130].mxu0  ;;  %v5539_v45 = vpop.f32.mrb[130].mxu1 }
 0x1e0   :  { %8314 = vst [vmem:[#allocation95_spill] sm:$0xff] %v5537_v61  ;;  %8315 = vst [vmem:[#allocation96_spill] sm:$0xff] %v5539_v45  ;;  %v2448_v6 = vadd.f32 %v2447_v37, %v2400_v59  ;;  %v2083_v43 = vadd.f32 %v2082_v55, %v5537_v61  ;;  %v2401_v13 = vmul.f32 %v5537_v61, %v5537_v61  ;;  %v3958_v10 = vpop.f32.mrb[131].mxu0  ;;  %v4062_v23 = vpop.f32.mrb[131].mxu1 }
 0x1e1   :  { %v2552_v31 = vadd.f32 %v2551_v41, %v2504_v42  ;;  %v2138_v25 = vadd.f32 %v2137_v8, %v5539_v45  ;;  %v2505_v58 = vmul.f32 %v5539_v45, %v5539_v45 }
 0x1e2   :  { %v2449_v1 = vadd.f32 %v2448_v6, %v2401_v13 }
 0x1e3   :  { %v2553_v11 = vadd.f32 %v2552_v31, %v2505_v58 }
 0x1e5   :  { %v5547_v5 = vpop.f32.mrb[132].mxu0  ;;  %v5549_v35 = vpop.f32.mrb[132].mxu1 }
 0x1e6   :  { %8316 = vst [vmem:[#allocation97_spill] sm:$0xff] %v5547_v5  ;;  %8317 = vst [vmem:[#allocation98_spill] sm:$0xff] %v5549_v35  ;;  %v2084_v37 = vadd.f32 %v2083_v43, %v5547_v5  ;;  %v2402_v41 = vmul.f32 %v5547_v5, %v5547_v5  ;;  %v2139_v55 = vadd.f32 %v2138_v25, %v5549_v35  ;;  %v3961_v59 = vpop.f32.mrb[133].mxu0  ;;  %v4065_v8 = vpop.f32.mrb[133].mxu1 }
 0x1e7   :  { %v2506_v23 = vmul.f32 %v5549_v35, %v5549_v35  ;;  %v5557_v42 = vpop.f32.mrb[134].mxu0  ;;  %v5559_v6 = vpop.f32.mrb[134].mxu1 }
 0x1e8   :  { %8318 = vst [vmem:[#allocation99_spill] sm:$0xff] %v5557_v42  ;;  %8319 = vst [vmem:[#allocation100_spill] sm:$0xff] %v5559_v6  ;;  %v2450_v58 = vadd.f32 %v2449_v1, %v2402_v41  ;;  %v2085_v13 = vadd.f32 %v2084_v37, %v5557_v42  ;;  %v2403_v43 = vmul.f32 %v5557_v42, %v5557_v42  ;;  %v3962_v10 = vpop.f32.mrb[135].mxu0  ;;  %v4066_v45 = vpop.f32.mrb[135].mxu1 }
 0x1e9   :  { %v2554_v31 = vadd.f32 %v2553_v11, %v2506_v23  ;;  %v2140_v25 = vadd.f32 %v2139_v55, %v5559_v6  ;;  %v2507_v35 = vmul.f32 %v5559_v6, %v5559_v6 }
 0x1ea   :  { %v2451_v59 = vadd.f32 %v2450_v58, %v2403_v43 }
 0x1eb   :  { %v2555_v8 = vadd.f32 %v2554_v31, %v2507_v35 }
 0x1ed   :  { %v5567_v5 = vpop.f32.mrb[136].mxu0  ;;  %v5569_v61 = vpop.f32.mrb[136].mxu1 }
 0x1ee   :  { %8320 = vst [vmem:[#allocation101_spill] sm:$0xff] %v5567_v5  ;;  %8321 = vst [vmem:[#allocation102_spill] sm:$0xff] %v5569_v61  ;;  %v2086_v1 = vadd.f32 %v2085_v13, %v5567_v5  ;;  %v2404_v11 = vmul.f32 %v5567_v5, %v5567_v5  ;;  %v2141_v37 = vadd.f32 %v2140_v25, %v5569_v61  ;;  %v3965_v41 = vpop.f32.mrb[137].mxu0  ;;  %v4069_v55 = vpop.f32.mrb[137].mxu1 }
 0x1ef   :  { %v2508_v45 = vmul.f32 %v5569_v61, %v5569_v61  ;;  %v5577_v23 = vpop.f32.mrb[138].mxu0  ;;  %v5579_v58 = vpop.f32.mrb[138].mxu1 }
 0x1f0   :  { %8322 = vst [vmem:[#allocation103_spill] sm:$0xff] %v5577_v23  ;;  %8323 = vst [vmem:[#allocation104_spill] sm:$0xff] %v5579_v58  ;;  %v2452_v35 = vadd.f32 %v2451_v59, %v2404_v11  ;;  %v2087_v43 = vadd.f32 %v2086_v1, %v5577_v23  ;;  %v2405_v13 = vmul.f32 %v5577_v23, %v5577_v23  ;;  %v3966_v10 = vpop.f32.mrb[139].mxu0  ;;  %v4070_v6 = vpop.f32.mrb[139].mxu1 }
 0x1f1   :  { %v2556_v31 = vadd.f32 %v2555_v8, %v2508_v45  ;;  %v2142_v25 = vadd.f32 %v2141_v37, %v5579_v58  ;;  %v2509_v61 = vmul.f32 %v5579_v58, %v5579_v58 }
 0x1f2   :  { %v2453_v41 = vadd.f32 %v2452_v35, %v2405_v13 }
 0x1f3   :  { %v2557_v55 = vadd.f32 %v2556_v31, %v2509_v61 }
 0x1f5   :  { %v5587_v5 = vpop.f32.mrb[140].mxu0  ;;  %v5589_v42 = vpop.f32.mrb[140].mxu1 }
 0x1f6   :  { %8324 = vst [vmem:[#allocation105_spill] sm:$0xff] %v5587_v5  ;;  %8325 = vst [vmem:[#allocation106_spill] sm:$0xff] %v5589_v42  ;;  %v2088_v59 = vadd.f32 %v2087_v43, %v5587_v5  ;;  %v2406_v8 = vmul.f32 %v5587_v5, %v5587_v5  ;;  %v2143_v1 = vadd.f32 %v2142_v25, %v5589_v42  ;;  %v3969_v11 = vpop.f32.mrb[141].mxu0  ;;  %v4073_v37 = vpop.f32.mrb[141].mxu1 }
 0x1f7   :  { %v2510_v6 = vmul.f32 %v5589_v42, %v5589_v42  ;;  %v5597_v45 = vpop.f32.mrb[142].mxu0  ;;  %v5599_v35 = vpop.f32.mrb[142].mxu1 }
 0x1f8   :  { %8326 = vst [vmem:[#allocation107_spill] sm:$0xff] %v5597_v45  ;;  %8327 = vst [vmem:[#allocation108_spill] sm:$0xff] %v5599_v35  ;;  %v2454_v61 = vadd.f32 %v2453_v41, %v2406_v8  ;;  %v2089_v13 = vadd.f32 %v2088_v59, %v5597_v45  ;;  %v2407_v43 = vmul.f32 %v5597_v45, %v5597_v45  ;;  %v3970_v10 = vpop.f32.mrb[143].mxu0  ;;  %v4074_v58 = vpop.f32.mrb[143].mxu1 }
 0x1f9   :  { %v2558_v31 = vadd.f32 %v2557_v55, %v2510_v6  ;;  %v2144_v25 = vadd.f32 %v2143_v1, %v5599_v35  ;;  %v2511_v42 = vmul.f32 %v5599_v35, %v5599_v35 }
 0x1fa   :  { %v2455_v11 = vadd.f32 %v2454_v61, %v2407_v43 }
 0x1fb   :  { %v2559_v37 = vadd.f32 %v2558_v31, %v2511_v42 }
 0x1fd   :  { %v5607_v5 = vpop.f32.mrb[144].mxu0  ;;  %v5609_v23 = vpop.f32.mrb[144].mxu1 }
 0x1fe   :  { %8328 = vst [vmem:[#allocation109_spill] sm:$0xff] %v5607_v5  ;;  %8329 = vst [vmem:[#allocation110_spill] sm:$0xff] %v5609_v23  ;;  %v2090_v41 = vadd.f32 %v2089_v13, %v5607_v5  ;;  %v2408_v55 = vmul.f32 %v5607_v5, %v5607_v5  ;;  %v2145_v59 = vadd.f32 %v2144_v25, %v5609_v23  ;;  %v3973_v8 = vpop.f32.mrb[145].mxu0  ;;  %v4077_v1 = vpop.f32.mrb[145].mxu1 }
 0x1ff   :  { %v2512_v58 = vmul.f32 %v5609_v23, %v5609_v23  ;;  %v5617_v6 = vpop.f32.mrb[146].mxu0  ;;  %v5619_v61 = vpop.f32.mrb[146].mxu1 }
 0x200   :  { %8330 = vst [vmem:[#allocation111_spill] sm:$0xff] %v5617_v6  ;;  %8331 = vst [vmem:[#allocation112_spill] sm:$0xff] %v5619_v61  ;;  %v2456_v42 = vadd.f32 %v2455_v11, %v2408_v55  ;;  %v2091_v43 = vadd.f32 %v2090_v41, %v5617_v6  ;;  %v2409_v13 = vmul.f32 %v5617_v6, %v5617_v6  ;;  %v3974_v10 = vpop.f32.mrb[147].mxu0  ;;  %v4078_v35 = vpop.f32.mrb[147].mxu1 }
 0x201   :  { %v2560_v31 = vadd.f32 %v2559_v37, %v2512_v58  ;;  %v2146_v25 = vadd.f32 %v2145_v59, %v5619_v61  ;;  %v2513_v23 = vmul.f32 %v5619_v61, %v5619_v61 }
 0x202   :  { %v2457_v8 = vadd.f32 %v2456_v42, %v2409_v13 }
 0x203   :  { %v2561_v1 = vadd.f32 %v2560_v31, %v2513_v23 }
 0x205   :  { %v5627_v5 = vpop.f32.mrb[148].mxu0  ;;  %v5629_v45 = vpop.f32.mrb[148].mxu1 }
 0x206   :  { %8332 = vst [vmem:[#allocation113_spill] sm:$0xff] %v5627_v5  ;;  %8333 = vst [vmem:[#allocation114_spill] sm:$0xff] %v5629_v45  ;;  %v2092_v11 = vadd.f32 %v2091_v43, %v5627_v5  ;;  %v2410_v37 = vmul.f32 %v5627_v5, %v5627_v5  ;;  %v2147_v41 = vadd.f32 %v2146_v25, %v5629_v45  ;;  %v3977_v55 = vpop.f32.mrb[149].mxu0  ;;  %v4081_v59 = vpop.f32.mrb[149].mxu1 }
 0x207   :  { %v2514_v35 = vmul.f32 %v5629_v45, %v5629_v45  ;;  %v5637_v58 = vpop.f32.mrb[150].mxu0  ;;  %v5639_v42 = vpop.f32.mrb[150].mxu1 }
 0x208   :  { %8334 = vst [vmem:[#allocation115_spill] sm:$0xff] %v5637_v58  ;;  %8335 = vst [vmem:[#allocation116_spill] sm:$0xff] %v5639_v42  ;;  %v2458_v23 = vadd.f32 %v2457_v8, %v2410_v37  ;;  %v2093_v13 = vadd.f32 %v2092_v11, %v5637_v58  ;;  %v2411_v43 = vmul.f32 %v5637_v58, %v5637_v58  ;;  %v3978_v10 = vpop.f32.mrb[151].mxu0  ;;  %v4082_v61 = vpop.f32.mrb[151].mxu1 }
 0x209   :  { %v2562_v31 = vadd.f32 %v2561_v1, %v2514_v35  ;;  %v2148_v25 = vadd.f32 %v2147_v41, %v5639_v42  ;;  %v2515_v45 = vmul.f32 %v5639_v42, %v5639_v42 }
 0x20a   :  { %v2459_v55 = vadd.f32 %v2458_v23, %v2411_v43 }
 0x20b   :  { %v2563_v59 = vadd.f32 %v2562_v31, %v2515_v45 }
 0x20d   :  { %v5647_v5 = vpop.f32.mrb[152].mxu0  ;;  %v5649_v6 = vpop.f32.mrb[152].mxu1 }
 0x20e   :  { %8336 = vst [vmem:[#allocation117_spill] sm:$0xff] %v5647_v5  ;;  %8337 = vst [vmem:[#allocation118_spill] sm:$0xff] %v5649_v6  ;;  %v2094_v8 = vadd.f32 %v2093_v13, %v5647_v5  ;;  %v2412_v1 = vmul.f32 %v5647_v5, %v5647_v5  ;;  %v2149_v11 = vadd.f32 %v2148_v25, %v5649_v6  ;;  %v3981_v37 = vpop.f32.mrb[153].mxu0  ;;  %v4085_v41 = vpop.f32.mrb[153].mxu1 }
 0x20f   :  { %v2516_v61 = vmul.f32 %v5649_v6, %v5649_v6  ;;  %v5657_v35 = vpop.f32.mrb[154].mxu0  ;;  %v5659_v23 = vpop.f32.mrb[154].mxu1 }
 0x210   :  { %8338 = vst [vmem:[#allocation119_spill] sm:$0xff] %v5657_v35  ;;  %8339 = vst [vmem:[#allocation120_spill] sm:$0xff] %v5659_v23  ;;  %v2460_v45 = vadd.f32 %v2459_v55, %v2412_v1  ;;  %v2095_v43 = vadd.f32 %v2094_v8, %v5657_v35  ;;  %v2413_v13 = vmul.f32 %v5657_v35, %v5657_v35  ;;  %v3982_v10 = vpop.f32.mrb[155].mxu0  ;;  %v4086_v42 = vpop.f32.mrb[155].mxu1 }
 0x211   :  { %v2564_v31 = vadd.f32 %v2563_v59, %v2516_v61  ;;  %v2150_v25 = vadd.f32 %v2149_v11, %v5659_v23  ;;  %v2517_v6 = vmul.f32 %v5659_v23, %v5659_v23 }
 0x212   :  { %v2461_v37 = vadd.f32 %v2460_v45, %v2413_v13 }
 0x213   :  { %v2565_v41 = vadd.f32 %v2564_v31, %v2517_v6 }
 0x215   :  { %v5667_v5 = vpop.f32.mrb[156].mxu0  ;;  %v5669_v58 = vpop.f32.mrb[156].mxu1 }
 0x216   :  { %8340 = vst [vmem:[#allocation121_spill] sm:$0xff] %v5667_v5  ;;  %8341 = vst [vmem:[#allocation122_spill] sm:$0xff] %v5669_v58  ;;  %v2096_v55 = vadd.f32 %v2095_v43, %v5667_v5  ;;  %v2414_v59 = vmul.f32 %v5667_v5, %v5667_v5  ;;  %v2151_v8 = vadd.f32 %v2150_v25, %v5669_v58  ;;  %v3985_v1 = vpop.f32.mrb[157].mxu0  ;;  %v4089_v11 = vpop.f32.mrb[157].mxu1 }
 0x217   :  { %v2518_v42 = vmul.f32 %v5669_v58, %v5669_v58  ;;  %v5677_v61 = vpop.f32.mrb[158].mxu0  ;;  %v5679_v45 = vpop.f32.mrb[158].mxu1 }
 0x218   :  { %8342 = vst [vmem:[#allocation123_spill] sm:$0xff] %v5677_v61  ;;  %8343 = vst [vmem:[#allocation124_spill] sm:$0xff] %v5679_v45  ;;  %v2462_v6 = vadd.f32 %v2461_v37, %v2414_v59  ;;  %v2097_v13 = vadd.f32 %v2096_v55, %v5677_v61  ;;  %v2415_v43 = vmul.f32 %v5677_v61, %v5677_v61  ;;  %v3986_v10 = vpop.f32.mrb[159].mxu0  ;;  %v4090_v23 = vpop.f32.mrb[159].mxu1 }
 0x219   :  { %v2566_v31 = vadd.f32 %v2565_v41, %v2518_v42  ;;  %v2152_v25 = vadd.f32 %v2151_v8, %v5679_v45  ;;  %v2519_v58 = vmul.f32 %v5679_v45, %v5679_v45 }
 0x21a   :  { %v2463_v1 = vadd.f32 %v2462_v6, %v2415_v43 }
 0x21b   :  { %v2567_v11 = vadd.f32 %v2566_v31, %v2519_v58 }
 0x21d   :  { %v5687_v5 = vpop.f32.mrb[160].mxu0  ;;  %v5689_v35 = vpop.f32.mrb[160].mxu1 }
 0x21e   :  { %8344 = vst [vmem:[#allocation125_spill] sm:$0xff] %v5687_v5  ;;  %8345 = vst [vmem:[#allocation126_spill] sm:$0xff] %v5689_v35  ;;  %v2098_v37 = vadd.f32 %v2097_v13, %v5687_v5  ;;  %v2416_v41 = vmul.f32 %v5687_v5, %v5687_v5  ;;  %v2153_v55 = vadd.f32 %v2152_v25, %v5689_v35  ;;  %v3989_v59 = vpop.f32.mrb[161].mxu0  ;;  %v4093_v8 = vpop.f32.mrb[161].mxu1 }
 0x21f   :  { %v2520_v23 = vmul.f32 %v5689_v35, %v5689_v35  ;;  %v5697_v42 = vpop.f32.mrb[162].mxu0  ;;  %v5699_v6 = vpop.f32.mrb[162].mxu1 }
 0x220   :  { %8346 = vst [vmem:[#allocation127_spill] sm:$0xff] %v5697_v42  ;;  %8347 = vst [vmem:[#allocation128_spill] sm:$0xff] %v5699_v6  ;;  %v2464_v58 = vadd.f32 %v2463_v1, %v2416_v41  ;;  %v2099_v43 = vadd.f32 %v2098_v37, %v5697_v42  ;;  %v2417_v13 = vmul.f32 %v5697_v42, %v5697_v42  ;;  %v3990_v10 = vpop.f32.mrb[163].mxu0  ;;  %v4094_v45 = vpop.f32.mrb[163].mxu1 }
 0x221   :  { %v2568_v31 = vadd.f32 %v2567_v11, %v2520_v23  ;;  %v2154_v25 = vadd.f32 %v2153_v55, %v5699_v6  ;;  %v2521_v35 = vmul.f32 %v5699_v6, %v5699_v6 }
 0x222   :  { %v2465_v59 = vadd.f32 %v2464_v58, %v2417_v13 }
 0x223   :  { %v2569_v8 = vadd.f32 %v2568_v31, %v2521_v35 }
 0x225   :  { %v5707_v5 = vpop.f32.mrb[164].mxu0  ;;  %v5709_v61 = vpop.f32.mrb[164].mxu1 }
 0x226   :  { %8348 = vst [vmem:[#allocation129_spill] sm:$0xff] %v5707_v5  ;;  %8349 = vst [vmem:[#allocation130_spill] sm:$0xff] %v5709_v61  ;;  %v2100_v1 = vadd.f32 %v2099_v43, %v5707_v5  ;;  %v2418_v11 = vmul.f32 %v5707_v5, %v5707_v5  ;;  %v2155_v37 = vadd.f32 %v2154_v25, %v5709_v61  ;;  %v3993_v41 = vpop.f32.mrb[165].mxu0  ;;  %v4097_v55 = vpop.f32.mrb[165].mxu1 }
 0x227   :  { %v2522_v45 = vmul.f32 %v5709_v61, %v5709_v61  ;;  %v5717_v23 = vpop.f32.mrb[166].mxu0  ;;  %v5719_v58 = vpop.f32.mrb[166].mxu1 }
 0x228   :  { %8350 = vst [vmem:[#allocation131_spill] sm:$0xff] %v5717_v23  ;;  %8351 = vst [vmem:[#allocation132_spill] sm:$0xff] %v5719_v58  ;;  %v2466_v35 = vadd.f32 %v2465_v59, %v2418_v11  ;;  %v2101_v13 = vadd.f32 %v2100_v1, %v5717_v23  ;;  %v2419_v43 = vmul.f32 %v5717_v23, %v5717_v23  ;;  %v3994_v10 = vpop.f32.mrb[167].mxu0  ;;  %v4098_v6 = vpop.f32.mrb[167].mxu1 }
 0x229   :  { %v2570_v31 = vadd.f32 %v2569_v8, %v2522_v45  ;;  %v2156_v25 = vadd.f32 %v2155_v37, %v5719_v58  ;;  %v2523_v61 = vmul.f32 %v5719_v58, %v5719_v58 }
 0x22a   :  { %v2467_v41 = vadd.f32 %v2466_v35, %v2419_v43 }
 0x22b   :  { %v2571_v55 = vadd.f32 %v2570_v31, %v2523_v61 }
 0x22d   :  { %v5727_v5 = vpop.f32.mrb[168].mxu0  ;;  %v5729_v42 = vpop.f32.mrb[168].mxu1 }
 0x22e   :  { %8352 = vst [vmem:[#allocation133_spill] sm:$0xff] %v5727_v5  ;;  %8353 = vst [vmem:[#allocation134_spill] sm:$0xff] %v5729_v42  ;;  %v2102_v59 = vadd.f32 %v2101_v13, %v5727_v5  ;;  %v2420_v8 = vmul.f32 %v5727_v5, %v5727_v5  ;;  %v2157_v1 = vadd.f32 %v2156_v25, %v5729_v42  ;;  %v3997_v11 = vpop.f32.mrb[169].mxu0  ;;  %v4101_v37 = vpop.f32.mrb[169].mxu1 }
 0x22f   :  { %v2524_v6 = vmul.f32 %v5729_v42, %v5729_v42  ;;  %v5737_v45 = vpop.f32.mrb[170].mxu0  ;;  %v5739_v35 = vpop.f32.mrb[170].mxu1 }
 0x230   :  { %8354 = vst [vmem:[#allocation135_spill] sm:$0xff] %v5737_v45  ;;  %8355 = vst [vmem:[#allocation136_spill] sm:$0xff] %v5739_v35  ;;  %v2468_v61 = vadd.f32 %v2467_v41, %v2420_v8  ;;  %v2103_v43 = vadd.f32 %v2102_v59, %v5737_v45  ;;  %v2421_v13 = vmul.f32 %v5737_v45, %v5737_v45  ;;  %v3998_v10 = vpop.f32.mrb[171].mxu0  ;;  %v4102_v58 = vpop.f32.mrb[171].mxu1 }
 0x231   :  { %v2572_v31 = vadd.f32 %v2571_v55, %v2524_v6  ;;  %v2158_v25 = vadd.f32 %v2157_v1, %v5739_v35  ;;  %v2525_v42 = vmul.f32 %v5739_v35, %v5739_v35 }
 0x232   :  { %v2469_v11 = vadd.f32 %v2468_v61, %v2421_v13 }
 0x233   :  { %v2573_v37 = vadd.f32 %v2572_v31, %v2525_v42 }
 0x235   :  { %v5747_v5 = vpop.f32.mrb[172].mxu0  ;;  %v5749_v23 = vpop.f32.mrb[172].mxu1 }
 0x236   :  { %8356 = vst [vmem:[#allocation137_spill] sm:$0xff] %v5747_v5  ;;  %8357 = vst [vmem:[#allocation138_spill] sm:$0xff] %v5749_v23  ;;  %v2104_v41 = vadd.f32 %v2103_v43, %v5747_v5  ;;  %v2422_v55 = vmul.f32 %v5747_v5, %v5747_v5  ;;  %v2159_v59 = vadd.f32 %v2158_v25, %v5749_v23  ;;  %v4001_v8 = vpop.f32.mrb[173].mxu0  ;;  %v4105_v1 = vpop.f32.mrb[173].mxu1 }
 0x237   :  { %v2526_v58 = vmul.f32 %v5749_v23, %v5749_v23  ;;  %v5757_v6 = vpop.f32.mrb[174].mxu0  ;;  %v5759_v61 = vpop.f32.mrb[174].mxu1 }
 0x238   :  { %8358 = vst [vmem:[#allocation139_spill] sm:$0xff] %v5757_v6  ;;  %8359 = vst [vmem:[#allocation140_spill] sm:$0xff] %v5759_v61  ;;  %v2470_v42 = vadd.f32 %v2469_v11, %v2422_v55  ;;  %v2105_v13 = vadd.f32 %v2104_v41, %v5757_v6  ;;  %v2423_v43 = vmul.f32 %v5757_v6, %v5757_v6  ;;  %v4002_v10 = vpop.f32.mrb[175].mxu0  ;;  %v4106_v35 = vpop.f32.mrb[175].mxu1 }
 0x239   :  { %v2574_v31 = vadd.f32 %v2573_v37, %v2526_v58  ;;  %v2160_v25 = vadd.f32 %v2159_v59, %v5759_v61  ;;  %v2527_v23 = vmul.f32 %v5759_v61, %v5759_v61 }
 0x23a   :  { %v2471_v8 = vadd.f32 %v2470_v42, %v2423_v43 }
 0x23b   :  { %v2575_v1 = vadd.f32 %v2574_v31, %v2527_v23 }
 0x23d   :  { %v5767_v5 = vpop.f32.mrb[176].mxu0  ;;  %v5769_v45 = vpop.f32.mrb[176].mxu1 }
 0x23e   :  { %8360 = vst [vmem:[#allocation141_spill] sm:$0xff] %v5767_v5  ;;  %8361 = vst [vmem:[#allocation142_spill] sm:$0xff] %v5769_v45  ;;  %v2106_v11 = vadd.f32 %v2105_v13, %v5767_v5  ;;  %v2424_v37 = vmul.f32 %v5767_v5, %v5767_v5  ;;  %v2161_v41 = vadd.f32 %v2160_v25, %v5769_v45  ;;  %v4005_v55 = vpop.f32.mrb[177].mxu0  ;;  %v4109_v59 = vpop.f32.mrb[177].mxu1 }
 0x23f   :  { %v2528_v35 = vmul.f32 %v5769_v45, %v5769_v45  ;;  %v5777_v58 = vpop.f32.mrb[178].mxu0  ;;  %v5779_v42 = vpop.f32.mrb[178].mxu1 }
 0x240   :  { %8362 = vst [vmem:[#allocation143_spill] sm:$0xff] %v5777_v58  ;;  %8363 = vst [vmem:[#allocation144_spill] sm:$0xff] %v5779_v42  ;;  %v2472_v23 = vadd.f32 %v2471_v8, %v2424_v37  ;;  %v2107_v43 = vadd.f32 %v2106_v11, %v5777_v58  ;;  %v2425_v13 = vmul.f32 %v5777_v58, %v5777_v58  ;;  %v4006_v10 = vpop.f32.mrb[179].mxu0  ;;  %v4110_v61 = vpop.f32.mrb[179].mxu1 }
 0x241   :  { %v2576_v31 = vadd.f32 %v2575_v1, %v2528_v35  ;;  %v2162_v25 = vadd.f32 %v2161_v41, %v5779_v42  ;;  %v2529_v45 = vmul.f32 %v5779_v42, %v5779_v42 }
 0x242   :  { %v2473_v55 = vadd.f32 %v2472_v23, %v2425_v13 }
 0x243   :  { %v2577_v59 = vadd.f32 %v2576_v31, %v2529_v45 }
 0x245   :  { %v5787_v5 = vpop.f32.mrb[180].mxu0  ;;  %v5789_v6 = vpop.f32.mrb[180].mxu1 }
 0x246   :  { %8364 = vst [vmem:[#allocation145_spill] sm:$0xff] %v5787_v5  ;;  %8365 = vst [vmem:[#allocation146_spill] sm:$0xff] %v5789_v6  ;;  %v2108_v8 = vadd.f32 %v2107_v43, %v5787_v5  ;;  %v2426_v1 = vmul.f32 %v5787_v5, %v5787_v5  ;;  %v2163_v11 = vadd.f32 %v2162_v25, %v5789_v6  ;;  %v4009_v37 = vpop.f32.mrb[181].mxu0  ;;  %v4113_v41 = vpop.f32.mrb[181].mxu1 }
 0x247   :  { %v2530_v61 = vmul.f32 %v5789_v6, %v5789_v6  ;;  %v5797_v35 = vpop.f32.mrb[182].mxu0  ;;  %v5799_v23 = vpop.f32.mrb[182].mxu1 }
 0x248   :  { %8366 = vst [vmem:[#allocation147_spill] sm:$0xff] %v5797_v35  ;;  %8367 = vst [vmem:[#allocation148_spill] sm:$0xff] %v5799_v23  ;;  %v2474_v45 = vadd.f32 %v2473_v55, %v2426_v1  ;;  %v2109_v13 = vadd.f32 %v2108_v8, %v5797_v35  ;;  %v2427_v43 = vmul.f32 %v5797_v35, %v5797_v35  ;;  %v4010_v10 = vpop.f32.mrb[183].mxu0  ;;  %v4114_v42 = vpop.f32.mrb[183].mxu1 }
 0x249   :  { %v2578_v31 = vadd.f32 %v2577_v59, %v2530_v61  ;;  %v2164_v25 = vadd.f32 %v2163_v11, %v5799_v23  ;;  %v2531_v6 = vmul.f32 %v5799_v23, %v5799_v23 }
 0x24a   :  { %v2475_v37 = vadd.f32 %v2474_v45, %v2427_v43 }
 0x24b   :  { %v2579_v41 = vadd.f32 %v2578_v31, %v2531_v6 }
 0x24d   :  { %v5807_v5 = vpop.f32.mrb[184].mxu0  ;;  %v5809_v58 = vpop.f32.mrb[184].mxu1 }
 0x24e   :  { %8368 = vst [vmem:[#allocation149_spill] sm:$0xff] %v5807_v5  ;;  %8369 = vst [vmem:[#allocation150_spill] sm:$0xff] %v5809_v58  ;;  %v2110_v55 = vadd.f32 %v2109_v13, %v5807_v5  ;;  %v2428_v59 = vmul.f32 %v5807_v5, %v5807_v5  ;;  %v2165_v8 = vadd.f32 %v2164_v25, %v5809_v58  ;;  %v4013_v1 = vpop.f32.mrb[185].mxu0  ;;  %v4117_v11 = vpop.f32.mrb[185].mxu1 }
 0x24f   :  { %v2532_v42 = vmul.f32 %v5809_v58, %v5809_v58  ;;  %v5817_v61 = vpop.f32.mrb[186].mxu0  ;;  %v5819_v45 = vpop.f32.mrb[186].mxu1 }
 0x250   :  { %8370 = vst [vmem:[#allocation151_spill] sm:$0xff] %v5817_v61  ;;  %8371 = vst [vmem:[#allocation152_spill] sm:$0xff] %v5819_v45  ;;  %v2476_v6 = vadd.f32 %v2475_v37, %v2428_v59  ;;  %v2111_v43 = vadd.f32 %v2110_v55, %v5817_v61  ;;  %v2429_v13 = vmul.f32 %v5817_v61, %v5817_v61  ;;  %v4014_v10 = vpop.f32.mrb[187].mxu0  ;;  %v4118_v23 = vpop.f32.mrb[187].mxu1 }
 0x251   :  { %v2580_v31 = vadd.f32 %v2579_v41, %v2532_v42  ;;  %v2166_v25 = vadd.f32 %v2165_v8, %v5819_v45  ;;  %v2533_v58 = vmul.f32 %v5819_v45, %v5819_v45 }
 0x252   :  { %v2477_v1 = vadd.f32 %v2476_v6, %v2429_v13 }
 0x253   :  { %v2581_v11 = vadd.f32 %v2580_v31, %v2533_v58 }
 0x255   :  { %v5827_v5 = vpop.f32.mrb[188].mxu0  ;;  %v5829_v35 = vpop.f32.mrb[188].mxu1 }
 0x256   :  { %8372 = vst [vmem:[#allocation153_spill] sm:$0xff] %v5827_v5  ;;  %8373 = vst [vmem:[#allocation154_spill] sm:$0xff] %v5829_v35  ;;  %v2112_v37 = vadd.f32 %v2111_v43, %v5827_v5  ;;  %v2430_v41 = vmul.f32 %v5827_v5, %v5827_v5  ;;  %v2167_v55 = vadd.f32 %v2166_v25, %v5829_v35  ;;  %v4017_v59 = vpop.f32.mrb[189].mxu0  ;;  %v4121_v8 = vpop.f32.mrb[189].mxu1 }
 0x257   :  { %v2534_v23 = vmul.f32 %v5829_v35, %v5829_v35  ;;  %v5837_v42 = vpop.f32.mrb[190].mxu0  ;;  %v5839_v6 = vpop.f32.mrb[190].mxu1 }
 0x258   :  { %8374 = vst [vmem:[#allocation155_spill] sm:$0xff] %v5837_v42  ;;  %8375 = vst [vmem:[#allocation156_spill] sm:$0xff] %v5839_v6  ;;  %v2478_v58 = vadd.f32 %v2477_v1, %v2430_v41  ;;  %v2113_v13 = vadd.f32 %v2112_v37, %v5837_v42  ;;  %v2431_v43 = vmul.f32 %v5837_v42, %v5837_v42  ;;  %v4018_v10 = vpop.f32.mrb[191].mxu0  ;;  %v4122_v45 = vpop.f32.mrb[191].mxu1 }
 0x259   :  { %v2582_v31 = vadd.f32 %v2581_v11, %v2534_v23  ;;  %v2168_v25 = vadd.f32 %v2167_v55, %v5839_v6  ;;  %v2535_v35 = vmul.f32 %v5839_v6, %v5839_v6 }
 0x25a   :  { %v2479_v59 = vadd.f32 %v2478_v58, %v2431_v43 }
 0x25b   :  { %v2583_v8 = vadd.f32 %v2582_v31, %v2535_v35 }
 0x25d   :  { %v5847_v5 = vpop.f32.mrb[192].mxu0  ;;  %v5849_v61 = vpop.f32.mrb[192].mxu1 }
 0x25e   :  { %8376 = vst [vmem:[#allocation157_spill] sm:$0xff] %v5847_v5  ;;  %8377 = vst [vmem:[#allocation158_spill] sm:$0xff] %v5849_v61  ;;  %v2114_v1 = vadd.f32 %v2113_v13, %v5847_v5  ;;  %v2432_v11 = vmul.f32 %v5847_v5, %v5847_v5  ;;  %v2169_v37 = vadd.f32 %v2168_v25, %v5849_v61  ;;  %v4021_v41 = vpop.f32.mrb[193].mxu0  ;;  %v4125_v55 = vpop.f32.mrb[193].mxu1 }
 0x25f   :  { %v2536_v45 = vmul.f32 %v5849_v61, %v5849_v61  ;;  %v5857_v23 = vpop.f32.mrb[194].mxu0  ;;  %v5859_v58 = vpop.f32.mrb[194].mxu1 }
 0x260   :  { %8378 = vst [vmem:[#allocation159_spill] sm:$0xff] %v5857_v23  ;;  %8379 = vst [vmem:[#allocation160_spill] sm:$0xff] %v5859_v58  ;;  %v2480_v35 = vadd.f32 %v2479_v59, %v2432_v11  ;;  %v2115_v43 = vadd.f32 %v2114_v1, %v5857_v23  ;;  %v2433_v13 = vmul.f32 %v5857_v23, %v5857_v23  ;;  %v4022_v10 = vpop.f32.mrb[195].mxu0  ;;  %v4126_v6 = vpop.f32.mrb[195].mxu1 }
 0x261   :  { %v2584_v31 = vadd.f32 %v2583_v8, %v2536_v45  ;;  %v2170_v25 = vadd.f32 %v2169_v37, %v5859_v58  ;;  %v2537_v61 = vmul.f32 %v5859_v58, %v5859_v58 }
 0x262   :  { %v2481_v41 = vadd.f32 %v2480_v35, %v2433_v13 }
 0x263   :  { %v2585_v55 = vadd.f32 %v2584_v31, %v2537_v61 }
 0x265   :  { %v5867_v5 = vpop.f32.mrb[196].mxu0  ;;  %v5869_v42 = vpop.f32.mrb[196].mxu1 }
 0x266   :  { %8380 = vst [vmem:[#allocation161_spill] sm:$0xff] %v5867_v5  ;;  %8381 = vst [vmem:[#allocation162_spill] sm:$0xff] %v5869_v42  ;;  %v2116_v59 = vadd.f32 %v2115_v43, %v5867_v5  ;;  %v2434_v8 = vmul.f32 %v5867_v5, %v5867_v5  ;;  %v2171_v1 = vadd.f32 %v2170_v25, %v5869_v42  ;;  %v4025_v11 = vpop.f32.mrb[197].mxu0  ;;  %v4129_v37 = vpop.f32.mrb[197].mxu1 }
 0x267   :  { %v2538_v6 = vmul.f32 %v5869_v42, %v5869_v42  ;;  %v1478_v45 = vpop.f32.mrb[198].mxu0  ;;  %v1957_v10 = vpop.f32.mrb[198].mxu1 }
 0x268   :  { %v2117_v35 = vrot.slane %v2116_v59, 4  ;;  %v2482_v61 = vadd.f32 %v2481_v41, %v2434_v8  ;;  %v2172_v31 = vrot.slane %v2171_v1, 4  ;;  %v4026_v58 = vpop.f32.mrb[199].mxu0  ;;  %v4130_v23 = vpop.f32.mrb[199].mxu1 }
 0x269   :  { %v2586_v13 = vadd.f32 %v2585_v55, %v2538_v6 }
 0x26a   :  { %v2118_v0 = vadd.f32 %v2117_v35, %v2116_v59  ;;  %v2483_v43 = vrot.slane %v2482_v61, 4  ;;  %v2173_v3 = vadd.f32 %v2172_v31, %v2171_v1 }
 0x26b   :  { %v2587_v48 = vrot.slane %v2586_v13, 4 }
 0x26c   :  { %v2119_v5 = vrot.slane %v2118_v0, 2  ;;  %v2484_v24 = vadd.f32 %v2483_v43, %v2482_v61  ;;  %v2174_v25 = vrot.slane %v2173_v3, 2 }
 0x26d   :  { %v2588_v20 = vadd.f32 %v2587_v48, %v2586_v13 }
 0x26e   :  { %v2120_v50 = vadd.f32 %v2119_v5, %v2118_v0  ;;  %v2485_v42 = vrot.slane %v2484_v24, 2  ;;  %v2175_v11 = vadd.f32 %v2174_v25, %v2173_v3 }
 0x26f   :  { %v2589_v37 = vrot.slane %v2588_v20, 2 }
 0x270   :  { %v2121_v45 = vrot.slane %v2120_v50, 1  ;;  %v2486_v10 = vadd.f32 %v2485_v42, %v2484_v24  ;;  %v2176_v46 = vrot.slane %v2175_v11, 1  ;;  %v2606_v24 = vlaneseq }
 0x271   :  { %v2590_v41 = vadd.f32 %v2589_v37, %v2588_v20 }
 0x272   :  { %v2122_v8 = vadd.f32 %v2121_v45, %v2120_v50  ;;  %v2487_v55 = vrot.slane %v2486_v10, 1  ;;  %v2177_v1 = vadd.f32 %v2176_v46, %v2175_v11  ;;  %v2607_v20 = vshrl.u32 %v2606_v24, 7  ;;  %v2598_v50 = vld [vmem:[%s7906_s5] sm:$0x1] }
 0x273   :  { %v2591_v58 = vrot.slane %v2590_v41, 1 }
 0x274   :  { %v2123_v23 = vadd.f32 %v2122_v8, %v5403_v39  ;;  %v2488_v59 = vadd.f32 %v2487_v55, %v2486_v10  ;;  %v2608_v39 = vsub.s32 0, %v2607_v20  ;;  %v8392_v20 = vld [vmem:[#allocation57_spill] sm:$0xff] }
 0x275   :  { %v2592_v61 = vadd.f32 %v2591_v58, %v2590_v41 }
 0x276   :  { %v2489_v6 = vadd.f32 %v2488_v59, %v5409_v36  ;;  %v2178_v35 = vadd.f32 %v2177_v1, %v2123_v23  ;;  %v2602_v36 = vld [vmem:[%s7907_s6] sm:$0x1]  ;;  %v8382_v23 = vld [vmem:[#allocation37_spill] sm:$0xff]  ;;  %v8383_v59 = vld [vmem:[#allocation39_spill] sm:$0xff] }
 0x277   :  { %v8384_v1 = vld [vmem:[#allocation41_spill] sm:$0xff] }
 0x278   :  { %v2593_v48 = vadd.f32 %v2592_v61, %v2489_v6  ;;  %v2594_v5 = vmul.f32 0.0006377551, %v2178_v35  ;;  %v8385_v6 = vld [vmem:[#allocation43_spill] sm:$0xff]  ;;  %v8386_v35 = vld [vmem:[#allocation45_spill] sm:$0xff] }
 0x279   :  { %v8387_v61 = vld [vmem:[#allocation47_spill] sm:$0xff] }
 0x27a   :  { %v2595_v0 = vmul.f32 0.0006377551, %v2593_v48  ;;  %v2596_v3 = vmul.f32 %v2594_v5, %v2594_v5  ;;  %v8388_v48 = vld [vmem:[#allocation49_spill] sm:$0xff] }
 0x27c   :  { %v2597_v31 = vsub.f32 %v2595_v0, %v2596_v3  ;;  %v8390_v3 = vld [vmem:[#allocation53_spill] sm:$0xff] }
 0x27e   :  { %v2599_v13 = vadd.f32 1e-05, %v2597_v31 }
 0x280   :  { %4235 = vrsqrt.f32 %v2599_v13  ;;  %v8391_v13 = vld [vmem:[#allocation55_spill] sm:$0xff] }
 0x28a   :  { %v4236_v42 = vpop.eup %4235 }
 0x28b   :  { %v2601_v46 = vmul.f32 %v4236_v42, %v2598_v50  ;;  %v8393_v42 = vld [vmem:[#allocation59_spill] sm:$0xff] }
 0x28d   :  { %v2603_v43 = vmul.f32 %v2601_v46, %v2594_v5  ;;  %v5885_v25 = vrot.slane %v2601_v46, %v2608_v39  ;;  %v8389_v5 = vld [vmem:[#allocation51_spill] sm:$0xff] }
 0x28f   :  { %v2604_v11 = vsub.f32 %v2602_v36, %v2603_v43  ;;  %v2611_v37 = vmul.f32 %v5885_v25, %v4621_v57  ;;  %v2612_v45 = vmul.f32 %v5885_v25, %v4635_v2  ;;  %v2613_v10 = vmul.f32 %v5885_v25, %v4653_v12  ;;  %v8394_v36 = vld [vmem:[#allocation61_spill] sm:$0xff] }
 0x290   :  { %v2614_v41 = vmul.f32 %v5885_v25, %v4669_v22  ;;  %v2615_v8 = vmul.f32 %v5885_v25, %v4685_v34  ;;  %v2616_v55 = vmul.f32 %v5885_v25, %v4701_v44  ;;  %v2617_v58 = vmul.f32 %v5885_v25, %v4717_v56 }
 0x291   :  { %v2618_v57 = vmul.f32 %v5885_v25, %v4733_v7  ;;  %v2619_v2 = vmul.f32 %v5885_v25, %v4749_v21  ;;  %v2620_v12 = vmul.f32 %v5885_v25, %v4765_v33  ;;  %v2621_v22 = vmul.f32 %v5885_v25, %v4781_v49 }
 0x292   :  { %v2622_v34 = vmul.f32 %v5885_v25, %v4797_v63  ;;  %v2623_v44 = vmul.f32 %v5885_v25, %v4813_v18  ;;  %v2624_v56 = vmul.f32 %v5885_v25, %v4829_v32  ;;  %v2625_v7 = vmul.f32 %v5885_v25, %v4845_v52 }
 0x293   :  { %v2626_v21 = vmul.f32 %v5885_v25, %v4861_v9  ;;  %v2627_v33 = vmul.f32 %v5885_v25, %v4877_v29  ;;  %v2628_v49 = vmul.f32 %v5885_v25, %v4893_v47  ;;  %v2629_v63 = vmul.f32 %v5885_v25, %v4909_v14 }
 0x294   :  { %v2630_v18 = vmul.f32 %v5885_v25, %v4925_v38  ;;  %v2631_v32 = vmul.f32 %v5885_v25, %v4941_v62  ;;  %v2632_v52 = vmul.f32 %v5885_v25, %v4957_v27  ;;  %v2633_v9 = vmul.f32 %v5885_v25, %v4973_v60 }
 0x295   :  { %v2634_v29 = vmul.f32 %v5885_v25, %v4989_v40  ;;  %v2635_v47 = vmul.f32 %v5885_v25, %v5005_v17  ;;  %v2636_v14 = vmul.f32 %v5885_v25, %v5021_v51  ;;  %v2637_v38 = vmul.f32 %v5885_v25, %v5037_v28 }
 0x296   :  { %v2638_v62 = vmul.f32 %v5885_v25, %v5053_v54  ;;  %v2639_v27 = vmul.f32 %v5885_v25, %v5069_v15  ;;  %v2640_v60 = vmul.f32 %v5885_v25, %v5085_v26  ;;  %v2641_v40 = vmul.f32 %v5885_v25, %v5101_v30 }
 0x297   :  { %v2642_v17 = vmul.f32 %v5885_v25, %v5117_v16  ;;  %v2643_v51 = vmul.f32 %v5885_v25, %v5133_v53  ;;  %v2644_v28 = vmul.f32 %v5885_v25, %v5149_v4  ;;  %v2645_v54 = vmul.f32 %v5885_v25, %v5165_v19 }
 0x298   :  { %v2646_v15 = vmul.f32 %v5885_v25, %v8382_v23  ;;  %v2647_v26 = vmul.f32 %v5885_v25, %v8383_v59  ;;  %v2648_v30 = vmul.f32 %v5885_v25, %v8384_v1  ;;  %v2649_v16 = vmul.f32 %v5885_v25, %v8385_v6  ;;  %v8395_v23 = vld [vmem:[#allocation63_spill] sm:$0xff]  ;;  %v8396_v6 = vld [vmem:[#allocation2_spill] sm:$0xff] }
 0x299   :  { %v2650_v53 = vmul.f32 %v5885_v25, %v8386_v35  ;;  %v2651_v4 = vmul.f32 %v5885_v25, %v8387_v61  ;;  %v2652_v19 = vmul.f32 %v5885_v25, %v8388_v48  ;;  %v2653_v0 = vmul.f32 %v5885_v25, %v8389_v5  ;;  %v8397_v61 = vld [vmem:[#allocation3_spill] sm:$0xff]  ;;  %v8398_v5 = vld [vmem:[#allocation4_spill] sm:$0xff] }
 0x29a   :  { %v2654_v31 = vmul.f32 %v5885_v25, %v8390_v3  ;;  %v2655_v24 = vmul.f32 %v5885_v25, %v8391_v13  ;;  %v2656_v50 = vmul.f32 %v5885_v25, %v8392_v20  ;;  %v2657_v46 = vmul.f32 %v5885_v25, %v8393_v42  ;;  %v8399_v13 = vld [vmem:[#allocation5_spill] sm:$0xff]  ;;  %v8401_v42 = vld [vmem:[#allocation6_spill] sm:$0xff] }
 0x29b   :  { %v2658_v43 = vmul.f32 %v5885_v25, %v8394_v36  ;;  %v2659_v59 = vmul.f32 %v5885_v25, %v8395_v23  ;;  %v5985_v1 = vrot.slane %v2604_v11, %v2608_v39  ;;  %v5989_v35 = vmul.f32 %v5885_v25, %v8396_v6 }
 0x29c   :  { %v5993_v48 = vmul.f32 %v5885_v25, %v8397_v61  ;;  %v5997_v3 = vmul.f32 %v5885_v25, %v8398_v5  ;;  %v6001_v20 = vmul.f32 %v5885_v25, %v8399_v13  ;;  %v6005_v39 = vmul.f32 %v5885_v25, %v8401_v42 }
 0x29d   :  { %v6008_v11 = vadd.f32 %v5985_v1, %v2611_v37  ;;  %v6011_v36 = vadd.f32 %v5985_v1, %v2612_v45  ;;  %v6014_v23 = vadd.f32 %v5985_v1, %v2613_v10  ;;  %v6017_v6 = vadd.f32 %v5985_v1, %v2614_v41 }
 0x29e   :  { %8400 = vst [vmem:[#allocation37_spill] sm:$0xff] %v6001_v20  ;;  %8402 = vst [vmem:[#allocation39_spill] sm:$0xff] %v6005_v39  ;;  %v6020_v61 = vadd.f32 %v5985_v1, %v2615_v8  ;;  %v6023_v5 = vadd.f32 %v5985_v1, %v2616_v55  ;;  %v6026_v13 = vadd.f32 %v5985_v1, %v2617_v58 }
 0x29f   :  { %8403 = vst [vmem:[#allocation41_spill] sm:$0xff] %v6011_v36  ;;  %8404 = vst [vmem:[#allocation43_spill] sm:$0xff] %v6014_v23  ;;  %v6029_v37 = vadd.f32 %v5985_v1, %v2618_v57  ;;  %v6032_v45 = vadd.f32 %v5985_v1, %v2619_v2  ;;  %v6035_v10 = vadd.f32 %v5985_v1, %v2620_v12 }
 0x2a0   :  { %8405 = vst [vmem:[#allocation45_spill] sm:$0xff] %v6017_v6  ;;  %8406 = vst [vmem:[#allocation47_spill] sm:$0xff] %v6020_v61  ;;  %v6038_v41 = vadd.f32 %v5985_v1, %v2621_v22  ;;  %v6041_v8 = vadd.f32 %v5985_v1, %v2622_v34  ;;  %v6044_v55 = vadd.f32 %v5985_v1, %v2623_v44 }
 0x2a1   :  { %8407 = vst [vmem:[#allocation49_spill] sm:$0xff] %v6023_v5  ;;  %8408 = vst [vmem:[#allocation51_spill] sm:$0xff] %v6026_v13  ;;  %v6047_v58 = vadd.f32 %v5985_v1, %v2624_v56  ;;  %v6050_v57 = vadd.f32 %v5985_v1, %v2625_v7  ;;  %v6053_v2 = vadd.f32 %v5985_v1, %v2626_v21 }
 0x2a2   :  { %8409 = vst [vmem:[#allocation53_spill] sm:$0xff] %v6029_v37  ;;  %8410 = vst [vmem:[#allocation55_spill] sm:$0xff] %v6032_v45  ;;  %v6056_v12 = vadd.f32 %v5985_v1, %v2627_v33  ;;  %v6059_v22 = vadd.f32 %v5985_v1, %v2628_v49  ;;  %v6062_v34 = vadd.f32 %v5985_v1, %v2629_v63  ;;  %v8494_v45 = vld [vmem:[#allocation64_spill] sm:$0xff] }
 0x2a3   :  { %8411 = vst [vmem:[#allocation57_spill] sm:$0xff] %v6035_v10  ;;  %8412 = vst [vmem:[#allocation59_spill] sm:$0xff] %v6038_v41  ;;  %v6065_v44 = vadd.f32 %v5985_v1, %v2630_v18  ;;  %v6068_v56 = vadd.f32 %v5985_v1, %v2631_v32  ;;  %v6071_v7 = vadd.f32 %v5985_v1, %v2632_v52  ;;  %v8492_v41 = vld [vmem:[#allocation60_spill] sm:$0xff]  ;;  %v8493_v10 = vld [vmem:[#allocation62_spill] sm:$0xff] }
 0x2a4   :  { %8413 = vst [vmem:[#allocation61_spill] sm:$0xff] %v6041_v8  ;;  %8414 = vst [vmem:[#allocation63_spill] sm:$0xff] %v6044_v55  ;;  %v6074_v21 = vadd.f32 %v5985_v1, %v2633_v9  ;;  %v6077_v33 = vadd.f32 %v5985_v1, %v2634_v29  ;;  %v6080_v49 = vadd.f32 %v5985_v1, %v2635_v47  ;;  %v8490_v55 = vld [vmem:[#allocation56_spill] sm:$0xff]  ;;  %v8491_v8 = vld [vmem:[#allocation58_spill] sm:$0xff] }
 0x2a5   :  { %8415 = vst [vmem:[#allocation2_spill] sm:$0xff] %v6047_v58  ;;  %8416 = vst [vmem:[#allocation3_spill] sm:$0xff] %v6050_v57  ;;  %v6083_v63 = vadd.f32 %v5985_v1, %v2636_v14  ;;  %v6086_v18 = vadd.f32 %v5985_v1, %v2637_v38  ;;  %v6089_v32 = vadd.f32 %v5985_v1, %v2638_v62  ;;  %v8488_v57 = vld [vmem:[#allocation52_spill] sm:$0xff]  ;;  %v8489_v58 = vld [vmem:[#allocation54_spill] sm:$0xff] }
 0x2a6   :  { %8417 = vst [vmem:[#allocation4_spill] sm:$0xff] %v6053_v2  ;;  %8418 = vst [vmem:[#allocation5_spill] sm:$0xff] %v6056_v12  ;;  %v6092_v52 = vadd.f32 %v5985_v1, %v2639_v27  ;;  %v6095_v9 = vadd.f32 %v5985_v1, %v2640_v60  ;;  %v6098_v29 = vadd.f32 %v5985_v1, %v2641_v40  ;;  %v8486_v12 = vld [vmem:[#allocation48_spill] sm:$0xff]  ;;  %v8487_v2 = vld [vmem:[#allocation50_spill] sm:$0xff] }
 0x2a7   :  { %8419 = vst [vmem:[#allocation6_spill] sm:$0xff] %v6059_v22  ;;  %8420 = vst [vmem:[#allocation163_spill] sm:$0xff] %v6062_v34  ;;  %v6101_v47 = vadd.f32 %v5985_v1, %v2642_v17  ;;  %v6104_v14 = vadd.f32 %v5985_v1, %v2643_v51  ;;  %v6107_v38 = vadd.f32 %v5985_v1, %v2644_v28  ;;  %v8484_v34 = vld [vmem:[#allocation44_spill] sm:$0xff]  ;;  %v8485_v22 = vld [vmem:[#allocation46_spill] sm:$0xff] }
 0x2a8   :  { %8421 = vst [vmem:[#allocation164_spill] sm:$0xff] %v6065_v44  ;;  %8422 = vst [vmem:[#allocation165_spill] sm:$0xff] %v6068_v56  ;;  %v6110_v62 = vadd.f32 %v5985_v1, %v2645_v54  ;;  %v6113_v27 = vadd.f32 %v5985_v1, %v2646_v15  ;;  %v6116_v60 = vadd.f32 %v5985_v1, %v2647_v26  ;;  %v8482_v56 = vld [vmem:[#allocation40_spill] sm:$0xff]  ;;  %v8483_v44 = vld [vmem:[#allocation42_spill] sm:$0xff] }
 0x2a9   :  { %8423 = vst [vmem:[#allocation166_spill] sm:$0xff] %v6071_v7  ;;  %8424 = vst [vmem:[#allocation167_spill] sm:$0xff] %v6074_v21  ;;  %v6119_v40 = vadd.f32 %v5985_v1, %v2648_v30  ;;  %v6122_v17 = vadd.f32 %v5985_v1, %v2649_v16  ;;  %v6125_v51 = vadd.f32 %v5985_v1, %v2650_v53  ;;  %v8480_v21 = vld [vmem:[#allocation36_spill] sm:$0xff]  ;;  %v8481_v7 = vld [vmem:[#allocation38_spill] sm:$0xff] }
 0x2aa   :  { %8425 = vst [vmem:[#allocation168_spill] sm:$0xff] %v6077_v33  ;;  %8426 = vst [vmem:[#allocation169_spill] sm:$0xff] %v6080_v49  ;;  %v6128_v28 = vadd.f32 %v5985_v1, %v2651_v4  ;;  %v6131_v54 = vadd.f32 %v5985_v1, %v2652_v19  ;;  %v6134_v15 = vadd.f32 %v5985_v1, %v2653_v0  ;;  %v8452_v0 = vld [vmem:[#allocation8_spill] sm:$0xff]  ;;  %v8478_v49 = vld [vmem:[#allocation34_spill] sm:$0xff] }
 0x2ab   :  { %8427 = vst [vmem:[#allocation170_spill] sm:$0xff] %v6083_v63  ;;  %8428 = vst [vmem:[#allocation171_spill] sm:$0xff] %v6086_v18  ;;  %v6137_v26 = vadd.f32 %v5985_v1, %v2654_v31  ;;  %v6140_v30 = vadd.f32 %v5985_v1, %v2655_v24  ;;  %v6143_v16 = vadd.f32 %v5985_v1, %v2656_v50  ;;  %v8454_v24 = vld [vmem:[#allocation10_spill] sm:$0xff]  ;;  %v8476_v18 = vld [vmem:[#allocation32_spill] sm:$0xff] }
 0x2ac   :  { %8429 = vst [vmem:[#allocation172_spill] sm:$0xff] %v6089_v32  ;;  %8430 = vst [vmem:[#allocation173_spill] sm:$0xff] %v6092_v52  ;;  %v6146_v53 = vadd.f32 %v5985_v1, %v2657_v46  ;;  %v6149_v4 = vadd.f32 %v5985_v1, %v2658_v43  ;;  %v6152_v19 = vadd.f32 %v5985_v1, %v2659_v59  ;;  %v8456_v46 = vld [vmem:[#allocation12_spill] sm:$0xff]  ;;  %v8474_v52 = vld [vmem:[#allocation30_spill] sm:$0xff] }
 0x2ad   :  { %8431 = vst [vmem:[#allocation174_spill] sm:$0xff] %v6095_v9  ;;  %8432 = vst [vmem:[#allocation175_spill] sm:$0xff] %v6098_v29  ;;  %v2770_v31 = vmul.f32 %v5885_v25, %v8452_v0  ;;  %v2772_v50 = vmul.f32 %v5885_v25, %v8454_v24  ;;  %v2774_v43 = vmul.f32 %v5885_v25, %v8456_v46  ;;  %v8472_v29 = vld [vmem:[#allocation28_spill] sm:$0xff]  ;;  %v8473_v9 = vld [vmem:[#allocation29_spill] sm:$0xff] }
 0x2ae   :  { %8433 = vst [vmem:[#allocation176_spill] sm:$0xff] %v6101_v47  ;;  %8434 = vst [vmem:[#allocation177_spill] sm:$0xff] %v6104_v14  ;;  %v8470_v14 = vld [vmem:[#allocation26_spill] sm:$0xff]  ;;  %v8471_v47 = vld [vmem:[#allocation27_spill] sm:$0xff] }
 0x2af   :  { %8435 = vst [vmem:[#allocation178_spill] sm:$0xff] %v6107_v38  ;;  %8436 = vst [vmem:[#allocation179_spill] sm:$0xff] %v6110_v62  ;;  %v8468_v62 = vld [vmem:[#allocation24_spill] sm:$0xff]  ;;  %v8469_v38 = vld [vmem:[#allocation25_spill] sm:$0xff] }
 0x2b0   :  { %8437 = vst [vmem:[#allocation180_spill] sm:$0xff] %v6113_v27  ;;  %8438 = vst [vmem:[#allocation181_spill] sm:$0xff] %v6116_v60  ;;  %v8466_v60 = vld [vmem:[#allocation22_spill] sm:$0xff]  ;;  %v8467_v27 = vld [vmem:[#allocation23_spill] sm:$0xff] }
 0x2b1   :  { %8439 = vst [vmem:[#allocation182_spill] sm:$0xff] %v6119_v40  ;;  %8440 = vst [vmem:[#allocation183_spill] sm:$0xff] %v6122_v17  ;;  %v8451_v17 = vld [vmem:[#allocation7_spill] sm:$0xff]  ;;  %v8465_v40 = vld [vmem:[#allocation21_spill] sm:$0xff] }
 0x2b2   :  { %8441 = vst [vmem:[#allocation184_spill] sm:$0xff] %v6125_v51  ;;  %8442 = vst [vmem:[#allocation185_spill] sm:$0xff] %v6128_v28  ;;  %v2769_v59 = vmul.f32 %v5885_v25, %v8451_v17  ;;  %v8463_v28 = vld [vmem:[#allocation19_spill] sm:$0xff]  ;;  %v8464_v51 = vld [vmem:[#allocation20_spill] sm:$0xff] }
 0x2b3   :  { %8443 = vst [vmem:[#allocation186_spill] sm:$0xff] %v6131_v54  ;;  %8444 = vst [vmem:[#allocation187_spill] sm:$0xff] %v6134_v15  ;;  %v8453_v54 = vld [vmem:[#allocation9_spill] sm:$0xff]  ;;  %v8462_v15 = vld [vmem:[#allocation18_spill] sm:$0xff]  ;;  %v2781_v46 = vmul.f32 %v5885_v25, %v8463_v28  ;;  %v2788_v28 = vmul.f32 %v5885_v25, %v8470_v14 }
 0x2b4   :  { %8445 = vst [vmem:[#allocation188_spill] sm:$0xff] %v6137_v26  ;;  %8446 = vst [vmem:[#allocation189_spill] sm:$0xff] %v6140_v30  ;;  %v2771_v42 = vmul.f32 %v5885_v25, %v8453_v54  ;;  %v8455_v30 = vld [vmem:[#allocation11_spill] sm:$0xff]  ;;  %v8461_v26 = vld [vmem:[#allocation17_spill] sm:$0xff] }
 0x2b5   :  { %8447 = vst [vmem:[#allocation190_spill] sm:$0xff] %v6143_v16  ;;  %8448 = vst [vmem:[#allocation191_spill] sm:$0xff] %v6146_v53  ;;  %v2773_v39 = vmul.f32 %v5885_v25, %v8455_v30  ;;  %v8459_v53 = vld [vmem:[#allocation15_spill] sm:$0xff]  ;;  %v8460_v16 = vld [vmem:[#allocation16_spill] sm:$0xff]  ;;  %v2779_v24 = vmul.f32 %v5885_v25, %v8461_v26  ;;  %v2780_v30 = vmul.f32 %v5885_v25, %v8462_v15 }
 0x2b6   :  { %8449 = vst [vmem:[#allocation192_spill] sm:$0xff] %v6149_v4  ;;  %8450 = vst [vmem:[#allocation193_spill] sm:$0xff] %v6152_v19  ;;  %v8457_v4 = vld [vmem:[#allocation13_spill] sm:$0xff]  ;;  %v8458_v19 = vld [vmem:[#allocation14_spill] sm:$0xff]  ;;  %v2777_v0 = vmul.f32 %v5885_v25, %v8459_v53  ;;  %v2778_v54 = vmul.f32 %v5885_v25, %v8460_v16  ;;  %v2784_v53 = vmul.f32 %v5885_v25, %v8466_v60 }
 0x2b7   :  { %v2775_v20 = vmul.f32 %v5885_v25, %v8457_v4  ;;  %v2776_v17 = vmul.f32 %v5885_v25, %v8458_v19  ;;  %v2782_v4 = vmul.f32 %v5885_v25, %v8464_v51  ;;  %v2783_v19 = vmul.f32 %v5885_v25, %v8465_v40  ;;  %v8475_v32 = vld [vmem:[#allocation31_spill] sm:$0xff]  ;;  %v8477_v63 = vld [vmem:[#allocation33_spill] sm:$0xff] }
 0x2b8   :  { %v2785_v16 = vmul.f32 %v5885_v25, %v8467_v27  ;;  %v2786_v26 = vmul.f32 %v5885_v25, %v8468_v62  ;;  %v2787_v15 = vmul.f32 %v5885_v25, %v8469_v38  ;;  %v2789_v51 = vmul.f32 %v5885_v25, %v8471_v47  ;;  %v8479_v33 = vld [vmem:[#allocation35_spill] sm:$0xff] }
 0x2b9   :  { %v2790_v40 = vmul.f32 %v5885_v25, %v8472_v29  ;;  %v2791_v60 = vmul.f32 %v5885_v25, %v8473_v9  ;;  %v2792_v27 = vmul.f32 %v5885_v25, %v8474_v52  ;;  %v2793_v62 = vmul.f32 %v5885_v25, %v8475_v32 }
 0x2ba   :  { %v2794_v38 = vmul.f32 %v5885_v25, %v8476_v18  ;;  %v2795_v14 = vmul.f32 %v5885_v25, %v8477_v63  ;;  %v2796_v47 = vmul.f32 %v5885_v25, %v8478_v49  ;;  %v2797_v29 = vmul.f32 %v5885_v25, %v8479_v33 }
 0x2bb   :  { %v2798_v9 = vmul.f32 %v5885_v25, %v8480_v21  ;;  %v2799_v52 = vmul.f32 %v5885_v25, %v8481_v7  ;;  %v2800_v32 = vmul.f32 %v5885_v25, %v8482_v56  ;;  %v2801_v18 = vmul.f32 %v5885_v25, %v8483_v44 }
 0x2bc   :  { %v2802_v63 = vmul.f32 %v5885_v25, %v8484_v34  ;;  %v2803_v49 = vmul.f32 %v5885_v25, %v8485_v22  ;;  %v2804_v33 = vmul.f32 %v5885_v25, %v8486_v12  ;;  %v2805_v21 = vmul.f32 %v5885_v25, %v8487_v2 }
 0x2bd   :  { %v2806_v7 = vmul.f32 %v5885_v25, %v8488_v57  ;;  %v2807_v56 = vmul.f32 %v5885_v25, %v8489_v58  ;;  %v2808_v44 = vmul.f32 %v5885_v25, %v8490_v55  ;;  %v2809_v34 = vmul.f32 %v5885_v25, %v8491_v8 }
 0x2be   :  { %v2810_v22 = vmul.f32 %v5885_v25, %v8492_v41  ;;  %v2811_v12 = vmul.f32 %v5885_v25, %v8493_v10  ;;  %v2812_v2 = vmul.f32 %v5885_v25, %v8494_v45  ;;  %v6293_v57 = vadd.f32 %v5989_v35, %v5985_v1  ;;  %v8496_v41 = vld [vmem:[#allocation37_spill] sm:$0xff]  ;;  %v8498_v10 = vld [vmem:[#allocation39_spill] sm:$0xff] }
 0x2bf   :  { %v6297_v58 = vadd.f32 %v5993_v48, %v5985_v1  ;;  %v6301_v8 = vadd.f32 %v5997_v3, %v5985_v1  ;;  %v6305_v55 = vadd.f32 %v8496_v41, %v5985_v1  ;;  %v6309_v37 = vadd.f32 %v8498_v10, %v5985_v1 }
 0x2c0   :  { %v6312_v45 = vadd.f32 %v2769_v59, %v5985_v1  ;;  %v6315_v35 = vadd.f32 %v2770_v31, %v5985_v1  ;;  %v6318_v48 = vadd.f32 %v2771_v42, %v5985_v1  ;;  %v6321_v3 = vadd.f32 %v2772_v50, %v5985_v1 }
 0x2c1   :  { %8495 = vst [vmem:[#allocation7_spill] sm:$0xff] %v6301_v8  ;;  %8497 = vst [vmem:[#allocation8_spill] sm:$0xff] %v6305_v55  ;;  %v6324_v13 = vadd.f32 %v2773_v39, %v5985_v1  ;;  %v6327_v41 = vadd.f32 %v2774_v43, %v5985_v1  ;;  %v6330_v10 = vadd.f32 %v2775_v20, %v5985_v1  ;;  %v8592_v55 = vld [vmem:[#allocation161_spill] sm:$0xff] }
 0x2c2   :  { %8499 = vst [vmem:[#allocation9_spill] sm:$0xff] %v6309_v37  ;;  %8500 = vst [vmem:[#allocation10_spill] sm:$0xff] %v6312_v45  ;;  %v6333_v59 = vadd.f32 %v2776_v17, %v5985_v1  ;;  %v6336_v31 = vadd.f32 %v2777_v0, %v5985_v1  ;;  %v6339_v42 = vadd.f32 %v2778_v54, %v5985_v1  ;;  %v8590_v45 = vld [vmem:[#allocation157_spill] sm:$0xff]  ;;  %v8591_v37 = vld [vmem:[#allocation159_spill] sm:$0xff] }
 0x2c3   :  { %8501 = vst [vmem:[#allocation11_spill] sm:$0xff] %v6315_v35  ;;  %8502 = vst [vmem:[#allocation12_spill] sm:$0xff] %v6318_v48  ;;  %v6342_v50 = vadd.f32 %v2779_v24, %v5985_v1  ;;  %v6345_v39 = vadd.f32 %v2780_v30, %v5985_v1  ;;  %v6348_v43 = vadd.f32 %v2781_v46, %v5985_v1  ;;  %v8588_v48 = vld [vmem:[#allocation153_spill] sm:$0xff]  ;;  %v8589_v35 = vld [vmem:[#allocation155_spill] sm:$0xff] }
 0x2c4   :  { %8503 = vst [vmem:[#allocation13_spill] sm:$0xff] %v6321_v3  ;;  %8504 = vst [vmem:[#allocation14_spill] sm:$0xff] %v6324_v13  ;;  %v6351_v20 = vadd.f32 %v2782_v4, %v5985_v1  ;;  %v6354_v17 = vadd.f32 %v2783_v19, %v5985_v1  ;;  %v6357_v0 = vadd.f32 %v2784_v53, %v5985_v1  ;;  %v8586_v13 = vld [vmem:[#allocation149_spill] sm:$0xff]  ;;  %v8587_v3 = vld [vmem:[#allocation151_spill] sm:$0xff] }
 0x2c5   :  { %8505 = vst [vmem:[#allocation15_spill] sm:$0xff] %v6327_v41  ;;  %8506 = vst [vmem:[#allocation16_spill] sm:$0xff] %v6330_v10  ;;  %v6360_v54 = vadd.f32 %v2785_v16, %v5985_v1  ;;  %v6363_v24 = vadd.f32 %v2786_v26, %v5985_v1  ;;  %v6366_v30 = vadd.f32 %v2787_v15, %v5985_v1  ;;  %v8584_v10 = vld [vmem:[#allocation145_spill] sm:$0xff]  ;;  %v8585_v41 = vld [vmem:[#allocation147_spill] sm:$0xff] }
 0x2c6   :  { %8507 = vst [vmem:[#allocation17_spill] sm:$0xff] %v6333_v59  ;;  %8508 = vst [vmem:[#allocation18_spill] sm:$0xff] %v6336_v31  ;;  %v6369_v46 = vadd.f32 %v2788_v28, %v5985_v1  ;;  %v6372_v4 = vadd.f32 %v2789_v51, %v5985_v1  ;;  %v6375_v19 = vadd.f32 %v2790_v40, %v5985_v1  ;;  %v8582_v31 = vld [vmem:[#allocation141_spill] sm:$0xff]  ;;  %v8583_v59 = vld [vmem:[#allocation143_spill] sm:$0xff] }
 0x2c7   :  { %8509 = vst [vmem:[#allocation19_spill] sm:$0xff] %v6339_v42  ;;  %8510 = vst [vmem:[#allocation20_spill] sm:$0xff] %v6342_v50  ;;  %v6378_v53 = vadd.f32 %v2791_v60, %v5985_v1  ;;  %v6381_v16 = vadd.f32 %v2792_v27, %v5985_v1  ;;  %v6384_v26 = vadd.f32 %v2793_v62, %v5985_v1  ;;  %v8580_v50 = vld [vmem:[#allocation137_spill] sm:$0xff]  ;;  %v8581_v42 = vld [vmem:[#allocation139_spill] sm:$0xff] }
 0x2c8   :  { %8511 = vst [vmem:[#allocation21_spill] sm:$0xff] %v6345_v39  ;;  %8512 = vst [vmem:[#allocation22_spill] sm:$0xff] %v6348_v43  ;;  %v6387_v15 = vadd.f32 %v2794_v38, %v5985_v1  ;;  %v6390_v28 = vadd.f32 %v2795_v14, %v5985_v1  ;;  %v6393_v51 = vadd.f32 %v2796_v47, %v5985_v1  ;;  %v8578_v43 = vld [vmem:[#allocation133_spill] sm:$0xff]  ;;  %v8579_v39 = vld [vmem:[#allocation135_spill] sm:$0xff] }
 0x2c9   :  { %8513 = vst [vmem:[#allocation23_spill] sm:$0xff] %v6351_v20  ;;  %8514 = vst [vmem:[#allocation24_spill] sm:$0xff] %v6354_v17  ;;  %v6396_v40 = vadd.f32 %v2797_v29, %v5985_v1  ;;  %v6399_v60 = vadd.f32 %v2798_v9, %v5985_v1  ;;  %v6402_v27 = vadd.f32 %v2799_v52, %v5985_v1  ;;  %v8576_v17 = vld [vmem:[#allocation129_spill] sm:$0xff]  ;;  %v8577_v20 = vld [vmem:[#allocation131_spill] sm:$0xff] }
 0x2ca   :  { %8515 = vst [vmem:[#allocation25_spill] sm:$0xff] %v6357_v0  ;;  %8516 = vst [vmem:[#allocation26_spill] sm:$0xff] %v6360_v54  ;;  %v6405_v62 = vadd.f32 %v2800_v32, %v5985_v1  ;;  %v6408_v38 = vadd.f32 %v2801_v18, %v5985_v1  ;;  %v6411_v14 = vadd.f32 %v2802_v63, %v5985_v1  ;;  %v8574_v54 = vld [vmem:[#allocation125_spill] sm:$0xff]  ;;  %v8575_v0 = vld [vmem:[#allocation127_spill] sm:$0xff] }
 0x2cb   :  { %8517 = vst [vmem:[#allocation27_spill] sm:$0xff] %v6363_v24  ;;  %8518 = vst [vmem:[#allocation28_spill] sm:$0xff] %v6366_v30  ;;  %v6414_v47 = vadd.f32 %v2803_v49, %v5985_v1  ;;  %v6417_v29 = vadd.f32 %v2804_v33, %v5985_v1  ;;  %v6420_v9 = vadd.f32 %v2805_v21, %v5985_v1  ;;  %v8572_v30 = vld [vmem:[#allocation121_spill] sm:$0xff]  ;;  %v8573_v24 = vld [vmem:[#allocation123_spill] sm:$0xff] }
 0x2cc   :  { %8519 = vst [vmem:[#allocation29_spill] sm:$0xff] %v6369_v46  ;;  %8520 = vst [vmem:[#allocation30_spill] sm:$0xff] %v6372_v4  ;;  %v6423_v52 = vadd.f32 %v2806_v7, %v5985_v1  ;;  %v6426_v32 = vadd.f32 %v2807_v56, %v5985_v1  ;;  %v6429_v18 = vadd.f32 %v2808_v44, %v5985_v1  ;;  %v8545_v7 = vld [vmem:[#allocation67_spill] sm:$0xff]  ;;  %v8570_v4 = vld [vmem:[#allocation117_spill] sm:$0xff] }
 0x2cd   :  { %8521 = vst [vmem:[#allocation31_spill] sm:$0xff] %v6375_v19  ;;  %8522 = vst [vmem:[#allocation32_spill] sm:$0xff] %v6378_v53  ;;  %v6432_v63 = vadd.f32 %v2809_v34, %v5985_v1  ;;  %v6435_v49 = vadd.f32 %v2810_v22, %v5985_v1  ;;  %v6438_v33 = vadd.f32 %v2811_v12, %v5985_v1  ;;  %v8547_v44 = vld [vmem:[#allocation71_spill] sm:$0xff]  ;;  %v8568_v53 = vld [vmem:[#allocation113_spill] sm:$0xff] }
 0x2ce   :  { %8523 = vst [vmem:[#allocation33_spill] sm:$0xff] %v6381_v16  ;;  %8524 = vst [vmem:[#allocation34_spill] sm:$0xff] %v6384_v26  ;;  %v6441_v21 = vadd.f32 %v2812_v2, %v5985_v1  ;;  %v2912_v56 = vmul.f32 %v5885_v25, %v8545_v7  ;;  %v2914_v34 = vmul.f32 %v5885_v25, %v8547_v44  ;;  %v8549_v22 = vld [vmem:[#allocation75_spill] sm:$0xff]  ;;  %v8566_v26 = vld [vmem:[#allocation109_spill] sm:$0xff] }
 0x2cf   :  { %8525 = vst [vmem:[#allocation35_spill] sm:$0xff] %v6387_v15  ;;  %8526 = vst [vmem:[#allocation36_spill] sm:$0xff] %v6390_v28  ;;  %v2916_v12 = vmul.f32 %v5885_v25, %v8549_v22  ;;  %v8564_v28 = vld [vmem:[#allocation105_spill] sm:$0xff]  ;;  %v8565_v15 = vld [vmem:[#allocation107_spill] sm:$0xff] }
 0x2d0   :  { %8527 = vst [vmem:[#allocation38_spill] sm:$0xff] %v6393_v51  ;;  %8528 = vst [vmem:[#allocation40_spill] sm:$0xff] %v6396_v40  ;;  %v8562_v40 = vld [vmem:[#allocation101_spill] sm:$0xff]  ;;  %v8563_v51 = vld [vmem:[#allocation103_spill] sm:$0xff] }
 0x2d1   :  { %8529 = vst [vmem:[#allocation42_spill] sm:$0xff] %v6399_v60  ;;  %8530 = vst [vmem:[#allocation44_spill] sm:$0xff] %v6402_v27  ;;  %v8560_v27 = vld [vmem:[#allocation97_spill] sm:$0xff]  ;;  %v8561_v60 = vld [vmem:[#allocation99_spill] sm:$0xff] }
 0x2d2   :  { %8531 = vst [vmem:[#allocation46_spill] sm:$0xff] %v6405_v62  ;;  %8532 = vst [vmem:[#allocation48_spill] sm:$0xff] %v6408_v38  ;;  %v8558_v38 = vld [vmem:[#allocation93_spill] sm:$0xff]  ;;  %v8559_v62 = vld [vmem:[#allocation95_spill] sm:$0xff] }
 0x2d3   :  { %8533 = vst [vmem:[#allocation50_spill] sm:$0xff] %v6411_v14  ;;  %8534 = vst [vmem:[#allocation52_spill] sm:$0xff] %v6414_v47  ;;  %v8544_v14 = vld [vmem:[#allocation65_spill] sm:$0xff]  ;;  %v8557_v47 = vld [vmem:[#allocation91_spill] sm:$0xff] }
 0x2d4   :  { %8535 = vst [vmem:[#allocation54_spill] sm:$0xff] %v6417_v29  ;;  %8536 = vst [vmem:[#allocation56_spill] sm:$0xff] %v6420_v9  ;;  %v2911_v2 = vmul.f32 %v5885_v25, %v8544_v14  ;;  %v8546_v9 = vld [vmem:[#allocation69_spill] sm:$0xff]  ;;  %v8567_v16 = vld [vmem:[#allocation111_spill] sm:$0xff] }
 0x2d5   :  { %8537 = vst [vmem:[#allocation58_spill] sm:$0xff] %v6423_v52  ;;  %8538 = vst [vmem:[#allocation60_spill] sm:$0xff] %v6426_v32  ;;  %v2913_v5 = vmul.f32 %v5885_v25, %v8546_v9  ;;  %v8554_v32 = vld [vmem:[#allocation85_spill] sm:$0xff]  ;;  %v8555_v52 = vld [vmem:[#allocation87_spill] sm:$0xff] }
 0x2d6   :  { %8539 = vst [vmem:[#allocation62_spill] sm:$0xff] %v6429_v18  ;;  %8540 = vst [vmem:[#allocation64_spill] sm:$0xff] %v6432_v63  ;;  %v8548_v18 = vld [vmem:[#allocation73_spill] sm:$0xff]  ;;  %v8553_v63 = vld [vmem:[#allocation83_spill] sm:$0xff]  ;;  %v2921_v44 = vmul.f32 %v5885_v25, %v8554_v32  ;;  %v2928_v32 = vmul.f32 %v5885_v25, %v8561_v60  ;;  %v2935_v60 = vmul.f32 %v5885_v25, %v8568_v53 }
 0x2d7   :  { %8541 = vst [vmem:[#allocation37_spill] sm:$0xff] %v6435_v49  ;;  %8542 = vst [vmem:[#allocation39_spill] sm:$0xff] %v6438_v33  ;;  %v2915_v61 = vmul.f32 %v5885_v25, %v8548_v18  ;;  %v8550_v33 = vld [vmem:[#allocation77_spill] sm:$0xff]  ;;  %v2920_v9 = vmul.f32 %v5885_v25, %v8553_v63  ;;  %v2922_v18 = vmul.f32 %v5885_v25, %v8555_v52  ;;  %v8569_v19 = vld [vmem:[#allocation115_spill] sm:$0xff] }
 0x2d8   :  { %8543 = vst [vmem:[#allocation194_spill] sm:$0xff] %v6441_v21  ;;  %v2917_v6 = vmul.f32 %v5885_v25, %v8550_v33  ;;  %v8551_v21 = vld [vmem:[#allocation79_spill] sm:$0xff]  ;;  %v8552_v49 = vld [vmem:[#allocation81_spill] sm:$0xff]  ;;  %v2924_v33 = vmul.f32 %v5885_v25, %v8557_v47  ;;  %v2927_v63 = vmul.f32 %v5885_v25, %v8560_v27  ;;  %v2929_v52 = vmul.f32 %v5885_v25, %v8562_v40 }
 0x2d9   :  { %v2918_v14 = vmul.f32 %v5885_v25, %v8551_v21  ;;  %v2919_v7 = vmul.f32 %v5885_v25, %v8552_v49  ;;  %v8556_v29 = vld [vmem:[#allocation89_spill] sm:$0xff]  ;;  %v2925_v21 = vmul.f32 %v5885_v25, %v8558_v38  ;;  %v2926_v49 = vmul.f32 %v5885_v25, %v8559_v62  ;;  %v8571_v46 = vld [vmem:[#allocation119_spill] sm:$0xff] }
 0x2da   :  { %v2923_v22 = vmul.f32 %v5885_v25, %v8556_v29  ;;  %v2930_v29 = vmul.f32 %v5885_v25, %v8563_v51  ;;  %v2931_v47 = vmul.f32 %v5885_v25, %v8564_v28  ;;  %v2932_v38 = vmul.f32 %v5885_v25, %v8565_v15 }
 0x2db   :  { %v2933_v62 = vmul.f32 %v5885_v25, %v8566_v26  ;;  %v2934_v27 = vmul.f32 %v5885_v25, %v8567_v16  ;;  %v2936_v40 = vmul.f32 %v5885_v25, %v8569_v19  ;;  %v2937_v51 = vmul.f32 %v5885_v25, %v8570_v4 }
 0x2dc   :  { %v2938_v28 = vmul.f32 %v5885_v25, %v8571_v46  ;;  %v2939_v15 = vmul.f32 %v5885_v25, %v8572_v30  ;;  %v2940_v26 = vmul.f32 %v5885_v25, %v8573_v24  ;;  %v2941_v16 = vmul.f32 %v5885_v25, %v8574_v54 }
 0x2dd   :  { %v2942_v53 = vmul.f32 %v5885_v25, %v8575_v0  ;;  %v2943_v19 = vmul.f32 %v5885_v25, %v8576_v17  ;;  %v2944_v4 = vmul.f32 %v5885_v25, %v8577_v20  ;;  %v2945_v46 = vmul.f32 %v5885_v25, %v8578_v43 }
 0x2de   :  { %v2946_v30 = vmul.f32 %v5885_v25, %v8579_v39  ;;  %v2947_v24 = vmul.f32 %v5885_v25, %v8580_v50  ;;  %v2948_v54 = vmul.f32 %v5885_v25, %v8581_v42  ;;  %v2949_v0 = vmul.f32 %v5885_v25, %v8582_v31 }
 0x2df   :  { %v2950_v17 = vmul.f32 %v5885_v25, %v8583_v59  ;;  %v2951_v20 = vmul.f32 %v5885_v25, %v8584_v10  ;;  %v2952_v43 = vmul.f32 %v5885_v25, %v8585_v41  ;;  %v2953_v39 = vmul.f32 %v5885_v25, %v8586_v13 }
 0x2e0   :  { %v2954_v50 = vmul.f32 %v5885_v25, %v8587_v3  ;;  %v2955_v42 = vmul.f32 %v5885_v25, %v8588_v48  ;;  %v2956_v31 = vmul.f32 %v5885_v25, %v8589_v35  ;;  %v2957_v59 = vmul.f32 %v5885_v25, %v8590_v45 }
 0x2e1   :  { %v2958_v10 = vmul.f32 %v5885_v25, %v8591_v37  ;;  %v2959_v41 = vmul.f32 %v5885_v25, %v8592_v55  ;;  %v6591_v13 = vadd.f32 %v2911_v2, %v5985_v1  ;;  %v6594_v3 = vadd.f32 %v2912_v56, %v5985_v1 }
 0x2e2   :  { %v6597_v48 = vadd.f32 %v2913_v5, %v5985_v1  ;;  %v6600_v35 = vadd.f32 %v2914_v34, %v5985_v1  ;;  %v6603_v45 = vadd.f32 %v2915_v61, %v5985_v1  ;;  %v6606_v37 = vadd.f32 %v2916_v12, %v5985_v1 }
 0x2e3   :  { %8593 = vst [vmem:[#allocation65_spill] sm:$0xff] %v6594_v3  ;;  %v6609_v55 = vadd.f32 %v2917_v6, %v5985_v1  ;;  %v6612_v2 = vadd.f32 %v2918_v14, %v5985_v1  ;;  %v6615_v56 = vadd.f32 %v2919_v7, %v5985_v1  ;;  %v6618_v5 = vadd.f32 %v2920_v9, %v5985_v1 }
 0x2e4   :  { %8594 = vst [vmem:[#allocation67_spill] sm:$0xff] %v6597_v48  ;;  %8595 = vst [vmem:[#allocation69_spill] sm:$0xff] %v6600_v35  ;;  %v6621_v34 = vadd.f32 %v2921_v44, %v5985_v1  ;;  %v6624_v61 = vadd.f32 %v2922_v18, %v5985_v1  ;;  %v6627_v12 = vadd.f32 %v2923_v22, %v5985_v1  ;;  %v8689_v35 = vld [vmem:[#allocation162_spill] sm:$0xff] }
 0x2e5   :  { %8596 = vst [vmem:[#allocation71_spill] sm:$0xff] %v6603_v45  ;;  %8597 = vst [vmem:[#allocation73_spill] sm:$0xff] %v6606_v37  ;;  %v6630_v6 = vadd.f32 %v2924_v33, %v5985_v1  ;;  %v6633_v14 = vadd.f32 %v2925_v21, %v5985_v1  ;;  %v6636_v7 = vadd.f32 %v2926_v49, %v5985_v1  ;;  %v8687_v37 = vld [vmem:[#allocation158_spill] sm:$0xff]  ;;  %v8688_v45 = vld [vmem:[#allocation160_spill] sm:$0xff] }
 0x2e6   :  { %8598 = vst [vmem:[#allocation75_spill] sm:$0xff] %v6609_v55  ;;  %8599 = vst [vmem:[#allocation77_spill] sm:$0xff] %v6612_v2  ;;  %v6639_v9 = vadd.f32 %v2927_v63, %v5985_v1  ;;  %v6642_v44 = vadd.f32 %v2928_v32, %v5985_v1  ;;  %v6645_v18 = vadd.f32 %v2929_v52, %v5985_v1  ;;  %v8685_v2 = vld [vmem:[#allocation154_spill] sm:$0xff]  ;;  %v8686_v55 = vld [vmem:[#allocation156_spill] sm:$0xff] }
 0x2e7   :  { %8600 = vst [vmem:[#allocation79_spill] sm:$0xff] %v6615_v56  ;;  %8601 = vst [vmem:[#allocation81_spill] sm:$0xff] %v6618_v5  ;;  %v6648_v22 = vadd.f32 %v2930_v29, %v5985_v1  ;;  %v6651_v33 = vadd.f32 %v2931_v47, %v5985_v1  ;;  %v6654_v21 = vadd.f32 %v2932_v38, %v5985_v1  ;;  %v8683_v5 = vld [vmem:[#allocation150_spill] sm:$0xff]  ;;  %v8684_v56 = vld [vmem:[#allocation152_spill] sm:$0xff] }
 0x2e8   :  { %8602 = vst [vmem:[#allocation83_spill] sm:$0xff] %v6621_v34  ;;  %8603 = vst [vmem:[#allocation85_spill] sm:$0xff] %v6624_v61  ;;  %v6657_v49 = vadd.f32 %v2933_v62, %v5985_v1  ;;  %v6660_v63 = vadd.f32 %v2934_v27, %v5985_v1  ;;  %v6663_v32 = vadd.f32 %v2935_v60, %v5985_v1  ;;  %v8681_v61 = vld [vmem:[#allocation146_spill] sm:$0xff]  ;;  %v8682_v34 = vld [vmem:[#allocation148_spill] sm:$0xff] }
 0x2e9   :  { %8604 = vst [vmem:[#allocation87_spill] sm:$0xff] %v6627_v12  ;;  %8605 = vst [vmem:[#allocation89_spill] sm:$0xff] %v6630_v6  ;;  %v6666_v52 = vadd.f32 %v2936_v40, %v5985_v1  ;;  %v6669_v29 = vadd.f32 %v2937_v51, %v5985_v1  ;;  %v6672_v47 = vadd.f32 %v2938_v28, %v5985_v1  ;;  %v8679_v6 = vld [vmem:[#allocation142_spill] sm:$0xff]  ;;  %v8680_v12 = vld [vmem:[#allocation144_spill] sm:$0xff] }
 0x2ea   :  { %8606 = vst [vmem:[#allocation91_spill] sm:$0xff] %v6633_v14  ;;  %8607 = vst [vmem:[#allocation93_spill] sm:$0xff] %v6636_v7  ;;  %v6675_v38 = vadd.f32 %v2939_v15, %v5985_v1  ;;  %v6678_v62 = vadd.f32 %v2940_v26, %v5985_v1  ;;  %v6681_v27 = vadd.f32 %v2941_v16, %v5985_v1  ;;  %v8677_v7 = vld [vmem:[#allocation138_spill] sm:$0xff]  ;;  %v8678_v14 = vld [vmem:[#allocation140_spill] sm:$0xff] }
 0x2eb   :  { %8608 = vst [vmem:[#allocation95_spill] sm:$0xff] %v6639_v9  ;;  %8609 = vst [vmem:[#allocation97_spill] sm:$0xff] %v6642_v44  ;;  %v6684_v60 = vadd.f32 %v2942_v53, %v5985_v1  ;;  %v6687_v40 = vadd.f32 %v2943_v19, %v5985_v1  ;;  %v6690_v51 = vadd.f32 %v2944_v4, %v5985_v1  ;;  %v8675_v44 = vld [vmem:[#allocation134_spill] sm:$0xff]  ;;  %v8676_v9 = vld [vmem:[#allocation136_spill] sm:$0xff] }
 0x2ec   :  { %8610 = vst [vmem:[#allocation99_spill] sm:$0xff] %v6645_v18  ;;  %8611 = vst [vmem:[#allocation101_spill] sm:$0xff] %v6648_v22  ;;  %v6693_v28 = vadd.f32 %v2945_v46, %v5985_v1  ;;  %v6696_v15 = vadd.f32 %v2946_v30, %v5985_v1  ;;  %v6699_v26 = vadd.f32 %v2947_v24, %v5985_v1  ;;  %v8673_v22 = vld [vmem:[#allocation130_spill] sm:$0xff]  ;;  %v8674_v18 = vld [vmem:[#allocation132_spill] sm:$0xff] }
 0x2ed   :  { %8612 = vst [vmem:[#allocation103_spill] sm:$0xff] %v6651_v33  ;;  %8613 = vst [vmem:[#allocation105_spill] sm:$0xff] %v6654_v21  ;;  %v6702_v16 = vadd.f32 %v2948_v54, %v5985_v1  ;;  %v6705_v53 = vadd.f32 %v2949_v0, %v5985_v1  ;;  %v6708_v19 = vadd.f32 %v2950_v17, %v5985_v1  ;;  %v8671_v21 = vld [vmem:[#allocation126_spill] sm:$0xff]  ;;  %v8672_v33 = vld [vmem:[#allocation128_spill] sm:$0xff] }
 0x2ee   :  { %8614 = vst [vmem:[#allocation107_spill] sm:$0xff] %v6657_v49  ;;  %8615 = vst [vmem:[#allocation109_spill] sm:$0xff] %v6660_v63  ;;  %v6711_v4 = vadd.f32 %v2951_v20, %v5985_v1  ;;  %v6714_v46 = vadd.f32 %v2952_v43, %v5985_v1  ;;  %v6717_v30 = vadd.f32 %v2953_v39, %v5985_v1  ;;  %v8642_v39 = vld [vmem:[#allocation68_spill] sm:$0xff]  ;;  %v8669_v63 = vld [vmem:[#allocation122_spill] sm:$0xff] }
 0x2ef   :  { %8616 = vst [vmem:[#allocation111_spill] sm:$0xff] %v6663_v32  ;;  %8617 = vst [vmem:[#allocation113_spill] sm:$0xff] %v6666_v52  ;;  %v6720_v24 = vadd.f32 %v2954_v50, %v5985_v1  ;;  %v6723_v54 = vadd.f32 %v2955_v42, %v5985_v1  ;;  %v6726_v0 = vadd.f32 %v2956_v31, %v5985_v1  ;;  %v8644_v42 = vld [vmem:[#allocation72_spill] sm:$0xff]  ;;  %v8667_v52 = vld [vmem:[#allocation118_spill] sm:$0xff] }
 0x2f0   :  { %8618 = vst [vmem:[#allocation115_spill] sm:$0xff] %v6669_v29  ;;  %8619 = vst [vmem:[#allocation117_spill] sm:$0xff] %v6672_v47  ;;  %v6729_v17 = vadd.f32 %v2957_v59, %v5985_v1  ;;  %v6732_v20 = vadd.f32 %v2958_v10, %v5985_v1  ;;  %v6735_v43 = vadd.f32 %v2959_v41, %v5985_v1  ;;  %v8646_v59 = vld [vmem:[#allocation76_spill] sm:$0xff]  ;;  %v8665_v47 = vld [vmem:[#allocation114_spill] sm:$0xff] }
 0x2f1   :  { %8620 = vst [vmem:[#allocation119_spill] sm:$0xff] %v6675_v38  ;;  %8621 = vst [vmem:[#allocation121_spill] sm:$0xff] %v6678_v62  ;;  %v3059_v50 = vmul.f32 %v5885_v25, %v8642_v39  ;;  %v3061_v31 = vmul.f32 %v5885_v25, %v8644_v42  ;;  %v3063_v10 = vmul.f32 %v5885_v25, %v8646_v59  ;;  %v8663_v62 = vld [vmem:[#allocation110_spill] sm:$0xff]  ;;  %v8664_v38 = vld [vmem:[#allocation112_spill] sm:$0xff] }
 0x2f2   :  { %8622 = vst [vmem:[#allocation123_spill] sm:$0xff] %v6681_v27  ;;  %8623 = vst [vmem:[#allocation125_spill] sm:$0xff] %v6684_v60  ;;  %v8661_v60 = vld [vmem:[#allocation106_spill] sm:$0xff]  ;;  %v8662_v27 = vld [vmem:[#allocation108_spill] sm:$0xff] }
 0x2f3   :  { %8624 = vst [vmem:[#allocation127_spill] sm:$0xff] %v6687_v40  ;;  %8625 = vst [vmem:[#allocation129_spill] sm:$0xff] %v6690_v51  ;;  %v8659_v51 = vld [vmem:[#allocation102_spill] sm:$0xff]  ;;  %v8660_v40 = vld [vmem:[#allocation104_spill] sm:$0xff] }
 0x2f4   :  { %8626 = vst [vmem:[#allocation131_spill] sm:$0xff] %v6693_v28  ;;  %8627 = vst [vmem:[#allocation133_spill] sm:$0xff] %v6696_v15  ;;  %v8657_v15 = vld [vmem:[#allocation98_spill] sm:$0xff]  ;;  %v8658_v28 = vld [vmem:[#allocation100_spill] sm:$0xff] }
 0x2f5   :  { %8628 = vst [vmem:[#allocation135_spill] sm:$0xff] %v6699_v26  ;;  %8629 = vst [vmem:[#allocation137_spill] sm:$0xff] %v6702_v16  ;;  %v8655_v16 = vld [vmem:[#allocation94_spill] sm:$0xff]  ;;  %v8656_v26 = vld [vmem:[#allocation96_spill] sm:$0xff] }
 0x2f6   :  { %8630 = vst [vmem:[#allocation139_spill] sm:$0xff] %v6705_v53  ;;  %8631 = vst [vmem:[#allocation141_spill] sm:$0xff] %v6708_v19  ;;  %v8641_v53 = vld [vmem:[#allocation66_spill] sm:$0xff]  ;;  %v8654_v19 = vld [vmem:[#allocation92_spill] sm:$0xff] }
 0x2f7   :  { %8632 = vst [vmem:[#allocation143_spill] sm:$0xff] %v6711_v4  ;;  %8633 = vst [vmem:[#allocation145_spill] sm:$0xff] %v6714_v46  ;;  %v3058_v41 = vmul.f32 %v5885_v25, %v8641_v53  ;;  %v8643_v46 = vld [vmem:[#allocation70_spill] sm:$0xff]  ;;  %v8666_v29 = vld [vmem:[#allocation116_spill] sm:$0xff] }
 0x2f8   :  { %8634 = vst [vmem:[#allocation147_spill] sm:$0xff] %v6717_v30  ;;  %8635 = vst [vmem:[#allocation149_spill] sm:$0xff] %v6720_v24  ;;  %v3060_v23 = vmul.f32 %v5885_v25, %v8643_v46  ;;  %v8651_v24 = vld [vmem:[#allocation86_spill] sm:$0xff]  ;;  %v8652_v30 = vld [vmem:[#allocation88_spill] sm:$0xff] }
 0x2f9   :  { %8636 = vst [vmem:[#allocation151_spill] sm:$0xff] %v6723_v54  ;;  %8637 = vst [vmem:[#allocation153_spill] sm:$0xff] %v6726_v0  ;;  %v8645_v54 = vld [vmem:[#allocation74_spill] sm:$0xff]  ;;  %v8650_v0 = vld [vmem:[#allocation84_spill] sm:$0xff]  ;;  %v3068_v42 = vmul.f32 %v5885_v25, %v8651_v24  ;;  %v3075_v24 = vmul.f32 %v5885_v25, %v8658_v28  ;;  %v3082_v28 = vmul.f32 %v5885_v25, %v8665_v47 }
 0x2fa   :  { %8638 = vst [vmem:[#allocation155_spill] sm:$0xff] %v6729_v17  ;;  %8639 = vst [vmem:[#allocation157_spill] sm:$0xff] %v6732_v20  ;;  %v3062_v8 = vmul.f32 %v5885_v25, %v8645_v54  ;;  %v8647_v20 = vld [vmem:[#allocation78_spill] sm:$0xff]  ;;  %v3067_v46 = vmul.f32 %v5885_v25, %v8650_v0  ;;  %v3069_v54 = vmul.f32 %v5885_v25, %v8652_v30  ;;  %v8668_v32 = vld [vmem:[#allocation120_spill] sm:$0xff] }
 0x2fb   :  { %8640 = vst [vmem:[#allocation159_spill] sm:$0xff] %v6735_v43  ;;  %v3064_v36 = vmul.f32 %v5885_v25, %v8647_v20  ;;  %v8648_v43 = vld [vmem:[#allocation80_spill] sm:$0xff]  ;;  %v8649_v17 = vld [vmem:[#allocation82_spill] sm:$0xff]  ;;  %v3071_v20 = vmul.f32 %v5885_v25, %v8654_v19  ;;  %v3074_v0 = vmul.f32 %v5885_v25, %v8657_v15  ;;  %v3076_v30 = vmul.f32 %v5885_v25, %v8659_v51 }
 0x2fc   :  { %v3065_v53 = vmul.f32 %v5885_v25, %v8648_v43  ;;  %v3066_v39 = vmul.f32 %v5885_v25, %v8649_v17  ;;  %v8653_v4 = vld [vmem:[#allocation90_spill] sm:$0xff]  ;;  %v3072_v43 = vmul.f32 %v5885_v25, %v8655_v16  ;;  %v3073_v17 = vmul.f32 %v5885_v25, %v8656_v26  ;;  %v8670_v49 = vld [vmem:[#allocation124_spill] sm:$0xff] }
 0x2fd   :  { %v3070_v59 = vmul.f32 %v5885_v25, %v8653_v4  ;;  %v3077_v4 = vmul.f32 %v5885_v25, %v8660_v40  ;;  %v3078_v19 = vmul.f32 %v5885_v25, %v8661_v60  ;;  %v3079_v16 = vmul.f32 %v5885_v25, %v8662_v27 }
 0x2fe   :  { %v3080_v26 = vmul.f32 %v5885_v25, %v8663_v62  ;;  %v3081_v15 = vmul.f32 %v5885_v25, %v8664_v38  ;;  %v3083_v51 = vmul.f32 %v5885_v25, %v8666_v29  ;;  %v3084_v40 = vmul.f32 %v5885_v25, %v8667_v52 }
 0x2ff   :  { %v3085_v60 = vmul.f32 %v5885_v25, %v8668_v32  ;;  %v3086_v27 = vmul.f32 %v5885_v25, %v8669_v63  ;;  %v3087_v62 = vmul.f32 %v5885_v25, %v8670_v49  ;;  %v3088_v38 = vmul.f32 %v5885_v25, %v8671_v21 }
 0x300   :  { %v3089_v47 = vmul.f32 %v5885_v25, %v8672_v33  ;;  %v3090_v29 = vmul.f32 %v5885_v25, %v8673_v22  ;;  %v3091_v52 = vmul.f32 %v5885_v25, %v8674_v18  ;;  %v3092_v32 = vmul.f32 %v5885_v25, %v8675_v44 }
 0x301   :  { %v3093_v63 = vmul.f32 %v5885_v25, %v8676_v9  ;;  %v3094_v49 = vmul.f32 %v5885_v25, %v8677_v7  ;;  %v3095_v21 = vmul.f32 %v5885_v25, %v8678_v14  ;;  %v3096_v33 = vmul.f32 %v5885_v25, %v8679_v6 }
 0x302   :  { %v3097_v22 = vmul.f32 %v5885_v25, %v8680_v12  ;;  %v3098_v18 = vmul.f32 %v5885_v25, %v8681_v61  ;;  %v3099_v44 = vmul.f32 %v5885_v25, %v8682_v34  ;;  %v3100_v9 = vmul.f32 %v5885_v25, %v8683_v5 }
 0x303   :  { %v3101_v7 = vmul.f32 %v5885_v25, %v8684_v56  ;;  %v3102_v14 = vmul.f32 %v5885_v25, %v8685_v2  ;;  %v3103_v6 = vmul.f32 %v5885_v25, %v8686_v55  ;;  %v3104_v12 = vmul.f32 %v5885_v25, %v8687_v37 }
 0x304   :  { %v3105_v61 = vmul.f32 %v5885_v25, %v8688_v45  ;;  %v3106_v34 = vmul.f32 %v5885_v25, %v8689_v35  ;;  %v6885_v5 = vadd.f32 %v3058_v41, %v5985_v1  ;;  %v6888_v56 = vadd.f32 %v3059_v50, %v5985_v1 }
 0x305   :  { %v6891_v2 = vadd.f32 %v3060_v23, %v5985_v1  ;;  %v6894_v55 = vadd.f32 %v3061_v31, %v5985_v1  ;;  %v6897_v37 = vadd.f32 %v3062_v8, %v5985_v1  ;;  %v6900_v45 = vadd.f32 %v3063_v10, %v5985_v1 }
 0x306   :  { %v6903_v25 = vadd.f32 %v3064_v36, %v5985_v1  ;;  %v6906_v35 = vadd.f32 %v3065_v53, %v5985_v1  ;;  %v6909_v50 = vadd.f32 %v3066_v39, %v5985_v1  ;;  %v6912_v23 = vadd.f32 %v3067_v46, %v5985_v1 }
 0x307   :  { %v6915_v31 = vadd.f32 %v3068_v42, %v5985_v1  ;;  %v6918_v8 = vadd.f32 %v3069_v54, %v5985_v1  ;;  %v6921_v10 = vadd.f32 %v3070_v59, %v5985_v1  ;;  %v6924_v36 = vadd.f32 %v3071_v20, %v5985_v1 }
 0x308   :  { %v6927_v41 = vadd.f32 %v3072_v43, %v5985_v1  ;;  %v6930_v53 = vadd.f32 %v3073_v17, %v5985_v1  ;;  %v6933_v39 = vadd.f32 %v3074_v0, %v5985_v1  ;;  %v6936_v46 = vadd.f32 %v3075_v24, %v5985_v1 }
 0x309   :  { %v6939_v42 = vadd.f32 %v3076_v30, %v5985_v1  ;;  %v6942_v54 = vadd.f32 %v3077_v4, %v5985_v1  ;;  %v6945_v59 = vadd.f32 %v3078_v19, %v5985_v1  ;;  %v6948_v20 = vadd.f32 %v3079_v16, %v5985_v1 }
 0x30a   :  { %v6951_v43 = vadd.f32 %v3080_v26, %v5985_v1  ;;  %v6954_v17 = vadd.f32 %v3081_v15, %v5985_v1  ;;  %v6957_v0 = vadd.f32 %v3082_v28, %v5985_v1  ;;  %v6960_v24 = vadd.f32 %v3083_v51, %v5985_v1 }
 0x30b   :  { %v6963_v30 = vadd.f32 %v3084_v40, %v5985_v1  ;;  %v6966_v4 = vadd.f32 %v3085_v60, %v5985_v1  ;;  %v6969_v19 = vadd.f32 %v3086_v27, %v5985_v1  ;;  %v6972_v16 = vadd.f32 %v3087_v62, %v5985_v1 }
 0x30c   :  { %v6975_v26 = vadd.f32 %v3088_v38, %v5985_v1  ;;  %v6978_v15 = vadd.f32 %v3089_v47, %v5985_v1  ;;  %v6981_v28 = vadd.f32 %v3090_v29, %v5985_v1  ;;  %v6984_v51 = vadd.f32 %v3091_v52, %v5985_v1 }
 0x30d   :  { %v6987_v40 = vadd.f32 %v3092_v32, %v5985_v1  ;;  %v6990_v60 = vadd.f32 %v3093_v63, %v5985_v1  ;;  %v6993_v27 = vadd.f32 %v3094_v49, %v5985_v1  ;;  %v6996_v62 = vadd.f32 %v3095_v21, %v5985_v1 }
 0x30e   :  { %v6999_v38 = vadd.f32 %v3096_v33, %v5985_v1  ;;  %v7002_v47 = vadd.f32 %v3097_v22, %v5985_v1  ;;  %v7005_v29 = vadd.f32 %v3098_v18, %v5985_v1  ;;  %v7008_v52 = vadd.f32 %v3099_v44, %v5985_v1 }
 0x30f   :  { %v7011_v32 = vadd.f32 %v3100_v9, %v5985_v1  ;;  %v7014_v63 = vadd.f32 %v3101_v7, %v5985_v1  ;;  %v7017_v49 = vadd.f32 %v3102_v14, %v5985_v1  ;;  %v7020_v21 = vadd.f32 %v3103_v6, %v5985_v1  ;;  %v8699_v9 = vld [vmem:[#allocation41_spill] sm:$0xff]  ;;  %v8702_v6 = vld [vmem:[#allocation7_spill] sm:$0xff] }
 0x310   :  { %v7023_v33 = vadd.f32 %v3104_v12, %v5985_v1  ;;  %v7026_v22 = vadd.f32 %v3105_v61, %v5985_v1  ;;  %v7029_v18 = vadd.f32 %v3106_v34, %v5985_v1  ;;  %v8695_v1 = vmax.f32 %v6293_v57, 0.0  ;;  %v8707_v61 = vld [vmem:[#allocation8_spill] sm:$0xff] }
 0x311   :  { %8690 = vst [vmem:[#allocation161_spill] sm:$0xff] %v7014_v63  ;;  %8691 = vst [vmem:[#allocation66_spill] sm:$0xff] %v7020_v21  ;;  %v8696_v34 = vmax.f32 %v6008_v11, 0.0  ;;  %v8698_v7 = vmax.f32 %v6297_v58, 0.0  ;;  %v8700_v14 = vmax.f32 %v8699_v9, 0.0  ;;  %v8703_v48 = vmax.f32 %v8702_v6, 0.0 }
 0x312   :  { %8692 = vst [vmem:[#allocation68_spill] sm:$0xff] %v7023_v33  ;;  %8693 = vst [vmem:[#allocation70_spill] sm:$0xff] %v7026_v22  ;;  %v8704_v21 = vld [vmem:[#allocation43_spill] sm:$0xff]  ;;  %v8708_v3 = vmax.f32 %v8707_v61, 0.0  ;;  %v8712_v11 = vld [vmem:[#allocation9_spill] sm:$0xff] }
 0x313   :  { %8694 = vst [vmem:[#allocation72_spill] sm:$0xff] %v7029_v18  ;;  %v7084_v44 = vmax.f32 %v8696_v34, %v8695_v1  ;;  %v7090_v63 = vmax.f32 %v8700_v14, %v8698_v7  ;;  %v8705_v12 = vmax.f32 %v8704_v21, 0.0  ;;  %v8709_v18 = vld [vmem:[#allocation45_spill] sm:$0xff]  ;;  %v8713_v1 = vmax.f32 %v8712_v11, 0.0  ;;  %v8714_v34 = vld [vmem:[#allocation47_spill] sm:$0xff]  ;;  %v8717_v9 = vld [vmem:[#allocation10_spill] sm:$0xff] }
 0x314   :  { %v8710_v57 = vmax.f32 %v8709_v18, 0.0  ;;  %v8715_v58 = vmax.f32 %v8714_v34, 0.0  ;;  %v8718_v7 = vmax.f32 %v8717_v9, 0.0  ;;  %v8719_v14 = vld [vmem:[#allocation49_spill] sm:$0xff] }
 0x315   :  { %8697 = vst [vmem:[#allocation74_spill] sm:$0xff] %v7084_v44  ;;  %8701 = vst [vmem:[#allocation76_spill] sm:$0xff] %v7090_v63  ;;  %v7096_v33 = vmax.f32 %v8705_v12, %v8703_v48  ;;  %v8720_v6 = vmax.f32 %v8719_v14, 0.0  ;;  %v8722_v48 = vld [vmem:[#allocation11_spill] sm:$0xff] }
 0x316   :  { %v7102_v22 = vmax.f32 %v8710_v57, %v8708_v3  ;;  %v7108_v44 = vmax.f32 %v8715_v58, %v8713_v1  ;;  %v8723_v21 = vmax.f32 %v8722_v48, 0.0  ;;  %v8724_v12 = vld [vmem:[#allocation51_spill] sm:$0xff]  ;;  %v8727_v3 = vld [vmem:[#allocation12_spill] sm:$0xff]  ;;  %v8729_v57 = vld [vmem:[#allocation53_spill] sm:$0xff] }
 0x317   :  { %8706 = vst [vmem:[#allocation78_spill] sm:$0xff] %v7096_v33  ;;  %v7114_v63 = vmax.f32 %v8720_v6, %v8718_v7  ;;  %v8725_v61 = vmax.f32 %v8724_v12, 0.0  ;;  %v8728_v18 = vmax.f32 %v8727_v3, 0.0  ;;  %v8730_v11 = vmax.f32 %v8729_v57, 0.0  ;;  %v8732_v1 = vld [vmem:[#allocation13_spill] sm:$0xff]  ;;  %v8734_v58 = vld [vmem:[#allocation55_spill] sm:$0xff] }
 0x318   :  { %8711 = vst [vmem:[#allocation80_spill] sm:$0xff] %v7102_v22  ;;  %8716 = vst [vmem:[#allocation82_spill] sm:$0xff] %v7108_v44  ;;  %v8733_v34 = vmax.f32 %v8732_v1, 0.0  ;;  %v8735_v9 = vmax.f32 %v8734_v58, 0.0  ;;  %v8737_v7 = vld [vmem:[#allocation14_spill] sm:$0xff]  ;;  %v8739_v6 = vld [vmem:[#allocation57_spill] sm:$0xff] }
 0x319   :  { %8721 = vst [vmem:[#allocation84_spill] sm:$0xff] %v7114_v63  ;;  %v7120_v33 = vmax.f32 %v8725_v61, %v8723_v21  ;;  %v7126_v22 = vmax.f32 %v8730_v11, %v8728_v18  ;;  %v8738_v14 = vmax.f32 %v8737_v7, 0.0  ;;  %v8740_v48 = vmax.f32 %v8739_v6, 0.0  ;;  %v8742_v21 = vld [vmem:[#allocation15_spill] sm:$0xff]  ;;  %v8747_v18 = vld [vmem:[#allocation16_spill] sm:$0xff]  ;;  %v8749_v11 = vld [vmem:[#allocation61_spill] sm:$0xff] }
 0x31a   :  { %v7132_v44 = vmax.f32 %v8735_v9, %v8733_v34  ;;  %v8743_v12 = vmax.f32 %v8742_v21, 0.0  ;;  %v8744_v61 = vld [vmem:[#allocation59_spill] sm:$0xff]  ;;  %v8748_v57 = vmax.f32 %v8747_v18, 0.0  ;;  %v8750_v1 = vmax.f32 %v8749_v11, 0.0  ;;  %v8752_v34 = vld [vmem:[#allocation17_spill] sm:$0xff] }
 0x31b   :  { %8726 = vst [vmem:[#allocation86_spill] sm:$0xff] %v7120_v33  ;;  %8731 = vst [vmem:[#allocation88_spill] sm:$0xff] %v7126_v22  ;;  %v7138_v63 = vmax.f32 %v8740_v48, %v8738_v14  ;;  %v8745_v3 = vmax.f32 %v8744_v61, 0.0  ;;  %v8753_v58 = vmax.f32 %v8752_v34, 0.0  ;;  %v8754_v9 = vld [vmem:[#allocation63_spill] sm:$0xff]  ;;  %v8757_v14 = vld [vmem:[#allocation18_spill] sm:$0xff] }
 0x31c   :  { %8736 = vst [vmem:[#allocation90_spill] sm:$0xff] %v7132_v44  ;;  %v7150_v22 = vmax.f32 %v8750_v1, %v8748_v57  ;;  %v8755_v7 = vmax.f32 %v8754_v9, 0.0  ;;  %v8758_v6 = vmax.f32 %v8757_v14, 0.0  ;;  %v8759_v48 = vld [vmem:[#allocation2_spill] sm:$0xff]  ;;  %v8767_v57 = vld [vmem:[#allocation20_spill] sm:$0xff] }
 0x31d   :  { %8741 = vst [vmem:[#allocation92_spill] sm:$0xff] %v7138_v63  ;;  %v7144_v33 = vmax.f32 %v8745_v3, %v8743_v12  ;;  %v8760_v21 = vmax.f32 %v8759_v48, 0.0  ;;  %v8762_v12 = vld [vmem:[#allocation19_spill] sm:$0xff]  ;;  %v8768_v11 = vmax.f32 %v8767_v57, 0.0  ;;  %v8769_v1 = vld [vmem:[#allocation4_spill] sm:$0xff] }
 0x31e   :  { %8751 = vst [vmem:[#allocation96_spill] sm:$0xff] %v7150_v22  ;;  %v7156_v44 = vmax.f32 %v8755_v7, %v8753_v58  ;;  %v8763_v61 = vmax.f32 %v8762_v12, 0.0  ;;  %v8764_v3 = vld [vmem:[#allocation3_spill] sm:$0xff]  ;;  %v8770_v34 = vmax.f32 %v8769_v1, 0.0  ;;  %v8772_v58 = vld [vmem:[#allocation21_spill] sm:$0xff] }
 0x31f   :  { %8746 = vst [vmem:[#allocation94_spill] sm:$0xff] %v7144_v33  ;;  %v7162_v63 = vmax.f32 %v8760_v21, %v8758_v6  ;;  %v8765_v18 = vmax.f32 %v8764_v3, 0.0  ;;  %v8773_v9 = vmax.f32 %v8772_v58, 0.0  ;;  %v8774_v7 = vld [vmem:[#allocation5_spill] sm:$0xff]  ;;  %v8777_v6 = vld [vmem:[#allocation22_spill] sm:$0xff] }
 0x320   :  { %8756 = vst [vmem:[#allocation98_spill] sm:$0xff] %v7156_v44  ;;  %v7174_v22 = vmax.f32 %v8770_v34, %v8768_v11  ;;  %v8775_v14 = vmax.f32 %v8774_v7, 0.0  ;;  %v8778_v48 = vmax.f32 %v8777_v6, 0.0  ;;  %v8779_v21 = vld [vmem:[#allocation6_spill] sm:$0xff]  ;;  %v8787_v11 = vld [vmem:[#allocation24_spill] sm:$0xff] }
 0x321   :  { %8761 = vst [vmem:[#allocation100_spill] sm:$0xff] %v7162_v63  ;;  %v7168_v33 = vmax.f32 %v8765_v18, %v8763_v61  ;;  %v8780_v12 = vmax.f32 %v8779_v21, 0.0  ;;  %v8782_v61 = vld [vmem:[#allocation23_spill] sm:$0xff]  ;;  %v8788_v1 = vmax.f32 %v8787_v11, 0.0  ;;  %v8789_v34 = vld [vmem:[#allocation164_spill] sm:$0xff] }
 0x322   :  { %8771 = vst [vmem:[#allocation104_spill] sm:$0xff] %v7174_v22  ;;  %v7180_v44 = vmax.f32 %v8775_v14, %v8773_v9  ;;  %v8783_v3 = vmax.f32 %v8782_v61, 0.0  ;;  %v8784_v18 = vld [vmem:[#allocation163_spill] sm:$0xff]  ;;  %v8790_v58 = vmax.f32 %v8789_v34, 0.0  ;;  %v8792_v9 = vld [vmem:[#allocation25_spill] sm:$0xff] }
 0x323   :  { %8766 = vst [vmem:[#allocation102_spill] sm:$0xff] %v7168_v33  ;;  %v7186_v63 = vmax.f32 %v8780_v12, %v8778_v48  ;;  %v8785_v57 = vmax.f32 %v8784_v18, 0.0  ;;  %v8793_v7 = vmax.f32 %v8792_v9, 0.0  ;;  %v8794_v14 = vld [vmem:[#allocation165_spill] sm:$0xff]  ;;  %v8797_v48 = vld [vmem:[#allocation26_spill] sm:$0xff] }
 0x324   :  { %8776 = vst [vmem:[#allocation106_spill] sm:$0xff] %v7180_v44  ;;  %v7198_v22 = vmax.f32 %v8790_v58, %v8788_v1  ;;  %v8795_v6 = vmax.f32 %v8794_v14, 0.0  ;;  %v8798_v21 = vmax.f32 %v8797_v48, 0.0  ;;  %v8799_v12 = vld [vmem:[#allocation166_spill] sm:$0xff]  ;;  %v8807_v1 = vld [vmem:[#allocation28_spill] sm:$0xff] }
 0x325   :  { %8781 = vst [vmem:[#allocation108_spill] sm:$0xff] %v7186_v63  ;;  %v7192_v33 = vmax.f32 %v8785_v57, %v8783_v3  ;;  %v8800_v61 = vmax.f32 %v8799_v12, 0.0  ;;  %v8802_v3 = vld [vmem:[#allocation27_spill] sm:$0xff]  ;;  %v8808_v34 = vmax.f32 %v8807_v1, 0.0  ;;  %v8809_v58 = vld [vmem:[#allocation168_spill] sm:$0xff] }
 0x326   :  { %8791 = vst [vmem:[#allocation112_spill] sm:$0xff] %v7198_v22  ;;  %v7204_v44 = vmax.f32 %v8795_v6, %v8793_v7  ;;  %v8803_v18 = vmax.f32 %v8802_v3, 0.0  ;;  %v8804_v57 = vld [vmem:[#allocation167_spill] sm:$0xff]  ;;  %v8810_v9 = vmax.f32 %v8809_v58, 0.0  ;;  %v8812_v7 = vld [vmem:[#allocation29_spill] sm:$0xff] }
 0x327   :  { %8786 = vst [vmem:[#allocation110_spill] sm:$0xff] %v7192_v33  ;;  %v7210_v63 = vmax.f32 %v8800_v61, %v8798_v21  ;;  %v8805_v11 = vmax.f32 %v8804_v57, 0.0  ;;  %v8813_v14 = vmax.f32 %v8812_v7, 0.0  ;;  %v8814_v6 = vld [vmem:[#allocation169_spill] sm:$0xff]  ;;  %v8817_v21 = vld [vmem:[#allocation30_spill] sm:$0xff] }
 0x328   :  { %8796 = vst [vmem:[#allocation114_spill] sm:$0xff] %v7204_v44  ;;  %v7222_v22 = vmax.f32 %v8810_v9, %v8808_v34  ;;  %v8815_v48 = vmax.f32 %v8814_v6, 0.0  ;;  %v8818_v12 = vmax.f32 %v8817_v21, 0.0  ;;  %v8819_v61 = vld [vmem:[#allocation170_spill] sm:$0xff]  ;;  %v8827_v34 = vld [vmem:[#allocation32_spill] sm:$0xff] }
 0x329   :  { %8801 = vst [vmem:[#allocation116_spill] sm:$0xff] %v7210_v63  ;;  %v7216_v33 = vmax.f32 %v8805_v11, %v8803_v18  ;;  %v8820_v3 = vmax.f32 %v8819_v61, 0.0  ;;  %v8822_v18 = vld [vmem:[#allocation31_spill] sm:$0xff]  ;;  %v8828_v58 = vmax.f32 %v8827_v34, 0.0  ;;  %v8829_v9 = vld [vmem:[#allocation172_spill] sm:$0xff] }
 0x32a   :  { %8811 = vst [vmem:[#allocation120_spill] sm:$0xff] %v7222_v22  ;;  %v7228_v44 = vmax.f32 %v8815_v48, %v8813_v14  ;;  %v8823_v57 = vmax.f32 %v8822_v18, 0.0  ;;  %v8824_v11 = vld [vmem:[#allocation171_spill] sm:$0xff]  ;;  %v8830_v7 = vmax.f32 %v8829_v9, 0.0  ;;  %v8832_v14 = vld [vmem:[#allocation33_spill] sm:$0xff] }
 0x32b   :  { %8806 = vst [vmem:[#allocation118_spill] sm:$0xff] %v7216_v33  ;;  %v7234_v63 = vmax.f32 %v8820_v3, %v8818_v12  ;;  %v8825_v1 = vmax.f32 %v8824_v11, 0.0  ;;  %v8833_v6 = vmax.f32 %v8832_v14, 0.0  ;;  %v8834_v48 = vld [vmem:[#allocation173_spill] sm:$0xff]  ;;  %v8837_v12 = vld [vmem:[#allocation34_spill] sm:$0xff] }
 0x32c   :  { %8816 = vst [vmem:[#allocation122_spill] sm:$0xff] %v7228_v44  ;;  %v7246_v22 = vmax.f32 %v8830_v7, %v8828_v58  ;;  %v8835_v21 = vmax.f32 %v8834_v48, 0.0  ;;  %v8838_v61 = vmax.f32 %v8837_v12, 0.0  ;;  %v8839_v3 = vld [vmem:[#allocation174_spill] sm:$0xff]  ;;  %v8847_v58 = vld [vmem:[#allocation36_spill] sm:$0xff] }
 0x32d   :  { %8821 = vst [vmem:[#allocation124_spill] sm:$0xff] %v7234_v63  ;;  %v7240_v33 = vmax.f32 %v8825_v1, %v8823_v57  ;;  %v8840_v18 = vmax.f32 %v8839_v3, 0.0  ;;  %v8842_v57 = vld [vmem:[#allocation35_spill] sm:$0xff]  ;;  %v8848_v9 = vmax.f32 %v8847_v58, 0.0  ;;  %v8849_v7 = vld [vmem:[#allocation176_spill] sm:$0xff] }
 0x32e   :  { %8831 = vst [vmem:[#allocation128_spill] sm:$0xff] %v7246_v22  ;;  %v7252_v44 = vmax.f32 %v8835_v21, %v8833_v6  ;;  %v8843_v11 = vmax.f32 %v8842_v57, 0.0  ;;  %v8844_v1 = vld [vmem:[#allocation175_spill] sm:$0xff]  ;;  %v8850_v14 = vmax.f32 %v8849_v7, 0.0  ;;  %v8852_v6 = vld [vmem:[#allocation38_spill] sm:$0xff]  ;;  %v8854_v21 = vld [vmem:[#allocation177_spill] sm:$0xff] }
 0x32f   :  { %8826 = vst [vmem:[#allocation126_spill] sm:$0xff] %v7240_v33  ;;  %v7258_v63 = vmax.f32 %v8840_v18, %v8838_v61  ;;  %v8845_v34 = vmax.f32 %v8844_v1, 0.0  ;;  %v8853_v48 = vmax.f32 %v8852_v6, 0.0  ;;  %v8855_v12 = vmax.f32 %v8854_v21, 0.0  ;;  %v8857_v61 = vld [vmem:[#allocation40_spill] sm:$0xff]  ;;  %v8859_v18 = vld [vmem:[#allocation178_spill] sm:$0xff] }
 0x330   :  { %8836 = vst [vmem:[#allocation130_spill] sm:$0xff] %v7252_v44  ;;  %v7270_v22 = vmax.f32 %v8850_v14, %v8848_v9  ;;  %v8858_v3 = vmax.f32 %v8857_v61, 0.0  ;;  %v8860_v57 = vmax.f32 %v8859_v18, 0.0  ;;  %v8867_v9 = vld [vmem:[#allocation44_spill] sm:$0xff] }
 0x331   :  { %8841 = vst [vmem:[#allocation132_spill] sm:$0xff] %v7258_v63  ;;  %v7264_v33 = vmax.f32 %v8845_v34, %v8843_v11  ;;  %v7276_v44 = vmax.f32 %v8855_v12, %v8853_v48  ;;  %v8862_v11 = vld [vmem:[#allocation42_spill] sm:$0xff]  ;;  %v8864_v34 = vld [vmem:[#allocation179_spill] sm:$0xff]  ;;  %v8868_v7 = vmax.f32 %v8867_v9, 0.0  ;;  %v8869_v14 = vld [vmem:[#allocation180_spill] sm:$0xff] }
 0x332   :  { %8851 = vst [vmem:[#allocation136_spill] sm:$0xff] %v7270_v22  ;;  %v7282_v63 = vmax.f32 %v8860_v57, %v8858_v3  ;;  %v8863_v1 = vmax.f32 %v8862_v11, 0.0  ;;  %v8865_v58 = vmax.f32 %v8864_v34, 0.0  ;;  %v8870_v6 = vmax.f32 %v8869_v14, 0.0  ;;  %v8872_v48 = vld [vmem:[#allocation46_spill] sm:$0xff]  ;;  %v8874_v12 = vld [vmem:[#allocation181_spill] sm:$0xff] }
 0x333   :  { %8846 = vst [vmem:[#allocation134_spill] sm:$0xff] %v7264_v33  ;;  %8856 = vst [vmem:[#allocation138_spill] sm:$0xff] %v7276_v44  ;;  %v8873_v21 = vmax.f32 %v8872_v48, 0.0  ;;  %v8875_v61 = vmax.f32 %v8874_v12, 0.0  ;;  %v8877_v3 = vld [vmem:[#allocation48_spill] sm:$0xff]  ;;  %v8879_v57 = vld [vmem:[#allocation182_spill] sm:$0xff] }
 0x334   :  { %8861 = vst [vmem:[#allocation140_spill] sm:$0xff] %v7282_v63  ;;  %v7288_v33 = vmax.f32 %v8865_v58, %v8863_v1  ;;  %v7294_v22 = vmax.f32 %v8870_v6, %v8868_v7  ;;  %v8878_v18 = vmax.f32 %v8877_v3, 0.0  ;;  %v8880_v11 = vmax.f32 %v8879_v57, 0.0  ;;  %v8882_v1 = vld [vmem:[#allocation50_spill] sm:$0xff]  ;;  %v8884_v58 = vld [vmem:[#allocation183_spill] sm:$0xff]  ;;  %v8887_v7 = vld [vmem:[#allocation52_spill] sm:$0xff] }
 0x335   :  { %v7300_v44 = vmax.f32 %v8875_v61, %v8873_v21  ;;  %v8883_v34 = vmax.f32 %v8882_v1, 0.0  ;;  %v8885_v9 = vmax.f32 %v8884_v58, 0.0  ;;  %v8888_v14 = vmax.f32 %v8887_v7, 0.0  ;;  %v8889_v6 = vld [vmem:[#allocation184_spill] sm:$0xff]  ;;  %v8892_v21 = vld [vmem:[#allocation54_spill] sm:$0xff]  ;;  %v8894_v61 = vld [vmem:[#allocation185_spill] sm:$0xff] }
 0x336   :  { %8866 = vst [vmem:[#allocation142_spill] sm:$0xff] %v7288_v33  ;;  %8871 = vst [vmem:[#allocation144_spill] sm:$0xff] %v7294_v22  ;;  %v7306_v63 = vmax.f32 %v8880_v11, %v8878_v18  ;;  %v8890_v48 = vmax.f32 %v8889_v6, 0.0  ;;  %v8893_v12 = vmax.f32 %v8892_v21, 0.0  ;;  %v8895_v3 = vmax.f32 %v8894_v61, 0.0  ;;  %v8897_v18 = vld [vmem:[#allocation56_spill] sm:$0xff] }
 0x337   :  { %8876 = vst [vmem:[#allocation146_spill] sm:$0xff] %v7300_v44  ;;  %v7312_v33 = vmax.f32 %v8885_v9, %v8883_v34  ;;  %v8898_v57 = vmax.f32 %v8897_v18, 0.0  ;;  %v8899_v11 = vld [vmem:[#allocation186_spill] sm:$0xff]  ;;  %v8904_v9 = vld [vmem:[#allocation187_spill] sm:$0xff] }
 0x338   :  { %8881 = vst [vmem:[#allocation148_spill] sm:$0xff] %v7306_v63  ;;  %v7318_v22 = vmax.f32 %v8890_v48, %v8888_v14  ;;  %v7324_v44 = vmax.f32 %v8895_v3, %v8893_v12  ;;  %v8900_v1 = vmax.f32 %v8899_v11, 0.0  ;;  %v8902_v34 = vld [vmem:[#allocation58_spill] sm:$0xff]  ;;  %v8905_v7 = vmax.f32 %v8904_v9, 0.0  ;;  %v8907_v14 = vld [vmem:[#allocation60_spill] sm:$0xff]  ;;  %v8914_v3 = vld [vmem:[#allocation189_spill] sm:$0xff] }
 0x339   :  { %8886 = vst [vmem:[#allocation150_spill] sm:$0xff] %v7312_v33  ;;  %v8903_v58 = vmax.f32 %v8902_v34, 0.0  ;;  %v8908_v6 = vmax.f32 %v8907_v14, 0.0  ;;  %v8909_v48 = vld [vmem:[#allocation188_spill] sm:$0xff]  ;;  %v8912_v12 = vld [vmem:[#allocation62_spill] sm:$0xff]  ;;  %v8915_v18 = vmax.f32 %v8914_v3, 0.0 }
 0x33a   :  { %8891 = vst [vmem:[#allocation152_spill] sm:$0xff] %v7318_v22  ;;  %8896 = vst [vmem:[#allocation154_spill] sm:$0xff] %v7324_v44  ;;  %v7330_v63 = vmax.f32 %v8900_v1, %v8898_v57  ;;  %v8910_v21 = vmax.f32 %v8909_v48, 0.0  ;;  %v8913_v61 = vmax.f32 %v8912_v12, 0.0  ;;  %v8917_v57 = vld [vmem:[#allocation64_spill] sm:$0xff]  ;;  %v8919_v1 = vld [vmem:[#allocation190_spill] sm:$0xff] }
 0x33b   :  { %v7336_v33 = vmax.f32 %v8905_v7, %v8903_v58  ;;  %v8918_v11 = vmax.f32 %v8917_v57, 0.0  ;;  %v8920_v34 = vmax.f32 %v8919_v1, 0.0  ;;  %v8922_v58 = vld [vmem:[#allocation37_spill] sm:$0xff]  ;;  %v8924_v7 = vld [vmem:[#allocation191_spill] sm:$0xff]  ;;  %v8938_v1 = vmax.f32 %v6591_v13, 0.0 }
 0x33c   :  { %8901 = vst [vmem:[#allocation156_spill] sm:$0xff] %v7330_v63  ;;  %v7342_v22 = vmax.f32 %v8910_v21, %v8908_v6  ;;  %v7348_v44 = vmax.f32 %v8915_v18, %v8913_v61  ;;  %v8923_v9 = vmax.f32 %v8922_v58, 0.0  ;;  %v8925_v14 = vmax.f32 %v8924_v7, 0.0  ;;  %v8927_v6 = vld [vmem:[#allocation39_spill] sm:$0xff]  ;;  %v8929_v21 = vld [vmem:[#allocation192_spill] sm:$0xff]  ;;  %v8932_v61 = vld [vmem:[#allocation194_spill] sm:$0xff] }
 0x33d   :  { %8906 = vst [vmem:[#allocation158_spill] sm:$0xff] %v7336_v33  ;;  %v7354_v63 = vmax.f32 %v8920_v34, %v8918_v11  ;;  %v8928_v48 = vmax.f32 %v8927_v6, 0.0  ;;  %v8930_v12 = vmax.f32 %v8929_v21, 0.0  ;;  %v8933_v3 = vmax.f32 %v8932_v61, 0.0  ;;  %v8934_v18 = vld [vmem:[#allocation193_spill] sm:$0xff] }
 0x33e   :  { %8911 = vst [vmem:[#allocation160_spill] sm:$0xff] %v7342_v22  ;;  %8916 = vst [vmem:[#allocation162_spill] sm:$0xff] %v7348_v44  ;;  %v7360_v33 = vmax.f32 %v8925_v14, %v8923_v9  ;;  %v8935_v57 = vmax.f32 %v8934_v18, 0.0  ;;  %v8937_v11 = vmax.f32 %v6885_v5, 0.0  ;;  %v8939_v58 = vmax.f32 %v6888_v56, 0.0  ;;  %v8940_v9 = vld [vmem:[#allocation65_spill] sm:$0xff] }
 0x33f   :  { %8921 = vst [vmem:[#allocation41_spill] sm:$0xff] %v7354_v63  ;;  %v7366_v22 = vmax.f32 %v8930_v12, %v8928_v48  ;;  %v8941_v7 = vmax.f32 %v8940_v9, 0.0  ;;  %v8942_v6 = vmax.f32 %v6891_v2, 0.0  ;;  %v8943_v48 = vld [vmem:[#allocation67_spill] sm:$0xff]  ;;  %v8945_v61 = vmax.f32 %v6894_v55, 0.0  ;;  %v8946_v18 = vld [vmem:[#allocation69_spill] sm:$0xff] }
 0x340   :  { %8926 = vst [vmem:[#allocation7_spill] sm:$0xff] %v7360_v33  ;;  %v7372_v44 = vmax.f32 %v8935_v57, %v8933_v3  ;;  %v3254_v34 = vmax.f32 %v8938_v1, %v8937_v11  ;;  %v8944_v21 = vmax.f32 %v8943_v48, 0.0  ;;  %v8947_v3 = vmax.f32 %v8946_v18, 0.0  ;;  %v8952_v1 = vld [vmem:[#allocation73_spill] sm:$0xff]  ;;  %v8961_v18 = vld [vmem:[#allocation79_spill] sm:$0xff] }
 0x341   :  { %8931 = vst [vmem:[#allocation43_spill] sm:$0xff] %v7366_v22  ;;  %v3255_v14 = vmax.f32 %v8941_v7, %v8939_v58  ;;  %v8948_v5 = vmax.f32 %v6897_v37, 0.0  ;;  %v8951_v56 = vmax.f32 %v6900_v45, 0.0  ;;  %v8953_v58 = vmax.f32 %v8952_v1, 0.0  ;;  %v8955_v7 = vld [vmem:[#allocation75_spill] sm:$0xff] }
 0x342   :  { %8936 = vst [vmem:[#allocation8_spill] sm:$0xff] %v7372_v44  ;;  %v3256_v12 = vmax.f32 %v8944_v21, %v8942_v6  ;;  %v3257_v57 = vmax.f32 %v8947_v3, %v8945_v61  ;;  %v8949_v44 = vld [vmem:[#allocation71_spill] sm:$0xff]  ;;  %v8954_v2 = vmax.f32 %v6903_v25, 0.0  ;;  %v8956_v6 = vmax.f32 %v8955_v7, 0.0  ;;  %v8958_v21 = vld [vmem:[#allocation77_spill] sm:$0xff] }
 0x343   :  { %v8950_v13 = vmax.f32 %v8949_v44, 0.0  ;;  %v7400_v9 = vmax.f32 %v8953_v58, %v8951_v56  ;;  %v8957_v48 = vmax.f32 %v6906_v35, 0.0  ;;  %v8959_v37 = vmax.f32 %v8958_v21, 0.0  ;;  %v8967_v58 = vld [vmem:[#allocation83_spill] sm:$0xff] }
 0x344   :  { %v7406_v55 = vmax.f32 %v8956_v6, %v8954_v2  ;;  %v8960_v44 = vmax.f32 %v6909_v50, 0.0  ;;  %v8962_v45 = vmax.f32 %v8961_v18, 0.0  ;;  %v8966_v1 = vmax.f32 %v6915_v31, 0.0  ;;  %v8970_v6 = vld [vmem:[#allocation85_spill] sm:$0xff] }
 0x345   :  { %v7394_v11 = vmax.f32 %v8950_v13, %v8948_v5  ;;  %v7412_v61 = vmax.f32 %v8959_v37, %v8957_v48  ;;  %v8963_v5 = vmax.f32 %v6912_v23, 0.0  ;;  %v8964_v13 = vld [vmem:[#allocation81_spill] sm:$0xff]  ;;  %v8968_v35 = vmax.f32 %v8967_v58, 0.0  ;;  %v8973_v37 = vld [vmem:[#allocation87_spill] sm:$0xff] }
 0x346   :  { %v7418_v3 = vmax.f32 %v8962_v45, %v8960_v44  ;;  %v8965_v25 = vmax.f32 %v8964_v13, 0.0  ;;  %v8969_v7 = vmax.f32 %v6918_v8, 0.0  ;;  %v8971_v50 = vmax.f32 %v8970_v6, 0.0  ;;  %v8976_v45 = vld [vmem:[#allocation89_spill] sm:$0xff] }
 0x347   :  { %v7430_v2 = vmax.f32 %v8968_v35, %v8966_v1  ;;  %v8972_v21 = vmax.f32 %v6921_v10, 0.0  ;;  %v8974_v23 = vmax.f32 %v8973_v37, 0.0  ;;  %v8975_v18 = vmax.f32 %v6924_v36, 0.0  ;;  %v8982_v35 = vld [vmem:[#allocation93_spill] sm:$0xff] }
 0x348   :  { %v7424_v56 = vmax.f32 %v8965_v25, %v8963_v5  ;;  %v7436_v48 = vmax.f32 %v8971_v50, %v8969_v7  ;;  %v8977_v31 = vmax.f32 %v8976_v45, 0.0  ;;  %v8978_v13 = vmax.f32 %v6927_v41, 0.0  ;;  %v8979_v25 = vld [vmem:[#allocation91_spill] sm:$0xff] }
 0x349   :  { %v7442_v44 = vmax.f32 %v8974_v23, %v8972_v21  ;;  %v8980_v8 = vmax.f32 %v8979_v25, 0.0  ;;  %v8981_v58 = vmax.f32 %v6930_v53, 0.0  ;;  %v8983_v10 = vmax.f32 %v8982_v35, 0.0  ;;  %v8985_v50 = vld [vmem:[#allocation95_spill] sm:$0xff]  ;;  %v8988_v23 = vld [vmem:[#allocation97_spill] sm:$0xff] }
 0x34a   :  { %v7448_v5 = vmax.f32 %v8977_v31, %v8975_v18  ;;  %v8984_v6 = vmax.f32 %v6933_v39, 0.0  ;;  %v8986_v36 = vmax.f32 %v8985_v50, 0.0  ;;  %v8987_v37 = vmax.f32 %v6936_v46, 0.0  ;;  %v8991_v31 = vld [vmem:[#allocation99_spill] sm:$0xff] }
 0x34b   :  { %v7454_v1 = vmax.f32 %v8980_v8, %v8978_v13  ;;  %v7460_v7 = vmax.f32 %v8983_v10, %v8981_v58  ;;  %v8989_v41 = vmax.f32 %v8988_v23, 0.0  ;;  %v8990_v45 = vmax.f32 %v6939_v42, 0.0  ;;  %v8994_v8 = vld [vmem:[#allocation101_spill] sm:$0xff]  ;;  %v8997_v10 = vld [vmem:[#allocation103_spill] sm:$0xff] }
 0x34c   :  { %v7466_v21 = vmax.f32 %v8986_v36, %v8984_v6  ;;  %v8992_v53 = vmax.f32 %v8991_v31, 0.0  ;;  %v8993_v25 = vmax.f32 %v6942_v54, 0.0  ;;  %v8995_v39 = vmax.f32 %v8994_v8, 0.0  ;;  %v9000_v36 = vld [vmem:[#allocation105_spill] sm:$0xff] }
 0x34d   :  { %v7472_v18 = vmax.f32 %v8989_v41, %v8987_v37  ;;  %v8996_v35 = vmax.f32 %v6945_v59, 0.0  ;;  %v8998_v46 = vmax.f32 %v8997_v10, 0.0  ;;  %v8999_v50 = vmax.f32 %v6948_v20, 0.0  ;;  %v9003_v41 = vld [vmem:[#allocation107_spill] sm:$0xff] }
 0x34e   :  { %v7478_v13 = vmax.f32 %v8992_v53, %v8990_v45  ;;  %v7484_v58 = vmax.f32 %v8995_v39, %v8993_v25  ;;  %v9001_v42 = vmax.f32 %v9000_v36, 0.0  ;;  %v9002_v23 = vmax.f32 %v6951_v43, 0.0  ;;  %v9006_v53 = vld [vmem:[#allocation109_spill] sm:$0xff]  ;;  %v9009_v39 = vld [vmem:[#allocation111_spill] sm:$0xff] }
 0x34f   :  { %v7490_v6 = vmax.f32 %v8998_v46, %v8996_v35  ;;  %v9004_v54 = vmax.f32 %v9003_v41, 0.0  ;;  %v9005_v31 = vmax.f32 %v6954_v17, 0.0  ;;  %v9007_v59 = vmax.f32 %v9006_v53, 0.0  ;;  %v9012_v46 = vld [vmem:[#allocation113_spill] sm:$0xff] }
 0x350   :  { %v7496_v37 = vmax.f32 %v9001_v42, %v8999_v50  ;;  %v9008_v8 = vmax.f32 %v6957_v0, 0.0  ;;  %v9010_v20 = vmax.f32 %v9009_v39, 0.0  ;;  %v9011_v10 = vmax.f32 %v6960_v24, 0.0  ;;  %v9015_v42 = vld [vmem:[#allocation115_spill] sm:$0xff] }
 0x351   :  { %v7502_v45 = vmax.f32 %v9004_v54, %v9002_v23  ;;  %v7508_v25 = vmax.f32 %v9007_v59, %v9005_v31  ;;  %v9013_v43 = vmax.f32 %v9012_v46, 0.0  ;;  %v9014_v36 = vmax.f32 %v6963_v30, 0.0  ;;  %v9018_v54 = vld [vmem:[#allocation117_spill] sm:$0xff]  ;;  %v9021_v59 = vld [vmem:[#allocation119_spill] sm:$0xff] }
 0x352   :  { %v7514_v35 = vmax.f32 %v9010_v20, %v9008_v8  ;;  %v9016_v17 = vmax.f32 %v9015_v42, 0.0  ;;  %v9017_v41 = vmax.f32 %v6966_v4, 0.0  ;;  %v9019_v0 = vmax.f32 %v9018_v54, 0.0  ;;  %v9024_v20 = vld [vmem:[#allocation121_spill] sm:$0xff] }
 0x353   :  { %v7520_v50 = vmax.f32 %v9013_v43, %v9011_v10  ;;  %v9020_v53 = vmax.f32 %v6969_v19, 0.0  ;;  %v9022_v24 = vmax.f32 %v9021_v59, 0.0  ;;  %v9023_v39 = vmax.f32 %v6972_v16, 0.0  ;;  %v9027_v43 = vld [vmem:[#allocation123_spill] sm:$0xff] }
 0x354   :  { %v7526_v23 = vmax.f32 %v9016_v17, %v9014_v36  ;;  %v7532_v31 = vmax.f32 %v9019_v0, %v9017_v41  ;;  %v9025_v30 = vmax.f32 %v9024_v20, 0.0  ;;  %v9026_v46 = vmax.f32 %v6975_v26, 0.0  ;;  %v9030_v17 = vld [vmem:[#allocation125_spill] sm:$0xff]  ;;  %v9033_v0 = vld [vmem:[#allocation127_spill] sm:$0xff] }
 0x355   :  { %v7538_v8 = vmax.f32 %v9022_v24, %v9020_v53  ;;  %v9028_v4 = vmax.f32 %v9027_v43, 0.0  ;;  %v9029_v42 = vmax.f32 %v6978_v15, 0.0  ;;  %v9031_v19 = vmax.f32 %v9030_v17, 0.0  ;;  %v9036_v24 = vld [vmem:[#allocation129_spill] sm:$0xff] }
 0x356   :  { %v7544_v10 = vmax.f32 %v9025_v30, %v9023_v39  ;;  %v9032_v54 = vmax.f32 %v6981_v28, 0.0  ;;  %v9034_v16 = vmax.f32 %v9033_v0, 0.0  ;;  %v9035_v59 = vmax.f32 %v6984_v51, 0.0  ;;  %v9039_v30 = vld [vmem:[#allocation131_spill] sm:$0xff] }
 0x357   :  { %v7550_v36 = vmax.f32 %v9028_v4, %v9026_v46  ;;  %v7556_v41 = vmax.f32 %v9031_v19, %v9029_v42  ;;  %v9037_v26 = vmax.f32 %v9036_v24, 0.0  ;;  %v9038_v20 = vmax.f32 %v6987_v40, 0.0  ;;  %v9042_v4 = vld [vmem:[#allocation133_spill] sm:$0xff]  ;;  %v9045_v19 = vld [vmem:[#allocation135_spill] sm:$0xff] }
 0x358   :  { %v7562_v53 = vmax.f32 %v9034_v16, %v9032_v54  ;;  %v9040_v15 = vmax.f32 %v9039_v30, 0.0  ;;  %v9041_v43 = vmax.f32 %v6990_v60, 0.0  ;;  %v9043_v28 = vmax.f32 %v9042_v4, 0.0  ;;  %v9048_v16 = vld [vmem:[#allocation137_spill] sm:$0xff] }
 0x359   :  { %v7568_v39 = vmax.f32 %v9037_v26, %v9035_v59  ;;  %v9044_v17 = vmax.f32 %v6993_v27, 0.0  ;;  %v9046_v51 = vmax.f32 %v9045_v19, 0.0  ;;  %v9047_v0 = vmax.f32 %v6996_v62, 0.0  ;;  %v9051_v26 = vld [vmem:[#allocation139_spill] sm:$0xff] }
 0x35a   :  { %v7574_v46 = vmax.f32 %v9040_v15, %v9038_v20  ;;  %v7580_v42 = vmax.f32 %v9043_v28, %v9041_v43  ;;  %v9049_v40 = vmax.f32 %v9048_v16, 0.0  ;;  %v9050_v24 = vmax.f32 %v6999_v38, 0.0  ;;  %v9054_v15 = vld [vmem:[#allocation141_spill] sm:$0xff]  ;;  %v9057_v28 = vld [vmem:[#allocation143_spill] sm:$0xff] }
 0x35b   :  { %v7586_v54 = vmax.f32 %v9046_v51, %v9044_v17  ;;  %v9052_v60 = vmax.f32 %v9051_v26, 0.0  ;;  %v9053_v30 = vmax.f32 %v7002_v47, 0.0  ;;  %v9055_v27 = vmax.f32 %v9054_v15, 0.0  ;;  %v9060_v51 = vld [vmem:[#allocation145_spill] sm:$0xff] }
 0x35c   :  { %v7592_v59 = vmax.f32 %v9049_v40, %v9047_v0  ;;  %v9056_v4 = vmax.f32 %v7005_v29, 0.0  ;;  %v9058_v62 = vmax.f32 %v9057_v28, 0.0  ;;  %v9059_v19 = vmax.f32 %v7008_v52, 0.0  ;;  %v9063_v40 = vld [vmem:[#allocation147_spill] sm:$0xff]  ;;  %v9065_v26 = vld [vmem:[#allocation161_spill] sm:$0xff] }
 0x35d   :  { %v7598_v20 = vmax.f32 %v9052_v60, %v9050_v24  ;;  %v7604_v43 = vmax.f32 %v9055_v27, %v9053_v30  ;;  %v9061_v38 = vmax.f32 %v9060_v51, 0.0  ;;  %v9062_v16 = vmax.f32 %v7011_v32, 0.0  ;;  %v9067_v30 = vld [vmem:[#allocation149_spill] sm:$0xff] }
 0x35e   :  { %v7610_v17 = vmax.f32 %v9058_v62, %v9056_v4  ;;  %v9064_v47 = vmax.f32 %v9063_v40, 0.0  ;;  %v9066_v60 = vmax.f32 %v9065_v26, 0.0  ;;  %v9068_v29 = vmax.f32 %v9067_v30, 0.0  ;;  %v9070_v4 = vld [vmem:[#allocation151_spill] sm:$0xff]  ;;  %v9072_v62 = vld [vmem:[#allocation66_spill] sm:$0xff]  ;;  %v9074_v51 = vld [vmem:[#allocation153_spill] sm:$0xff] }
 0x35f   :  { %v7616_v0 = vmax.f32 %v9061_v38, %v9059_v19  ;;  %v9069_v27 = vmax.f32 %v7017_v49, 0.0  ;;  %v9071_v52 = vmax.f32 %v9070_v4, 0.0  ;;  %v9073_v19 = vmax.f32 %v9072_v62, 0.0 }
 0x360   :  { %v7622_v24 = vmax.f32 %v9064_v47, %v9062_v16  ;;  %v7628_v15 = vmax.f32 %v9068_v29, %v9066_v60  ;;  %v9075_v32 = vmax.f32 %v9074_v51, 0.0  ;;  %v9077_v16 = vld [vmem:[#allocation68_spill] sm:$0xff]  ;;  %v9079_v47 = vld [vmem:[#allocation155_spill] sm:$0xff]  ;;  %v9082_v60 = vld [vmem:[#allocation70_spill] sm:$0xff] }
 0x361   :  { %v7634_v28 = vmax.f32 %v9071_v52, %v9069_v27  ;;  %v9078_v40 = vmax.f32 %v9077_v16, 0.0  ;;  %v9080_v26 = vmax.f32 %v9079_v47, 0.0  ;;  %v9083_v30 = vmax.f32 %v9082_v60, 0.0  ;;  %v9084_v29 = vld [vmem:[#allocation157_spill] sm:$0xff]  ;;  %v9086_v27 = vld [vmem:[#allocation72_spill] sm:$0xff]  ;;  %v9088_v52 = vld [vmem:[#allocation159_spill] sm:$0xff] }
 0x362   :  { %v7640_v38 = vmax.f32 %v9075_v32, %v9073_v19  ;;  %v9085_v49 = vmax.f32 %v9084_v29, 0.0  ;;  %v9087_v4 = vmax.f32 %v9086_v27, 0.0  ;;  %v9089_v62 = vmax.f32 %v9088_v52, 0.0  ;;  %v9090_v19 = vld [vmem:[#allocation74_spill] sm:$0xff]  ;;  %v9091_v32 = vld [vmem:[#allocation76_spill] sm:$0xff] }
 0x363   :  { %v7646_v22 = vmax.f32 %v9080_v26, %v9078_v40  ;;  %v3303_v51 = vmax.f32 %v9090_v19, %v3254_v34  ;;  %v3304_v16 = vmax.f32 %v9091_v32, %v3255_v14  ;;  %v9093_v40 = vld [vmem:[#allocation80_spill] sm:$0xff]  ;;  %v9094_v60 = vld [vmem:[#allocation82_spill] sm:$0xff] }
 0x364   :  { %9076 = vst [vmem:[#allocation45_spill] sm:$0xff] %v7640_v38  ;;  %v7652_v33 = vmax.f32 %v9085_v49, %v9083_v30  ;;  %v7658_v63 = vmax.f32 %v9089_v62, %v9087_v4  ;;  %v9092_v38 = vld [vmem:[#allocation78_spill] sm:$0xff]  ;;  %v3306_v26 = vmax.f32 %v9093_v40, %v3257_v57  ;;  %v9095_v30 = vld [vmem:[#allocation84_spill] sm:$0xff] }
 0x365   :  { %9081 = vst [vmem:[#allocation9_spill] sm:$0xff] %v7646_v22  ;;  %v3305_v47 = vmax.f32 %v9092_v38, %v3256_v12  ;;  %v3307_v22 = vmax.f32 %v9094_v60, %v7394_v11  ;;  %v3308_v29 = vmax.f32 %v9095_v30, %v7400_v9  ;;  %v9096_v49 = vld [vmem:[#allocation86_spill] sm:$0xff]  ;;  %v9097_v4 = vld [vmem:[#allocation88_spill] sm:$0xff]  ;;  %3352 = vst [vmem:[%s7908_s7] sm:$0xff] %v3303_v51 }
 0x366   :  { %v3309_v27 = vmax.f32 %v9096_v49, %v7406_v55  ;;  %v3310_v52 = vmax.f32 %v9097_v4, %v7412_v61  ;;  %v9098_v34 = vld [vmem:[#allocation90_spill] sm:$0xff]  ;;  %v9099_v14 = vld [vmem:[#allocation92_spill] sm:$0xff]  ;;  %3353 = vst [vmem:[%s7908_s7 + $0x8] sm:$0xff] %v3304_v16  ;;  %3355 = vst [vmem:[%s7908_s7 + $0x18] sm:$0xff] %v3306_v26 }
 0x367   :  { %v3311_v62 = vmax.f32 %v9098_v34, %v7418_v3  ;;  %v3312_v12 = vmax.f32 %v9099_v14, %v7424_v56  ;;  %v9100_v57 = vld [vmem:[#allocation94_spill] sm:$0xff]  ;;  %v9101_v11 = vld [vmem:[#allocation96_spill] sm:$0xff]  ;;  %3354 = vst [vmem:[%s7908_s7 + $0x10] sm:$0xff] %v3305_v47  ;;  %3356 = vst [vmem:[%s7908_s7 + $0x20] sm:$0xff] %v3307_v22 }
 0x368   :  { %v3313_v38 = vmax.f32 %v9100_v57, %v7430_v2  ;;  %v3314_v19 = vmax.f32 %v9101_v11, %v7436_v48  ;;  %v9102_v9 = vld [vmem:[#allocation98_spill] sm:$0xff]  ;;  %v9103_v61 = vld [vmem:[#allocation100_spill] sm:$0xff]  ;;  %3357 = vst [vmem:[%s7908_s7 + $0x28] sm:$0xff] %v3308_v29  ;;  %3358 = vst [vmem:[%s7908_s7 + $0x30] sm:$0xff] %v3309_v27 }
 0x369   :  { %v3315_v55 = vmax.f32 %v9102_v9, %v7442_v44  ;;  %v3316_v3 = vmax.f32 %v9103_v61, %v7448_v5  ;;  %v9104_v56 = vld [vmem:[#allocation102_spill] sm:$0xff]  ;;  %v9105_v48 = vld [vmem:[#allocation104_spill] sm:$0xff]  ;;  %3359 = vst [vmem:[%s7908_s7 + $0x38] sm:$0xff] %v3310_v52  ;;  %3360 = vst [vmem:[%s7908_s7 + $0x40] sm:$0xff] %v3311_v62 }
 0x36a   :  { %v3317_v2 = vmax.f32 %v9104_v56, %v7454_v1  ;;  %v3318_v51 = vmax.f32 %v9105_v48, %v7460_v7  ;;  %v9106_v44 = vld [vmem:[#allocation106_spill] sm:$0xff]  ;;  %v9107_v1 = vld [vmem:[#allocation108_spill] sm:$0xff]  ;;  %3361 = vst [vmem:[%s7908_s7 + $0x48] sm:$0xff] %v3312_v12  ;;  %3362 = vst [vmem:[%s7908_s7 + $0x50] sm:$0xff] %v3313_v38 }
 0x36b   :  { %v3319_v5 = vmax.f32 %v9106_v44, %v7466_v21  ;;  %v3320_v7 = vmax.f32 %v9107_v1, %v7472_v18  ;;  %v9108_v22 = vld [vmem:[#allocation110_spill] sm:$0xff]  ;;  %v9109_v16 = vld [vmem:[#allocation112_spill] sm:$0xff]  ;;  %3363 = vst [vmem:[%s7908_s7 + $0x58] sm:$0xff] %v3314_v19  ;;  %3364 = vst [vmem:[%s7908_s7 + $0x60] sm:$0xff] %v3315_v55 }
 0x36c   :  { %v3321_v32 = vmax.f32 %v9108_v22, %v7478_v13  ;;  %v3322_v47 = vmax.f32 %v9109_v16, %v7484_v58  ;;  %v9110_v21 = vld [vmem:[#allocation114_spill] sm:$0xff]  ;;  %v9111_v13 = vld [vmem:[#allocation116_spill] sm:$0xff]  ;;  %3365 = vst [vmem:[%s7908_s7 + $0x68] sm:$0xff] %v3316_v3  ;;  %3366 = vst [vmem:[%s7908_s7 + $0x70] sm:$0xff] %v3317_v2 }
 0x36d   :  { %v3323_v18 = vmax.f32 %v9110_v21, %v7490_v6  ;;  %v3324_v58 = vmax.f32 %v9111_v13, %v7496_v37  ;;  %v9112_v40 = vld [vmem:[#allocation118_spill] sm:$0xff]  ;;  %v9113_v60 = vld [vmem:[#allocation120_spill] sm:$0xff]  ;;  %3367 = vst [vmem:[%s7908_s7 + $0x78] sm:$0xff] %v3318_v51  ;;  %3368 = vst [vmem:[%s7908_s7 + $0x80] sm:$0xff] %v3319_v5 }
 0x36e   :  { %v3325_v26 = vmax.f32 %v9112_v40, %v7502_v45  ;;  %v3326_v30 = vmax.f32 %v9113_v60, %v7508_v25  ;;  %v9114_v6 = vld [vmem:[#allocation122_spill] sm:$0xff]  ;;  %v9115_v45 = vld [vmem:[#allocation124_spill] sm:$0xff]  ;;  %3369 = vst [vmem:[%s7908_s7 + $0x88] sm:$0xff] %v3320_v7  ;;  %3370 = vst [vmem:[%s7908_s7 + $0x90] sm:$0xff] %v3321_v32 }
 0x36f   :  { %v3327_v37 = vmax.f32 %v9114_v6, %v7514_v35  ;;  %v3328_v25 = vmax.f32 %v9115_v45, %v7520_v50  ;;  %v9116_v29 = vld [vmem:[#allocation126_spill] sm:$0xff]  ;;  %v9117_v27 = vld [vmem:[#allocation128_spill] sm:$0xff]  ;;  %3371 = vst [vmem:[%s7908_s7 + $0x98] sm:$0xff] %v3322_v47  ;;  %3372 = vst [vmem:[%s7908_s7 + $0xa0] sm:$0xff] %v3323_v18 }
 0x370   :  { %v3329_v49 = vmax.f32 %v9116_v29, %v7526_v23  ;;  %v3330_v4 = vmax.f32 %v9117_v27, %v7532_v31  ;;  %v9118_v35 = vld [vmem:[#allocation130_spill] sm:$0xff]  ;;  %v9119_v23 = vld [vmem:[#allocation132_spill] sm:$0xff]  ;;  %3373 = vst [vmem:[%s7908_s7 + $0xa8] sm:$0xff] %v3324_v58  ;;  %3374 = vst [vmem:[%s7908_s7 + $0xb0] sm:$0xff] %v3325_v26 }
 0x371   :  { %v3331_v50 = vmax.f32 %v9118_v35, %v7538_v8  ;;  %v3332_v31 = vmax.f32 %v9119_v23, %v7544_v10  ;;  %v9120_v52 = vld [vmem:[#allocation134_spill] sm:$0xff]  ;;  %v9121_v62 = vld [vmem:[#allocation136_spill] sm:$0xff]  ;;  %3375 = vst [vmem:[%s7908_s7 + $0xb8] sm:$0xff] %v3326_v30  ;;  %3376 = vst [vmem:[%s7908_s7 + $0xc0] sm:$0xff] %v3327_v37 }
 0x372   :  { %v3333_v34 = vmax.f32 %v9120_v52, %v7550_v36  ;;  %v3334_v14 = vmax.f32 %v9121_v62, %v7556_v41  ;;  %v9122_v8 = vld [vmem:[#allocation138_spill] sm:$0xff]  ;;  %v9123_v36 = vld [vmem:[#allocation140_spill] sm:$0xff]  ;;  %3377 = vst [vmem:[%s7908_s7 + $0xc8] sm:$0xff] %v3328_v25  ;;  %3378 = vst [vmem:[%s7908_s7 + $0xd0] sm:$0xff] %v3329_v49 }
 0x373   :  { %v3335_v10 = vmax.f32 %v9122_v8, %v7562_v53  ;;  %v3336_v41 = vmax.f32 %v9123_v36, %v7568_v39  ;;  %v9124_v12 = vld [vmem:[#allocation142_spill] sm:$0xff]  ;;  %v9125_v38 = vld [vmem:[#allocation144_spill] sm:$0xff]  ;;  %3379 = vst [vmem:[%s7908_s7 + $0xd8] sm:$0xff] %v3330_v4  ;;  %3380 = vst [vmem:[%s7908_s7 + $0xe0] sm:$0xff] %v3331_v50 }
 0x374   :  { %v3337_v57 = vmax.f32 %v9124_v12, %v7574_v46  ;;  %v3338_v11 = vmax.f32 %v9125_v38, %v7580_v42  ;;  %v9126_v53 = vld [vmem:[#allocation146_spill] sm:$0xff]  ;;  %v9127_v46 = vld [vmem:[#allocation148_spill] sm:$0xff]  ;;  %3381 = vst [vmem:[%s7908_s7 + $0xe8] sm:$0xff] %v3332_v31  ;;  %3382 = vst [vmem:[%s7908_s7 + $0xf0] sm:$0xff] %v3333_v34 }
 0x375   :  { %v3339_v39 = vmax.f32 %v9126_v53, %v7586_v54  ;;  %v3340_v42 = vmax.f32 %v9127_v46, %v7592_v59  ;;  %v9128_v19 = vld [vmem:[#allocation150_spill] sm:$0xff]  ;;  %v9129_v55 = vld [vmem:[#allocation152_spill] sm:$0xff]  ;;  %3383 = vst [vmem:[%s7908_s7 + $0xf8] sm:$0xff] %v3334_v14  ;;  %3384 = vst [vmem:[%s7908_s7 + $0x100] sm:$0xff] %v3335_v10 }
 0x376   :  { %v3341_v9 = vmax.f32 %v9128_v19, %v7598_v20  ;;  %v3342_v61 = vmax.f32 %v9129_v55, %v7604_v43  ;;  %v9130_v54 = vld [vmem:[#allocation154_spill] sm:$0xff]  ;;  %v9131_v20 = vld [vmem:[#allocation156_spill] sm:$0xff]  ;;  %3385 = vst [vmem:[%s7908_s7 + $0x108] sm:$0xff] %v3336_v41  ;;  %3386 = vst [vmem:[%s7908_s7 + $0x110] sm:$0xff] %v3337_v57 }
 0x377   :  { %v3343_v59 = vmax.f32 %v9130_v54, %v7610_v17  ;;  %v3344_v43 = vmax.f32 %v9131_v20, %v7616_v0  ;;  %v9132_v3 = vld [vmem:[#allocation158_spill] sm:$0xff]  ;;  %v9133_v2 = vld [vmem:[#allocation160_spill] sm:$0xff]  ;;  %3387 = vst [vmem:[%s7908_s7 + $0x118] sm:$0xff] %v3338_v11  ;;  %v9137_v44 = vld [vmem:[#allocation9_spill] sm:$0xff] }
 0x378   :  { %v3345_v56 = vmax.f32 %v9132_v3, %v7622_v24  ;;  %v3346_v48 = vmax.f32 %v9133_v2, %v7628_v15  ;;  %v9134_v17 = vld [vmem:[#allocation162_spill] sm:$0xff]  ;;  %v9135_v24 = vld [vmem:[#allocation45_spill] sm:$0xff]  ;;  %v9138_v5 = vld [vmem:[#allocation7_spill] sm:$0xff]  ;;  %3388 = vst [vmem:[%s7908_s7 + $0x120] sm:$0xff] %v3339_v39 }
 0x379   :  { %v3347_v0 = vmax.f32 %v9134_v17, %v7634_v28  ;;  %v9136_v15 = vld [vmem:[#allocation41_spill] sm:$0xff]  ;;  %v3349_v1 = vmax.f32 %v9138_v5, %v9137_v44  ;;  %v9139_v7 = vld [vmem:[#allocation43_spill] sm:$0xff]  ;;  %3389 = vst [vmem:[%s7908_s7 + $0x128] sm:$0xff] %v3340_v42  ;;  %3390 = vst [vmem:[%s7908_s7 + $0x130] sm:$0xff] %v3341_v9 }
 0x37a   :  { %v3348_v51 = vmax.f32 %v9136_v15, %v9135_v24  ;;  %v3350_v22 = vmax.f32 %v9139_v7, %v7652_v33  ;;  %3391 = vst [vmem:[%s7908_s7 + $0x138] sm:$0xff] %v3342_v61  ;;  %v9140_v28 = vld [vmem:[#allocation8_spill] sm:$0xff]  ;;  %3392 = vst [vmem:[%s7908_s7 + $0x140] sm:$0xff] %v3343_v59 }
 0x37b   :  { %v3351_v32 = vmax.f32 %v9140_v28, %v7658_v63  ;;  %3393 = vst [vmem:[%s7908_s7 + $0x148] sm:$0xff] %v3344_v43  ;;  %3394 = vst [vmem:[%s7908_s7 + $0x150] sm:$0xff] %v3345_v56 }
 0x37c   :  { %3395 = vst [vmem:[%s7908_s7 + $0x158] sm:$0xff] %v3346_v48  ;;  %3396 = vst [vmem:[%s7908_s7 + $0x160] sm:$0xff] %v3347_v0 }
 0x37d   :  { %3397 = vst [vmem:[%s7908_s7 + $0x168] sm:$0xff] %v3348_v51  ;;  %3398 = vst [vmem:[%s7908_s7 + $0x170] sm:$0xff] %v3349_v1 }
 0x37e   :  { %3399 = vst [vmem:[%s7908_s7 + $0x178] sm:$0xff] %v3350_v22  ;;  %3400 = vst [vmem:[%s7908_s7 + $0x180] sm:$0xff] %v3351_v32 }

// kernel: lenet5_forward.4
= control target key start
LH: loop header
LB: loop body
LE: loop exit
PB: predicated region body
PF: predicated region fallthrough
CT: control target
= control target key end

     0   :  { %v995_v0 = vmov 0   ;;  %vm167_vm0 = vcmask 588800   ;;  %vm180_vm1 = vcmask 1043456   ;;  %vm601_vm2 = vcmask 1041408   ;;  %s1592_s4 = inlined_call_operand.vmem [shape: bf16[200,128], index: 4, kind: input, shape index: {}]   ;;  %s1593_s0 = inlined_call_operand.vmem [shape: bf16[50,200], index: 0, kind: input, shape index: {}]   ;;  %s1594_s1 = inlined_call_operand.vmem [shape: bf16[50,200], index: 1, kind: input, shape index: {}]   ;;  %s1595_s2 = inlined_call_operand.vmem [shape: bf16[50,200], index: 2, kind: input, shape index: {}]   ;;  %s1596_s3 = inlined_call_operand.vmem [shape: bf16[50,200], index: 3, kind: input, shape index: {}]   ;;  %s1597_s5 = inlined_call_operand.vmem [shape: f32[1,128], index: 5, kind: input, shape index: {}]   ;;  %s1598_s6 = inlined_call_operand.vmem [shape: f32[1,128], index: 6, kind: input, shape index: {}]   ;;  %s1599_s7 = inlined_call_operand.vmem [shape: f32[50,128], index: 7, kind: output, shape index: {}]  }
   0x1   :  { %184 = vmatprep.subr.bf16.mxu0 %v995_v0  ;;  %300 = vmatprep.subr.bf16.mxu1 %v995_v0  ;;  %v1041_v1 = vld [vmem:[%s1592_s4] sm:$0xff]   ;;  %v1048_v2 = vld [vmem:[%s1592_s4 + $0x8] sm:$0xff]   ;;  %v1057_v3 = vld [vmem:[%s1592_s4 + $0x10] sm:$0xff]  }
   0x2   :  { %185 = vmatpush1.bf16.msra.mxu0 %v1041_v1  ;;  %301 = vmatpush1.bf16.msra.mxu1 %v1041_v1  ;;  %v1066_v4 = vld [vmem:[%s1592_s4 + $0x18] sm:$0xff]   ;;  %v951_v5 = vld [vmem:[%s1593_s0 + $0x4] ss:$8 sps:$4 sm:$0xff]   ;;  %v1101_v9 = vld [vmem:[%s1592_s4 + $0x30] sm:$0xff]  }
   0x3   :  { %186 = vmatprep.subr.bf16.mxu0 %v995_v0  ;;  %302 = vmatprep.subr.bf16.mxu1 %v995_v0  ;;  %v1078_v6 = vld [vmem:[%s1592_s4 + $0x20] sm:$0xff]   ;;  %v1092_v8 = vld [vmem:[%s1592_s4 + $0x28] sm:$0xff]   ;;  %v1110_v10 = vld [vmem:[%s1592_s4 + $0x38] sm:$0xff]  }
   0x4   :  { %v954_v7 = vld [vmem:[%s1594_s1 + $0x4] ss:$8 sps:$4 sm:$0xff]   ;;  %895 = vmatprep.mubr.msk.bf16.mxu0 %vm167_vm0, %v951_v5  ;;  %v1137_v13 = vld [vmem:[%s1592_s4 + $0x50] sm:$0xff]   ;;  %v1146_v14 = vld [vmem:[%s1592_s4 + $0x58] sm:$0xff]  }
   0x5   :  { %907 = vmatprep.mubr.msk.bf16.mxu1 %vm167_vm0, %v954_v7  ;;  %v1119_v11 = vld [vmem:[%s1592_s4 + $0x40] sm:$0xff]   ;;  %v1128_v12 = vld [vmem:[%s1592_s4 + $0x48] sm:$0xff]   ;;  %v955_v19 = vld [vmem:[%s1593_s0 + $0x14] ss:$8 sps:$4 sm:$0xff]  }
   0x6   :  { %187 = vmatpush1.bf16.msra.mxu0 %v1048_v2  ;;  %303 = vmatpush1.bf16.msra.mxu1 %v1048_v2  ;;  %v948_v15 = vld [vmem:[%s1592_s4 + $0x60] ss:$0 sps:$4 sm:$0xff]   ;;  %v957_v20 = vld [vmem:[%s1594_s1 + $0x14] ss:$8 sps:$4 sm:$0xff]   ;;  %v959_v21 = vld [vmem:[%s1593_s0 + $0x10] ss:$8 sps:$4 sm:$0xff]  }
   0x7   :  { %188 = vmatprep.subr.bf16.mxu0 %v995_v0  ;;  %304 = vmatprep.subr.bf16.mxu1 %v995_v0  ;;  %v1157_v16 = vsel %vm180_vm1, %v948_v15, 0  ;;  %v949_v17 = vld [vmem:[%s1593_s0] ss:$8 sps:$4 sm:$0xff]   ;;  %v960_v22 = vld [vmem:[%s1594_s1 + $0x10] ss:$8 sps:$4 sm:$0xff]  }
   0x8   :  { %v952_v18 = vld [vmem:[%s1594_s1] ss:$8 sps:$4 sm:$0xff]   ;;  %v961_v23 = vld [vmem:[%s1593_s0 + $0x24] ss:$8 sps:$4 sm:$0xff]   ;;  %v58_v27 = vld [vmem:[%s1593_s0 + $0x30] sm:$0x11] }
   0x9   :  { %v963_v24 = vld [vmem:[%s1594_s1 + $0x24] ss:$8 sps:$4 sm:$0xff]   ;;  %v965_v25 = vld [vmem:[%s1593_s0 + $0x20] ss:$8 sps:$4 sm:$0xff]   ;;  %v254_v28 = vld [vmem:[%s1594_s1 + $0x30] sm:$0x11]  ;;  %v881_v29 = vcombine.high %v58_v27, %v58_v27  ;;  %v880_v31 = vcombine.low %v58_v27, %v58_v27 }
   0xa   :  { %189 = vmatpush1.bf16.msra.mxu0 %v1057_v3  ;;  %305 = vmatpush1.bf16.msra.mxu1 %v1057_v3  ;;  %v966_v26 = vld [vmem:[%s1594_s1 + $0x20] ss:$8 sps:$4 sm:$0xff]   ;;  %v906_v30 = vcombine.high %v254_v28, %v254_v28  ;;  %v905_v32 = vcombine.low %v254_v28, %v254_v28  ;;  %v973_v33 = vld [vmem:[%s1595_s2 + $0x4] ss:$8 sps:$4 sm:$0xff]   ;;  %v977_v37 = vld [vmem:[%s1595_s2 + $0x14] ss:$8 sps:$4 sm:$0xff]  }
   0xb   :  { %190 = vmatprep.subr.bf16.mxu0 %v995_v0  ;;  %306 = vmatprep.subr.bf16.mxu1 %v995_v0  ;;  %v976_v34 = vld [vmem:[%s1596_s3 + $0x4] ss:$8 sps:$4 sm:$0xff]   ;;  %v971_v35 = vld [vmem:[%s1595_s2] ss:$8 sps:$4 sm:$0xff]   ;;  %v979_v38 = vld [vmem:[%s1596_s3 + $0x14] ss:$8 sps:$4 sm:$0xff]  }
   0xc   :  { %v974_v36 = vld [vmem:[%s1596_s3] ss:$8 sps:$4 sm:$0xff]   ;;  %v981_v39 = vld [vmem:[%s1595_s2 + $0x10] ss:$8 sps:$4 sm:$0xff]   ;;  %v983_v41 = vld [vmem:[%s1595_s2 + $0x24] ss:$8 sps:$4 sm:$0xff]  }
   0xd   :  { %v982_v40 = vld [vmem:[%s1596_s3 + $0x10] ss:$8 sps:$4 sm:$0xff]   ;;  %v985_v42 = vld [vmem:[%s1596_s3 + $0x24] ss:$8 sps:$4 sm:$0xff]   ;;  %v987_v45 = vld [vmem:[%s1595_s2 + $0x20] ss:$8 sps:$4 sm:$0xff]  }
   0xe   :  { %191 = vmatpush1.bf16.msra.mxu0 %v1066_v4  ;;  %307 = vmatpush1.bf16.msra.mxu1 %v1066_v4  ;;  %v370_v43 = vld [vmem:[%s1595_s2 + $0x30] sm:$0x11]  ;;  %v988_v46 = vld [vmem:[%s1596_s3 + $0x20] ss:$8 sps:$4 sm:$0xff]  }
   0xf   :  { %192 = vmatprep.subr.bf16.mxu0 %v995_v0  ;;  %308 = vmatprep.subr.bf16.mxu1 %v995_v0  ;;  %v486_v44 = vld [vmem:[%s1596_s3 + $0x30] sm:$0x11]  ;;  %v918_v47 = vcombine.high %v370_v43, %v370_v43  ;;  %v917_v49 = vcombine.low %v370_v43, %v370_v43 }
  0x10   :  { %v930_v48 = vcombine.high %v486_v44, %v486_v44  ;;  %v929_v50 = vcombine.low %v486_v44, %v486_v44 }
  0x12   :  { %193 = vmatpush1.bf16.msra.mxu0 %v1078_v6  ;;  %309 = vmatpush1.bf16.msra.mxu1 %v1078_v6 }
  0x13   :  { %194 = vmatprep.subr.bf16.mxu0 %v995_v0  ;;  %310 = vmatprep.subr.bf16.mxu1 %v995_v0 }
  0x16   :  { %195 = vmatpush1.bf16.msra.mxu0 %v1092_v8  ;;  %311 = vmatpush1.bf16.msra.mxu1 %v1092_v8 }
  0x17   :  { %196 = vmatprep.subr.bf16.mxu0 %v995_v0  ;;  %312 = vmatprep.subr.bf16.mxu1 %v995_v0 }
  0x1a   :  { %197 = vmatpush1.bf16.msra.mxu0 %v1101_v9  ;;  %313 = vmatpush1.bf16.msra.mxu1 %v1101_v9 }
  0x1b   :  { %198 = vmatprep.subr.bf16.mxu0 %v995_v0  ;;  %314 = vmatprep.subr.bf16.mxu1 %v995_v0 }
  0x1e   :  { %199 = vmatpush1.bf16.msra.mxu0 %v1110_v10  ;;  %315 = vmatpush1.bf16.msra.mxu1 %v1110_v10 }
  0x1f   :  { %200 = vmatprep.subr.bf16.mxu0 %v995_v0  ;;  %316 = vmatprep.subr.bf16.mxu1 %v995_v0 }
  0x22   :  { %201 = vmatpush1.bf16.msra.mxu0 %v1119_v11  ;;  %317 = vmatpush1.bf16.msra.mxu1 %v1119_v11 }
  0x23   :  { %202 = vmatprep.subr.bf16.mxu0 %v995_v0  ;;  %318 = vmatprep.subr.bf16.mxu1 %v995_v0 }
  0x26   :  { %203 = vmatpush1.bf16.msra.mxu0 %v1128_v12  ;;  %319 = vmatpush1.bf16.msra.mxu1 %v1128_v12 }
  0x27   :  { %204 = vmatprep.subr.bf16.mxu0 %v995_v0  ;;  %320 = vmatprep.subr.bf16.mxu1 %v995_v0 }
  0x2a   :  { %205 = vmatpush1.bf16.msra.mxu0 %v1137_v13  ;;  %321 = vmatpush1.bf16.msra.mxu1 %v1137_v13 }
  0x2b   :  { %206 = vmatprep.subr.bf16.mxu0 %v995_v0  ;;  %322 = vmatprep.subr.bf16.mxu1 %v995_v0 }
  0x2e   :  { %207 = vmatpush1.bf16.msra.mxu0 %v1146_v14  ;;  %323 = vmatpush1.bf16.msra.mxu1 %v1146_v14 }
  0x2f   :  { %208 = vmatprep.subr.bf16.mxu0 %v995_v0  ;;  %324 = vmatprep.subr.bf16.mxu1 %v995_v0 }
  0x32   :  { %209 = vmatpush1.bf16.msra.mxu0 %v1157_v16  ;;  %325 = vmatpush1.bf16.msra.mxu1 %v1157_v16 }
  0x33   :  { %416 = vmatprep.subr.bf16.mxu0 %v995_v0  ;;  %532 = vmatprep.subr.bf16.mxu1 %v995_v0 }
  0x35   :  { %217 = vmatmul.mubr.bf16.vlgmr.msra.gmra.mrb[0].mxu0 %v949_v17  ;;  %333 = vmatmul.mubr.bf16.vlgmr.msra.gmra.mrb[0].mxu1 %v952_v18 }
  0x36   :  { %417 = vmatpush1.bf16.msra.mxu0 %v1041_v1  ;;  %533 = vmatpush1.bf16.msra.mxu1 %v1041_v1 }
  0x37   :  { %418 = vmatprep.subr.bf16.mxu0 %v995_v0  ;;  %534 = vmatprep.subr.bf16.mxu1 %v995_v0 }
  0x38   :  { %896 = vmatprep.mubr.msk.bf16.mxu0 %vm167_vm0, %v955_v19  ;;  %908 = vmatprep.mubr.msk.bf16.mxu1 %vm167_vm0, %v957_v20 }
  0x3a   :  { %419 = vmatpush1.bf16.msra.mxu0 %v1048_v2  ;;  %535 = vmatpush1.bf16.msra.mxu1 %v1048_v2 }
  0x3b   :  { %420 = vmatprep.subr.bf16.mxu0 %v995_v0  ;;  %536 = vmatprep.subr.bf16.mxu1 %v995_v0 }
  0x3d   :  { %225 = vmatmul.mubr.bf16.gmra.mrb[4].mxu0 %v959_v21  ;;  %341 = vmatmul.mubr.bf16.gmra.mrb[4].mxu1 %v960_v22 }
  0x3e   :  { %421 = vmatpush1.bf16.msra.mxu0 %v1057_v3  ;;  %537 = vmatpush1.bf16.msra.mxu1 %v1057_v3 }
  0x3f   :  { %422 = vmatprep.subr.bf16.mxu0 %v995_v0  ;;  %538 = vmatprep.subr.bf16.mxu1 %v995_v0 }
  0x40   :  { %897 = vmatprep.mubr.msk.bf16.mxu0 %vm167_vm0, %v961_v23  ;;  %909 = vmatprep.mubr.msk.bf16.mxu1 %vm167_vm0, %v963_v24 }
  0x42   :  { %423 = vmatpush1.bf16.msra.mxu0 %v1066_v4  ;;  %539 = vmatpush1.bf16.msra.mxu1 %v1066_v4 }
  0x43   :  { %424 = vmatprep.subr.bf16.mxu0 %v995_v0  ;;  %540 = vmatprep.subr.bf16.mxu1 %v995_v0 }
  0x45   :  { %233 = vmatmul.mubr.bf16.gmra.mrb[8].mxu0 %v965_v25  ;;  %349 = vmatmul.mubr.bf16.gmra.mrb[8].mxu1 %v966_v26 }
  0x46   :  { %425 = vmatpush1.bf16.msra.mxu0 %v1078_v6  ;;  %541 = vmatpush1.bf16.msra.mxu1 %v1078_v6 }
  0x47   :  { %426 = vmatprep.subr.bf16.mxu0 %v995_v0  ;;  %542 = vmatprep.subr.bf16.mxu1 %v995_v0 }
  0x48   :  { %898 = vmatprep.mubr.msk.bf16.mxu0 %vm167_vm0, %v881_v29  ;;  %910 = vmatprep.mubr.msk.bf16.mxu1 %vm167_vm0, %v906_v30 }
  0x4a   :  { %427 = vmatpush1.bf16.msra.mxu0 %v1092_v8  ;;  %543 = vmatpush1.bf16.msra.mxu1 %v1092_v8 }
  0x4b   :  { %428 = vmatprep.subr.bf16.mxu0 %v995_v0  ;;  %544 = vmatprep.subr.bf16.mxu1 %v995_v0 }
  0x4d   :  { %241 = vmatmul.mubr.bf16.gmra.mrb[12].mxu0 %v880_v31  ;;  %357 = vmatmul.mubr.bf16.gmra.mrb[12].mxu1 %v905_v32 }
  0x4e   :  { %429 = vmatpush1.bf16.msra.mxu0 %v1101_v9  ;;  %545 = vmatpush1.bf16.msra.mxu1 %v1101_v9 }
  0x4f   :  { %430 = vmatprep.subr.bf16.mxu0 %v995_v0  ;;  %546 = vmatprep.subr.bf16.mxu1 %v995_v0 }
  0x50   :  { %919 = vmatprep.mubr.msk.bf16.mxu0 %vm167_vm0, %v973_v33  ;;  %931 = vmatprep.mubr.msk.bf16.mxu1 %vm167_vm0, %v976_v34 }
  0x52   :  { %431 = vmatpush1.bf16.msra.mxu0 %v1110_v10  ;;  %547 = vmatpush1.bf16.msra.mxu1 %v1110_v10 }
  0x53   :  { %432 = vmatprep.subr.bf16.mxu0 %v995_v0  ;;  %548 = vmatprep.subr.bf16.mxu1 %v995_v0 }
  0x56   :  { %433 = vmatpush1.bf16.msra.mxu0 %v1119_v11  ;;  %549 = vmatpush1.bf16.msra.mxu1 %v1119_v11 }
  0x57   :  { %434 = vmatprep.subr.bf16.mxu0 %v995_v0  ;;  %550 = vmatprep.subr.bf16.mxu1 %v995_v0 }
  0x5a   :  { %435 = vmatpush1.bf16.msra.mxu0 %v1128_v12  ;;  %551 = vmatpush1.bf16.msra.mxu1 %v1128_v12 }
  0x5b   :  { %436 = vmatprep.subr.bf16.mxu0 %v995_v0  ;;  %552 = vmatprep.subr.bf16.mxu1 %v995_v0 }
  0x5e   :  { %437 = vmatpush1.bf16.msra.mxu0 %v1137_v13  ;;  %553 = vmatpush1.bf16.msra.mxu1 %v1137_v13 }
  0x5f   :  { %438 = vmatprep.subr.bf16.mxu0 %v995_v0  ;;  %554 = vmatprep.subr.bf16.mxu1 %v995_v0 }
  0x62   :  { %439 = vmatpush1.bf16.msra.mxu0 %v1146_v14  ;;  %555 = vmatpush1.bf16.msra.mxu1 %v1146_v14 }
  0x63   :  { %440 = vmatprep.subr.bf16.mxu0 %v995_v0  ;;  %556 = vmatprep.subr.bf16.mxu1 %v995_v0 }
  0x66   :  { %441 = vmatpush1.bf16.msra.mxu0 %v1157_v16  ;;  %557 = vmatpush1.bf16.msra.mxu1 %v1157_v16 }
  0x69   :  { %449 = vmatmul.mubr.bf16.vlgmr.msra.gmra.mrb[16].mxu0 %v971_v35  ;;  %565 = vmatmul.mubr.bf16.vlgmr.msra.gmra.mrb[16].mxu1 %v974_v36 }
  0x6a   :  { %920 = vmatprep.mubr.msk.bf16.mxu0 %vm167_vm0, %v977_v37  ;;  %932 = vmatprep.mubr.msk.bf16.mxu1 %vm167_vm0, %v979_v38 }
  0x71   :  { %457 = vmatmul.mubr.bf16.gmra.mrb[20].mxu0 %v981_v39  ;;  %573 = vmatmul.mubr.bf16.gmra.mrb[20].mxu1 %v982_v40 }
  0x72   :  { %921 = vmatprep.mubr.msk.bf16.mxu0 %vm167_vm0, %v983_v41  ;;  %933 = vmatprep.mubr.msk.bf16.mxu1 %vm167_vm0, %v985_v42 }
  0x79   :  { %465 = vmatmul.mubr.bf16.gmra.mrb[24].mxu0 %v987_v45  ;;  %581 = vmatmul.mubr.bf16.gmra.mrb[24].mxu1 %v988_v46 }
  0x7a   :  { %922 = vmatprep.mubr.msk.bf16.mxu0 %vm167_vm0, %v918_v47  ;;  %934 = vmatprep.mubr.msk.bf16.mxu1 %vm167_vm0, %v930_v48 }
  0x81   :  { %473 = vmatmul.mubr.bf16.gmra.mrb[28].mxu0 %v917_v49  ;;  %589 = vmatmul.mubr.bf16.gmra.mrb[28].mxu1 %v929_v50 }
 0x108   :  { %v1305_v51 = vpop.f32.mrb[0].mxu0  ;;  %v1307_v52 = vpop.f32.mrb[0].mxu1 }
 0x109   :  { %v652_v53 = vmul.f32 %v1305_v51, %v1305_v51  ;;  %v672_v54 = vmul.f32 %v1307_v52, %v1307_v52  ;;  %v220_v55 = vpop.f32.mrb[1].mxu0  ;;  %v336_v56 = vpop.f32.mrb[1].mxu1 }
 0x10a   :  { %v1313_v57 = vpop.f32.mrb[2].mxu0  ;;  %v1315_v58 = vpop.f32.mrb[2].mxu1 }
 0x10b   :  { %v596_v59 = vadd.f32 %v1313_v57, %v1305_v51  ;;  %v653_v60 = vmul.f32 %v1313_v57, %v1313_v57  ;;  %v610_v61 = vadd.f32 %v1315_v58, %v1307_v52  ;;  %v673_v62 = vmul.f32 %v1315_v58, %v1315_v58  ;;  %v223_v63 = vpop.f32.mrb[3].mxu0  ;;  %v339_v0 = vpop.f32.mrb[3].mxu1 }
 0x10d   :  { %v659_v1 = vadd.f32 %v653_v60, %v652_v53  ;;  %v679_v2 = vadd.f32 %v673_v62, %v672_v54 }
 0x110   :  { %v1325_v3 = vpop.f32.mrb[4].mxu0  ;;  %v1327_v4 = vpop.f32.mrb[4].mxu1 }
 0x111   :  { %v597_v5 = vadd.f32 %v596_v59, %v1325_v3  ;;  %v654_v6 = vmul.f32 %v1325_v3, %v1325_v3  ;;  %v611_v7 = vadd.f32 %v610_v61, %v1327_v4  ;;  %v674_v8 = vmul.f32 %v1327_v4, %v1327_v4  ;;  %v228_v9 = vpop.f32.mrb[5].mxu0  ;;  %v344_v10 = vpop.f32.mrb[5].mxu1 }
 0x112   :  { %v1335_v11 = vpop.f32.mrb[6].mxu0  ;;  %v1337_v12 = vpop.f32.mrb[6].mxu1 }
 0x113   :  { %v660_v13 = vadd.f32 %v659_v1, %v654_v6  ;;  %v680_v14 = vadd.f32 %v679_v2, %v674_v8  ;;  %v598_v15 = vadd.f32 %v597_v5, %v1335_v11  ;;  %v655_v16 = vmul.f32 %v1335_v11, %v1335_v11  ;;  %v231_v17 = vpop.f32.mrb[7].mxu0  ;;  %v347_v18 = vpop.f32.mrb[7].mxu1 }
 0x114   :  { %v612_v19 = vadd.f32 %v611_v7, %v1337_v12  ;;  %v675_v20 = vmul.f32 %v1337_v12, %v1337_v12 }
 0x115   :  { %v661_v21 = vadd.f32 %v660_v13, %v655_v16 }
 0x116   :  { %v681_v22 = vadd.f32 %v680_v14, %v675_v20 }
 0x118   :  { %v1345_v23 = vpop.f32.mrb[8].mxu0  ;;  %v1347_v24 = vpop.f32.mrb[8].mxu1 }
 0x119   :  { %v599_v25 = vadd.f32 %v598_v15, %v1345_v23  ;;  %v656_v26 = vmul.f32 %v1345_v23, %v1345_v23  ;;  %v613_v27 = vadd.f32 %v612_v19, %v1347_v24  ;;  %v676_v28 = vmul.f32 %v1347_v24, %v1347_v24  ;;  %v236_v29 = vpop.f32.mrb[9].mxu0  ;;  %v352_v30 = vpop.f32.mrb[9].mxu1 }
 0x11a   :  { %v1355_v31 = vpop.f32.mrb[10].mxu0  ;;  %v1357_v32 = vpop.f32.mrb[10].mxu1 }
 0x11b   :  { %v662_v33 = vadd.f32 %v661_v21, %v656_v26  ;;  %v682_v34 = vadd.f32 %v681_v22, %v676_v28  ;;  %v600_v35 = vadd.f32 %v599_v25, %v1355_v31  ;;  %v657_v36 = vmul.f32 %v1355_v31, %v1355_v31  ;;  %v239_v37 = vpop.f32.mrb[11].mxu0  ;;  %v355_v38 = vpop.f32.mrb[11].mxu1 }
 0x11c   :  { %v614_v39 = vadd.f32 %v613_v27, %v1357_v32  ;;  %v677_v40 = vmul.f32 %v1357_v32, %v1357_v32 }
 0x11d   :  { %v663_v41 = vadd.f32 %v662_v33, %v657_v36 }
 0x11e   :  { %v683_v42 = vadd.f32 %v682_v34, %v677_v40 }
 0x120   :  { %v1365_v43 = vpop.f32.mrb[12].mxu0  ;;  %v1367_v44 = vpop.f32.mrb[12].mxu1 }
 0x121   :  { %v602_v45 = vsel %vm601_vm2, %v1365_v43, 0.0  ;;  %v658_v46 = vmul.f32 %v1365_v43, %v1365_v43  ;;  %v615_v47 = vsel %vm601_vm2, %v1367_v44, 0.0  ;;  %v678_v48 = vmul.f32 %v1367_v44, %v1367_v44  ;;  %v244_v49 = vpop.f32.mrb[13].mxu0  ;;  %v360_v50 = vpop.f32.mrb[13].mxu1 }
 0x122   :  { %v603_v53 = vadd.f32 %v602_v45, %v600_v35  ;;  %v616_v54 = vadd.f32 %v615_v47, %v614_v39  ;;  %v245_v55 = vpop.f32.mrb[14].mxu0  ;;  %v361_v56 = vpop.f32.mrb[14].mxu1 }
 0x123   :  { %v664_v59 = vsel %vm601_vm2, %v658_v46, 0.0  ;;  %v684_v60 = vsel %vm601_vm2, %v678_v48, 0.0  ;;  %v246_v61 = vpop.f32.mrb[15].mxu0  ;;  %v362_v62 = vpop.f32.mrb[15].mxu1 }
 0x124   :  { %v604_v63 = vrot.slane %v603_v53, 4  ;;  %v665_v0 = vadd.f32 %v664_v59, %v663_v41  ;;  %v617_v1 = vrot.slane %v616_v54, 4  ;;  %v685_v2 = vadd.f32 %v684_v60, %v683_v42 }
 0x126   :  { %v605_v5 = vadd.f32 %v604_v63, %v603_v53  ;;  %v666_v6 = vrot.slane %v665_v0, 4  ;;  %v618_v7 = vadd.f32 %v617_v1, %v616_v54  ;;  %v686_v8 = vrot.slane %v685_v2, 4 }
 0x128   :  { %v606_v9 = vrot.slane %v605_v5, 2  ;;  %v667_v10 = vadd.f32 %v666_v6, %v665_v0  ;;  %v619_v13 = vrot.slane %v618_v7, 2  ;;  %v687_v14 = vadd.f32 %v686_v8, %v685_v2 }
 0x12a   :  { %v607_v15 = vadd.f32 %v606_v9, %v605_v5  ;;  %v668_v16 = vrot.slane %v667_v10, 2  ;;  %v620_v17 = vadd.f32 %v619_v13, %v618_v7  ;;  %v688_v18 = vrot.slane %v687_v14, 2 }
 0x12c   :  { %v608_v19 = vrot.slane %v607_v15, 1  ;;  %v669_v20 = vadd.f32 %v668_v16, %v667_v10  ;;  %v621_v21 = vrot.slane %v620_v17, 1  ;;  %v689_v22 = vadd.f32 %v688_v18, %v687_v14 }
 0x12e   :  { %v609_v25 = vadd.f32 %v608_v19, %v607_v15  ;;  %v670_v26 = vrot.slane %v669_v20, 1  ;;  %v622_v27 = vadd.f32 %v621_v21, %v620_v17  ;;  %v690_v28 = vrot.slane %v689_v22, 1 }
 0x130   :  { %v671_v29 = vadd.f32 %v670_v26, %v669_v20  ;;  %v1379_v30 = vadd.f32 %v622_v27, %v609_v25  ;;  %v691_v33 = vadd.f32 %v690_v28, %v689_v22 }
 0x132   :  { %v1381_v34 = vadd.f32 %v691_v33, %v671_v29 }
 0x13c   :  { %v1383_v35 = vpop.f32.mrb[16].mxu0  ;;  %v1385_v36 = vpop.f32.mrb[16].mxu1 }
 0x13d   :  { %v714_v37 = vmul.f32 %v1385_v36, %v1385_v36  ;;  %v452_v38 = vpop.f32.mrb[17].mxu0  ;;  %v568_v39 = vpop.f32.mrb[17].mxu1  ;;  %v693_v40 = vmul.f32 %v1383_v35, %v1383_v35 }
 0x13e   :  { %v1391_v41 = vpop.f32.mrb[18].mxu0  ;;  %v1393_v42 = vpop.f32.mrb[18].mxu1 }
 0x13f   :  { %v624_v45 = vadd.f32 %v1391_v41, %v1383_v35  ;;  %v694_v46 = vmul.f32 %v1391_v41, %v1391_v41  ;;  %v638_v47 = vadd.f32 %v1393_v42, %v1385_v36  ;;  %v715_v48 = vmul.f32 %v1393_v42, %v1393_v42  ;;  %v455_v49 = vpop.f32.mrb[19].mxu0  ;;  %v571_v50 = vpop.f32.mrb[19].mxu1 }
 0x141   :  { %v700_v53 = vadd.f32 %v694_v46, %v693_v40  ;;  %v721_v54 = vadd.f32 %v715_v48, %v714_v37 }
 0x144   :  { %v1403_v55 = vpop.f32.mrb[20].mxu0  ;;  %v1405_v56 = vpop.f32.mrb[20].mxu1 }
 0x145   :  { %v625_v59 = vadd.f32 %v624_v45, %v1403_v55  ;;  %v695_v60 = vmul.f32 %v1403_v55, %v1403_v55  ;;  %v639_v61 = vadd.f32 %v638_v47, %v1405_v56  ;;  %v716_v62 = vmul.f32 %v1405_v56, %v1405_v56  ;;  %v460_v63 = vpop.f32.mrb[21].mxu0  ;;  %v576_v0 = vpop.f32.mrb[21].mxu1 }
 0x146   :  { %v1413_v1 = vpop.f32.mrb[22].mxu0  ;;  %v1415_v2 = vpop.f32.mrb[22].mxu1 }
 0x147   :  { %v701_v5 = vadd.f32 %v700_v53, %v695_v60  ;;  %v722_v6 = vadd.f32 %v721_v54, %v716_v62  ;;  %v626_v7 = vadd.f32 %v625_v59, %v1413_v1  ;;  %v696_v8 = vmul.f32 %v1413_v1, %v1413_v1  ;;  %v463_v9 = vpop.f32.mrb[23].mxu0  ;;  %v579_v10 = vpop.f32.mrb[23].mxu1 }
 0x148   :  { %v640_v13 = vadd.f32 %v639_v61, %v1415_v2  ;;  %v717_v14 = vmul.f32 %v1415_v2, %v1415_v2 }
 0x149   :  { %v702_v15 = vadd.f32 %v701_v5, %v696_v8 }
 0x14a   :  { %v723_v16 = vadd.f32 %v722_v6, %v717_v14 }
 0x14c   :  { %v1423_v17 = vpop.f32.mrb[24].mxu0  ;;  %v1425_v18 = vpop.f32.mrb[24].mxu1 }
 0x14d   :  { %v627_v19 = vadd.f32 %v626_v7, %v1423_v17  ;;  %v697_v20 = vmul.f32 %v1423_v17, %v1423_v17  ;;  %v641_v21 = vadd.f32 %v640_v13, %v1425_v18  ;;  %v718_v22 = vmul.f32 %v1425_v18, %v1425_v18  ;;  %v468_v25 = vpop.f32.mrb[25].mxu0  ;;  %v584_v26 = vpop.f32.mrb[25].mxu1 }
 0x14e   :  { %v1433_v27 = vpop.f32.mrb[26].mxu0  ;;  %v1435_v28 = vpop.f32.mrb[26].mxu1 }
 0x14f   :  { %v703_v29 = vadd.f32 %v702_v15, %v697_v20  ;;  %v724_v33 = vadd.f32 %v723_v16, %v718_v22  ;;  %v628_v37 = vadd.f32 %v627_v19, %v1433_v27  ;;  %v698_v38 = vmul.f32 %v1433_v27, %v1433_v27  ;;  %v471_v39 = vpop.f32.mrb[27].mxu0  ;;  %v587_v40 = vpop.f32.mrb[27].mxu1 }
 0x150   :  { %v642_v45 = vadd.f32 %v641_v21, %v1435_v28  ;;  %v719_v46 = vmul.f32 %v1435_v28, %v1435_v28 }
 0x151   :  { %v704_v47 = vadd.f32 %v703_v29, %v698_v38 }
 0x152   :  { %v725_v48 = vadd.f32 %v724_v33, %v719_v46 }
 0x154   :  { %v1443_v49 = vpop.f32.mrb[28].mxu0  ;;  %v1445_v50 = vpop.f32.mrb[28].mxu1 }
 0x155   :  { %v629_v53 = vsel %vm601_vm2, %v1443_v49, 0.0  ;;  %v699_v54 = vmul.f32 %v1443_v49, %v1443_v49  ;;  %v643_v59 = vsel %vm601_vm2, %v1445_v50, 0.0  ;;  %v720_v60 = vmul.f32 %v1445_v50, %v1445_v50  ;;  %v476_v61 = vpop.f32.mrb[29].mxu0  ;;  %v592_v62 = vpop.f32.mrb[29].mxu1 }
 0x156   :  { %v630_v63 = vadd.f32 %v629_v53, %v628_v37  ;;  %v644_v0 = vadd.f32 %v643_v59, %v642_v45  ;;  %v477_v5 = vpop.f32.mrb[30].mxu0  ;;  %v593_v6 = vpop.f32.mrb[30].mxu1 }
 0x157   :  { %v705_v7 = vsel %vm601_vm2, %v699_v54, 0.0  ;;  %v726_v8 = vsel %vm601_vm2, %v720_v60, 0.0  ;;  %v478_v9 = vpop.f32.mrb[31].mxu0  ;;  %v594_v10 = vpop.f32.mrb[31].mxu1 }
 0x158   :  { %v631_v13 = vrot.slane %v630_v63, 4  ;;  %v706_v14 = vadd.f32 %v705_v7, %v704_v47  ;;  %v645_v15 = vrot.slane %v644_v0, 4  ;;  %v727_v16 = vadd.f32 %v726_v8, %v725_v48 }
 0x15a   :  { %v632_v19 = vadd.f32 %v631_v13, %v630_v63  ;;  %v707_v20 = vrot.slane %v706_v14, 4  ;;  %v646_v21 = vadd.f32 %v645_v15, %v644_v0  ;;  %v728_v22 = vrot.slane %v727_v16, 4 }
 0x15c   :  { %v633_v25 = vrot.slane %v632_v19, 2  ;;  %v708_v26 = vadd.f32 %v707_v20, %v706_v14  ;;  %v647_v29 = vrot.slane %v646_v21, 2  ;;  %v729_v33 = vadd.f32 %v728_v22, %v727_v16  ;;  %v739_v16 = vld [vmem:[%s1597_s5] sm:$0x1] }
 0x15d   :  { %v747_v14 = vlaneseq }
 0x15e   :  { %v634_v37 = vadd.f32 %v633_v25, %v632_v19  ;;  %v709_v38 = vrot.slane %v708_v26, 2  ;;  %v648_v39 = vadd.f32 %v647_v29, %v646_v21  ;;  %v730_v40 = vrot.slane %v729_v33, 2 }
 0x15f   :  { %v748_v15 = vshrl.u32 %v747_v14, 7 }
 0x160   :  { %v635_v45 = vrot.slane %v634_v37, 1  ;;  %v710_v46 = vadd.f32 %v709_v38, %v708_v26  ;;  %v649_v53 = vrot.slane %v648_v39, 1  ;;  %v731_v54 = vadd.f32 %v730_v40, %v729_v33 }
 0x162   :  { %v636_v59 = vadd.f32 %v635_v45, %v634_v37  ;;  %v711_v47 = vrot.slane %v710_v46, 1  ;;  %v732_v60 = vrot.slane %v731_v54, 1  ;;  %v650_v62 = vadd.f32 %v649_v53, %v648_v39 }
 0x164   :  { %v637_v48 = vadd.f32 %v636_v59, %v1379_v30  ;;  %v712_v61 = vadd.f32 %v711_v47, %v710_v46  ;;  %v733_v5 = vadd.f32 %v732_v60, %v731_v54  ;;  %v749_v30 = vsub.s32 0, %v748_v15 }
 0x166   :  { %v713_v63 = vadd.f32 %v712_v61, %v1381_v34  ;;  %v651_v0 = vadd.f32 %v650_v62, %v637_v48  ;;  %v743_v34 = vld [vmem:[%s1598_s6] sm:$0x1] }
 0x168   :  { %v734_v6 = vadd.f32 %v733_v5, %v713_v63  ;;  %v735_v7 = vmul.f32 0.005, %v651_v0 }
 0x16a   :  { %v736_v8 = vmul.f32 0.005, %v734_v6  ;;  %v737_v9 = vmul.f32 %v735_v7, %v735_v7 }
 0x16c   :  { %v738_v10 = vsub.f32 %v736_v8, %v737_v9 }
 0x16e   :  { %v740_v13 = vadd.f32 1e-05, %v738_v10 }
 0x170   :  { %993 = vrsqrt.f32 %v740_v13 }
 0x17a   :  { %v994_v19 = vpop.eup %993 }
 0x17b   :  { %v742_v20 = vmul.f32 %v994_v19, %v739_v16 }
 0x17d   :  { %v744_v21 = vmul.f32 %v742_v20, %v735_v7  ;;  %v1465_v22 = vrot.slane %v742_v20, %v749_v30 }
 0x17f   :  { %v745_v25 = vsub.f32 %v743_v34, %v744_v21  ;;  %v752_v26 = vmul.f32 %v1465_v22, %v1305_v51  ;;  %v753_v29 = vmul.f32 %v1465_v22, %v1313_v57  ;;  %v754_v33 = vmul.f32 %v1465_v22, %v1325_v3 }
 0x180   :  { %v755_v37 = vmul.f32 %v1465_v22, %v1335_v11  ;;  %v756_v38 = vmul.f32 %v1465_v22, %v1345_v23  ;;  %v757_v39 = vmul.f32 %v1465_v22, %v1355_v31  ;;  %v758_v40 = vmul.f32 %v1465_v22, %v1365_v43 }
 0x181   :  { %v1481_v45 = vrot.slane %v745_v25, %v749_v30  ;;  %v779_v51 = vmul.f32 %v1465_v22, %v1307_v52  ;;  %v780_v57 = vmul.f32 %v1465_v22, %v1315_v58  ;;  %v781_v3 = vmul.f32 %v1465_v22, %v1327_v4 }
 0x182   :  { %v782_v11 = vmul.f32 %v1465_v22, %v1337_v12  ;;  %v783_v23 = vmul.f32 %v1465_v22, %v1347_v24  ;;  %v784_v31 = vmul.f32 %v1465_v22, %v1357_v32  ;;  %v785_v43 = vmul.f32 %v1465_v22, %v1367_v44 }
 0x183   :  { %v765_v52 = vadd.f32 %v1481_v45, %v752_v26  ;;  %v1499_v46 = vadd.f32 %v1481_v45, %v753_v29  ;;  %v1502_v58 = vadd.f32 %v1481_v45, %v754_v33  ;;  %v1505_v4 = vadd.f32 %v1481_v45, %v755_v37 }
 0x184   :  { %v1508_v12 = vadd.f32 %v1481_v45, %v756_v38  ;;  %v1511_v24 = vadd.f32 %v1481_v45, %v757_v39  ;;  %v1514_v32 = vadd.f32 %v1481_v45, %v758_v40  ;;  %v786_v44 = vadd.f32 %v779_v51, %v1481_v45 }
 0x185   :  { %v772_v53 = vmax.f32 %v765_v52, 0.0  ;;  %v773_v54 = vmax.f32 %v1499_v46, 0.0  ;;  %v774_v59 = vmax.f32 %v1502_v58, 0.0  ;;  %v775_v47 = vmax.f32 %v1505_v4, 0.0 }
 0x186   :  { %v776_v60 = vmax.f32 %v1508_v12, 0.0  ;;  %v777_v48 = vmax.f32 %v1511_v24, 0.0  ;;  %v778_v61 = vmax.f32 %v1514_v32, 0.0  ;;  %v787_v62 = vadd.f32 %v780_v57, %v1481_v45 }
 0x187   :  { %v788_v63 = vadd.f32 %v781_v3, %v1481_v45  ;;  %v789_v0 = vadd.f32 %v782_v11, %v1481_v45  ;;  %v790_v5 = vadd.f32 %v783_v23, %v1481_v45  ;;  %v791_v6 = vadd.f32 %v784_v31, %v1481_v45 }
 0x188   :  { %v792_v7 = vadd.f32 %v785_v43, %v1481_v45  ;;  %v793_v8 = vmax.f32 %v786_v44, 0.0  ;;  %v794_v9 = vmax.f32 %v787_v62, 0.0  ;;  %v800_v10 = vmul.f32 %v1465_v22, %v1383_v35 }
 0x189   :  { %v795_v13 = vmax.f32 %v788_v63, 0.0  ;;  %v796_v14 = vmax.f32 %v789_v0, 0.0  ;;  %v797_v15 = vmax.f32 %v790_v5, 0.0  ;;  %v798_v16 = vmax.f32 %v791_v6, 0.0 }
 0x18a   :  { %v799_v30 = vmax.f32 %v792_v7, 0.0  ;;  %v801_v19 = vmul.f32 %v1465_v22, %v1391_v41  ;;  %v802_v20 = vmul.f32 %v1465_v22, %v1403_v55  ;;  %v803_v34 = vmul.f32 %v1465_v22, %v1413_v1 }
 0x18b   :  { %v804_v21 = vmul.f32 %v1465_v22, %v1423_v17  ;;  %v805_v35 = vmul.f32 %v1465_v22, %v1433_v27  ;;  %v806_v25 = vmul.f32 %v1465_v22, %v1443_v49  ;;  %v807_v26 = vadd.f32 %v800_v10, %v1481_v45 }
 0x18c   :  { %v808_v29 = vadd.f32 %v801_v19, %v1481_v45  ;;  %v809_v41 = vadd.f32 %v802_v20, %v1481_v45  ;;  %v810_v55 = vadd.f32 %v803_v34, %v1481_v45  ;;  %v821_v1 = vmul.f32 %v1465_v22, %v1385_v36 }
 0x18d   :  { %v811_v33 = vadd.f32 %v804_v21, %v1481_v45  ;;  %v812_v17 = vadd.f32 %v805_v35, %v1481_v45  ;;  %v813_v27 = vadd.f32 %v806_v25, %v1481_v45  ;;  %v814_v37 = vmax.f32 %v807_v26, 0.0 }
 0x18e   :  { %v815_v38 = vmax.f32 %v808_v29, 0.0  ;;  %v816_v49 = vmax.f32 %v809_v41, 0.0  ;;  %v817_v39 = vmax.f32 %v810_v55, 0.0  ;;  %v822_v40 = vmul.f32 %v1465_v22, %v1393_v42 }
 0x18f   :  { %v818_v51 = vmax.f32 %v811_v33, 0.0  ;;  %v819_v57 = vmax.f32 %v812_v17, 0.0  ;;  %v820_v3 = vmax.f32 %v813_v27, 0.0  ;;  %v823_v11 = vmul.f32 %v1465_v22, %v1405_v56 }
 0x190   :  { %v824_v36 = vmul.f32 %v1465_v22, %v1415_v2  ;;  %v825_v23 = vmul.f32 %v1465_v22, %v1425_v18  ;;  %v826_v31 = vmul.f32 %v1465_v22, %v1435_v28  ;;  %v827_v43 = vmul.f32 %v1465_v22, %v1445_v50 }
 0x191   :  { %v828_v42 = vadd.f32 %v821_v1, %v1481_v45  ;;  %v829_v52 = vadd.f32 %v822_v40, %v1481_v45  ;;  %v830_v46 = vadd.f32 %v823_v11, %v1481_v45  ;;  %v842_v58 = vmax.f32 %v772_v53, %v793_v8 }
 0x192   :  { %v831_v56 = vadd.f32 %v824_v36, %v1481_v45  ;;  %v832_v2 = vadd.f32 %v825_v23, %v1481_v45  ;;  %v833_v4 = vadd.f32 %v826_v31, %v1481_v45  ;;  %v834_v18 = vadd.f32 %v827_v43, %v1481_v45 }
 0x193   :  { %v835_v12 = vmax.f32 %v828_v42, 0.0  ;;  %v836_v28 = vmax.f32 %v829_v52, 0.0  ;;  %v837_v24 = vmax.f32 %v830_v46, 0.0  ;;  %v843_v32 = vmax.f32 %v773_v54, %v794_v9 }
 0x194   :  { %v838_v50 = vmax.f32 %v831_v56, 0.0  ;;  %v839_v22 = vmax.f32 %v832_v2, 0.0  ;;  %v840_v44 = vmax.f32 %v833_v4, 0.0  ;;  %v841_v62 = vmax.f32 %v834_v18, 0.0 }
 0x195   :  { %v844_v63 = vmax.f32 %v774_v59, %v795_v13  ;;  %v845_v0 = vmax.f32 %v775_v47, %v796_v14  ;;  %v846_v5 = vmax.f32 %v776_v60, %v797_v15  ;;  %v847_v53 = vmax.f32 %v777_v48, %v798_v16 }
 0x196   :  { %v848_v6 = vmax.f32 %v778_v61, %v799_v30  ;;  %v849_v7 = vmax.f32 %v814_v37, %v835_v12  ;;  %v850_v8 = vmax.f32 %v815_v38, %v836_v28  ;;  %v851_v10 = vmax.f32 %v816_v49, %v837_v24 }
 0x197   :  { %v852_v19 = vmax.f32 %v817_v39, %v838_v50  ;;  %v853_v20 = vmax.f32 %v818_v51, %v839_v22  ;;  %v854_v34 = vmax.f32 %v819_v57, %v840_v44  ;;  %v855_v45 = vmax.f32 %v820_v3, %v841_v62 }
 0x198   :  { %v856_v21 = vmax.f32 %v842_v58, %v849_v7  ;;  %v857_v35 = vmax.f32 %v843_v32, %v850_v8  ;;  %v858_v25 = vmax.f32 %v844_v63, %v851_v10 }
 0x199   :  { %v859_v54 = vmax.f32 %v845_v0, %v852_v19  ;;  %v860_v9 = vmax.f32 %v846_v5, %v853_v20  ;;  %v861_v26 = vmax.f32 %v847_v53, %v854_v34  ;;  %v862_v29 = vmax.f32 %v848_v6, %v855_v45 }
 0x19a   :  { %863 = vst [vmem:[%s1599_s7] sm:$0xff] %v856_v21  ;;  %864 = vst [vmem:[%s1599_s7 + $0x8] sm:$0xff] %v857_v35 }
 0x19b   :  { %865 = vst [vmem:[%s1599_s7 + $0x10] sm:$0xff] %v858_v25  ;;  %866 = vst [vmem:[%s1599_s7 + $0x18] sm:$0xff] %v859_v54 }
 0x19c   :  { %867 = vst [vmem:[%s1599_s7 + $0x20] sm:$0xff] %v860_v9  ;;  %868 = vst [vmem:[%s1599_s7 + $0x28] sm:$0xff] %v861_v26 }
 0x19d   :  { %869 = vst [vmem:[%s1599_s7 + $0x30] sm:$0x3] %v862_v29 }

// kernel: lenet5_forward.5
= control target key start
LH: loop header
LB: loop body
LE: loop exit
PB: predicated region body
PF: predicated region fallthrough
CT: control target
= control target key end

     0   :  { %v785_v1 = vmov 0   ;;  %v98_v20 = vlaneseq  ;;  %v786_v25 = vmov 1966171168   ;;  %vm264_vm0 = vcmask 130048   ;;  %s1004_s0 = inlined_call_operand.vmem [shape: bf16[2,400], index: 0, kind: input, shape index: {}]   ;;  %s1005_s1 = inlined_call_operand.vmem [shape: bf16[400,128], index: 1, kind: input, shape index: {}]   ;;  %s1006_s2 = inlined_call_operand.vmem [shape: f32[1,128], index: 2, kind: input, shape index: {}]   ;;  %s1007_s3 = inlined_call_operand.vmem [shape: bf16[128,128], index: 3, kind: input, shape index: {}]   ;;  %s1008_s4 = inlined_call_operand.vmem [shape: f32[1,128], index: 4, kind: input, shape index: {}]   ;;  %s1009_s5 = inlined_call_operand.vmem [shape: bf16[128,128], index: 5, kind: input, shape index: {}]   ;;  %s1010_s6 = inlined_call_operand.vmem [shape: f32[1,128], index: 6, kind: input, shape index: {}]   ;;  %s1011_s7 = inlined_call_operand.hbm [shape: f32[2,128], index: 7, kind: output, shape index: {}]  }
   0x1   :  { %v720_v0 = vld [vmem:[%s1005_s1 + $0x40] sm:$0xff]   ;;  %308 = vmatprep.subr.bf16.mxu1 %v785_v1  ;;  %v723_v4 = vld [vmem:[%s1005_s1 + $0x48] sm:$0xff]   ;;  %v726_v7 = vld [vmem:[%s1005_s1 + $0x50] sm:$0xff]   ;;  %v96_v26 = vunpack.c.l.s4 %v786_v25  ;;  %v787_v38 = vmov 0.0  }
   0x2   :  { %v721_v2 = vld [vmem:[%s1005_s1 + $0x80] sm:$0xff]   ;;  %635 = vmatprep.subr.bf16.mxu0 %v720_v0  ;;  %v724_v5 = vld [vmem:[%s1005_s1 + $0x88] sm:$0xff]   ;;  %v727_v8 = vld [vmem:[%s1005_s1 + $0x90] sm:$0xff]   ;;  %v99_v27 = vshrl.u32 %v98_v20, 7 }
   0x3   :  { %v722_v3 = vld [vmem:[%s1005_s1] sm:$0xff]   ;;  %309 = vmatpush1.bf16.msra.mxu1 %v721_v2  ;;  %v725_v6 = vld [vmem:[%s1005_s1 + $0x8] sm:$0xff]   ;;  %v728_v9 = vld [vmem:[%s1005_s1 + $0x10] sm:$0xff]   ;;  %v97_v30 = vunpack.c.0.s8 %v96_v26 }
   0x4   :  { %636 = vmatpush3.bf16.msra.mxu0 %v722_v3  ;;  %310 = vmatprep.subr.bf16.mxu1 %v785_v1  ;;  %v729_v10 = vld [vmem:[%s1005_s1 + $0x58] sm:$0xff]   ;;  %v732_v13 = vld [vmem:[%s1005_s1 + $0x60] sm:$0xff]   ;;  %v735_v16 = vld [vmem:[%s1005_s1 + $0x68] sm:$0xff]  }
   0x5   :  { %637 = vmatprep.subr.bf16.mxu0 %v723_v4  ;;  %v730_v11 = vld [vmem:[%s1005_s1 + $0x98] sm:$0xff]   ;;  %v733_v14 = vld [vmem:[%s1005_s1 + $0xa0] sm:$0xff]   ;;  %v736_v17 = vld [vmem:[%s1005_s1 + $0xa8] sm:$0xff]   ;;  %v100_v32 = vsub.s32 %v97_v30, %v99_v27 }
   0x6   :  { %v731_v12 = vld [vmem:[%s1005_s1 + $0x18] sm:$0xff]   ;;  %v734_v15 = vld [vmem:[%s1005_s1 + $0x20] sm:$0xff]   ;;  %v737_v18 = vld [vmem:[%s1005_s1 + $0x28] sm:$0xff]  }
   0x7   :  { %311 = vmatpush1.bf16.msra.mxu1 %v724_v5  ;;  %v738_v19 = vld [vmem:[%s1005_s1 + $0x70] sm:$0xff]   ;;  %v590_v23 = vld.sshfl [vmem:[%s1004_s0] sm:$0x33 pattern:$0x75316420]  ;;  %v741_v24 = vld [vmem:[%s1005_s1 + $0x78] sm:$0xff]  }
   0x8   :  { %638 = vmatpush3.bf16.msra.mxu0 %v725_v6  ;;  %312 = vmatprep.subr.bf16.mxu1 %v785_v1  ;;  %v739_v21 = vld [vmem:[%s1005_s1 + $0xb0] sm:$0xff]   ;;  %v742_v28 = vld [vmem:[%s1005_s1 + $0xb8] sm:$0xff]   ;;  %v94_v29 = vcombine.high %v590_v23, %v590_v23  ;;  %v744_v33 = vld [vmem:[%s1005_s1 + $0xc0] sm:$0xff]   ;;  %v101_v36 = vrot.slane %v590_v23, %v100_v32 }
   0x9   :  { %639 = vmatprep.subr.bf16.mxu0 %v726_v7  ;;  %v740_v22 = vld [vmem:[%s1005_s1 + $0x30] sm:$0xff]   ;;  %v743_v31 = vld [vmem:[%s1005_s1 + $0x38] sm:$0xff]   ;;  %v745_v34 = vld [vmem:[%s1007_s3] sm:$0xff]  }
   0xa   :  { %v108_v35 = vrot.slane %v94_v29, %v100_v32  ;;  %v109_v39 = vcombine.high %v101_v36, %v101_v36  ;;  %v746_v40 = vld [vmem:[%s1007_s3 + $0x8] sm:$0xff]  }
   0xb   :  { %313 = vmatpush1.bf16.msra.mxu1 %v727_v8 }
   0xc   :  { %640 = vmatpush3.bf16.msra.mxu0 %v728_v9  ;;  %314 = vmatprep.subr.bf16.mxu1 %v785_v1  ;;  %v110_v37 = vcombine.high %v108_v35, %v108_v35 }
   0xd   :  { %641 = vmatprep.subr.bf16.mxu0 %v729_v10  ;;  %300 = vmatprep.mubr.bf16.mxu0 %v108_v35 }
   0xe   :  { %616 = vmatprep.mubr.msk.bf16.mxu1 %vm264_vm0, %v110_v37 }
   0xf   :  { %315 = vmatpush1.bf16.msra.mxu1 %v730_v11 }
  0x10   :  { %642 = vmatpush3.bf16.msra.mxu0 %v731_v12  ;;  %316 = vmatprep.subr.bf16.mxu1 %v785_v1 }
  0x11   :  { %643 = vmatprep.subr.bf16.mxu0 %v732_v13 }
  0x13   :  { %317 = vmatpush1.bf16.msra.mxu1 %v733_v14 }
  0x14   :  { %644 = vmatpush3.bf16.msra.mxu0 %v734_v15  ;;  %318 = vmatprep.subr.bf16.mxu1 %v785_v1 }
  0x15   :  { %645 = vmatprep.subr.bf16.mxu0 %v735_v16 }
  0x17   :  { %319 = vmatpush1.bf16.msra.mxu1 %v736_v17 }
  0x18   :  { %646 = vmatpush3.bf16.msra.mxu0 %v737_v18  ;;  %320 = vmatprep.subr.bf16.mxu1 %v785_v1 }
  0x19   :  { %647 = vmatprep.subr.bf16.mxu0 %v738_v19 }
  0x1b   :  { %321 = vmatpush1.bf16.msra.mxu1 %v739_v21 }
  0x1c   :  { %648 = vmatpush3.bf16.msra.mxu0 %v740_v22  ;;  %322 = vmatprep.subr.bf16.mxu1 %v785_v1 }
  0x1d   :  { %649 = vmatprep.subr.bf16.mxu0 %v741_v24 }
  0x1f   :  { %323 = vmatpush1.bf16.msra.mxu1 %v742_v28 }
  0x20   :  { %650 = vmatpush3.bf16.msra.mxu0 %v743_v31  ;;  %324 = vmatprep.subr.bf16.mxu1 %v785_v1 }
  0x21   :  { %675 = vmatprep.subr.bf16.mxu0 %v787_v38 }
  0x23   :  { %301 = vmatmul.mubr.bf16.vlgmr.msra.gmra.mrb[0].mxu0 %v101_v36  ;;  %325 = vmatpush1.bf16.msra.mxu1 %v744_v33 }
  0x24   :  { %676 = vmatpush3.bf16.msra.mxu0 %v745_v34  ;;  %695 = vmatprep.subr.bf16.mxu1 %v787_v38 }
  0x25   :  { %677 = vmatprep.subr.bf16.mxu0 %v787_v38 }
  0x26   :  { %341 = vmatmul.mubr.bf16.vlgmr.msra.gmra.mrb[0].mxu1 %v109_v39 }
  0x27   :  { %12 = vsyncpa [#allocation3], 0  ;;  %v747_v41 = vld [vmem:[%s1007_s3 + $0x10] sm:$0xff]   ;;  %v748_v42 = vld [vmem:[%s1007_s3 + $0x18] sm:$0xff]   ;;  %vm788_vm1 = vmmov 0   ;;  %s789_s16 = smov [#allocation2]  }
  0x28   :  { %678 = vmatpush3.bf16.msra.mxu0 %v746_v40  ;;  %v749_v43 = vld [vmem:[%s1007_s3 + $0x20] sm:$0xff]   ;;  %v750_v44 = vld [vmem:[%s1007_s3 + $0x28] sm:$0xff]   ;;  %v751_v45 = vld [vmem:[%s1007_s3 + $0x30] sm:$0xff]   ;;  %691 = vmatprep.mubr.msk.bf16.mxu0 %vm788_vm1, %v787_v38  ;;  %s581_s17 = sshll.u32 %s789_s16, 4  ;;  %s582_s17 = int_to_ptr.vmem [resolvable:$true] %s581_s17 }
  0x29   :  { %679 = vmatprep.subr.bf16.mxu0 %v787_v38  ;;  %v752_v46 = vld [vmem:[%s1007_s3 + $0x38] sm:$0xff]   ;;  %711 = vmatprep.mubr.msk.bf16.mxu1 %vm788_vm1, %v787_v38  ;;  %v753_v47 = vld [vmem:[%s1009_s5] sm:$0xff]   ;;  %v754_v48 = vld [vmem:[%s1009_s5 + $0x8] sm:$0xff]   ;;  %p766_p1 = scmp.lt.s32.totalorder %s582_s17, %s582_s17 }
  0x2a   :  { %696 = vmatpush3.bf16.msra.mxu1 %v753_v47  ;;  %v755_v49 = vld [vmem:[%s1009_s5 + $0x10] sm:$0xff]   ;;  %v756_v50 = vld [vmem:[%s1009_s5 + $0x18] sm:$0xff]   ;;  %v757_v51 = vld [vmem:[%s1009_s5 + $0x20] sm:$0xff]  }
  0x2b   :  { %697 = vmatprep.subr.bf16.mxu1 %v787_v38  ;;  %v758_v52 = vld [vmem:[%s1009_s5 + $0x28] sm:$0xff]   ;;  %v589_v55 = vld [vmem:[%s1006_s2] ss:$0 sm:$0xff]  ;;  %v759_v3 = vld [vmem:[%s1009_s5 + $0x30] sm:$0xff]  }
  0x2c   :  { %680 = vmatpush3.bf16.msra.mxu0 %v747_v41  ;;  %v760_v4 = vld [vmem:[%s1009_s5 + $0x38] sm:$0xff]   ;;  %v617_v5 = vld [vmem:[%s1008_s4] ss:$0 sm:$0xff]  ;;  %s761_s4 = scalar_lea.vmem %s582_s17, 32 }
  0x2d   :  { %681 = vmatprep.subr.bf16.mxu0 %v787_v38  ;;  %v626_v13 = vld [vmem:[%s1010_s6] ss:$0 sm:$0xff]  ;;  %p762_p0 = scmp.ne.s32.totalorder %s582_s17, %s761_s4  ;;  %p767_p2 = scmp.lt.s32.totalorder %s761_s4, %s761_s4 }
  0x2e   :  { %698 = vmatpush3.bf16.msra.mxu1 %v754_v48 }
  0x2f   :  { %699 = vmatprep.subr.bf16.mxu1 %v787_v38  ;;  %p768_p3 = por %p767_p2, %p766_p1 }
  0x30   :  { %682 = vmatpush3.bf16.msra.mxu0 %v748_v42 }
  0x31   :  { %683 = vmatprep.subr.bf16.mxu0 %v787_v38  ;;  %p769_p4 = pnand %p768_p3, %p762_p0 }
  0x32   :  { %700 = vmatpush3.bf16.msra.mxu1 %v755_v49 }
  0x33   :  { %701 = vmatprep.subr.bf16.mxu1 %v787_v38 }
  0x34   :  { %684 = vmatpush3.bf16.msra.mxu0 %v749_v43 }
  0x35   :  { %685 = vmatprep.subr.bf16.mxu0 %v787_v38 }
  0x36   :  { %702 = vmatpush3.bf16.msra.mxu1 %v756_v50 }
  0x37   :  { %703 = vmatprep.subr.bf16.mxu1 %v787_v38 }
  0x38   :  { %686 = vmatpush3.bf16.msra.mxu0 %v750_v44 }
  0x39   :  { %687 = vmatprep.subr.bf16.mxu0 %v787_v38 }
  0x3a   :  { %704 = vmatpush3.bf16.msra.mxu1 %v757_v51 }
  0x3b   :  { %705 = vmatprep.subr.bf16.mxu1 %v787_v38 }
  0x3c   :  { %688 = vmatpush3.bf16.msra.mxu0 %v751_v45 }
  0x3d   :  { %689 = vmatprep.subr.bf16.mxu0 %v787_v38 }
  0x3e   :  { %706 = vmatpush3.bf16.msra.mxu1 %v758_v52 }
  0x3f   :  { %707 = vmatprep.subr.bf16.mxu1 %v787_v38 }
  0x40   :  { %690 = vmatpush3.bf16.msra.mxu0 %v752_v46 }
  0x42   :  { %708 = vmatpush3.bf16.msra.mxu1 %v759_v3 }
  0x43   :  { %709 = vmatprep.subr.bf16.mxu1 %v787_v38 }
  0x46   :  { %710 = vmatpush3.bf16.msra.mxu1 %v760_v4 }
  0xf6   :  { %v651_v53 = vpop.f32.mrb[0].mxu0 }
  0xf7   :  { %v652_v54 = vpop.f32.mrb[1].mxu0 }
  0xf8   :  { %v653_v56 = vadd.f32 %v652_v54, %v651_v53  ;;  %v654_v57 = vpop.f32.mrb[2].mxu0 }
  0xf9   :  { %v655_v58 = vpop.f32.mrb[3].mxu0  ;;  %v342_v59 = vpop.f32.mrb[0].mxu1 }
  0xfa   :  { %v303_v60 = vadd.f32 %v653_v56, %v589_v55  ;;  %v344_v61 = vpop.f32.mrb[1].mxu1 }
  0xfb   :  { %v345_v62 = vpop.f32.mrb[2].mxu1 }
  0xfc   :  { %v343_v63 = vadd.f32 %v342_v59, %v303_v60  ;;  %v346_v0 = vpop.f32.mrb[3].mxu1 }
  0xfe   :  { %v348_v1 = vmax.f32 %v343_v63, 0.0 }
 0x100   :  { %v349_v2 = vpack.c.bf16 %v348_v1, %v348_v1 }
 0x102   :  { %692 = vmatmul.mubr.bf16.vlgmr.msra.gmra.mrb[4].mxu0 %v349_v2 }
 0x1d5   :  { %v455_v6 = vpop.f32.mrb[4].mxu0 }
 0x1d6   :  { %v456_v7 = vadd.f32 %v617_v5, %v455_v6  ;;  %v693_v8 = vpop.f32.mrb[5].mxu0 }
 0x1d7   :  { %v458_v9 = vpop.f32.mrb[6].mxu0 }
 0x1d8   :  { %v461_v10 = vmax.f32 %v456_v7, 0.0  ;;  %v694_v11 = vpop.f32.mrb[7].mxu0 }
 0x1da   :  { %v462_v12 = vpack.c.bf16 %v461_v10, %v461_v10 }
 0x1dc   :  { %712 = vmatmul.mubr.bf16.vlgmr.msra.gmra.mrb[4].mxu1 %v462_v12 }
 0x2af   :  { %v568_v14 = vpop.f32.mrb[4].mxu1 }
 0x2b0   :  { %v569_v15 = vadd.f32 %v626_v13, %v568_v14  ;;  %v713_v16 = vpop.f32.mrb[5].mxu1 }
 0x2b1   :  { %v571_v17 = vpop.f32.mrb[6].mxu1 }
 0x2b2   :  { %574 = vst [vmem:[#allocation2] sm:$0x3] %v569_v15  ;;  %v714_v18 = vpop.f32.mrb[7].mxu1 }
 0x2b3   :  { %772 = shalt.err (!%p769_p4)
}
 0x2b4   :  { %s773_s6 = scalar_lea.hbm %s1011_s7, 32 }
 0x2b5   :  { %p774_p5 = scmp.ne.s32.totalorder %s1011_s7, %s773_s6  ;;  %p777_p6 = scmp.lt.u32.totalorder %s773_s6, %s1011_s7 }
 0x2b7   :  { %p779_p7 = pnand %p777_p6, %p774_p5 }
 0x2b9   :  { %782 = shalt.err (!%p779_p7)
}
 0x2ba   :  { %584 = dma.vmem_to_hbm [thread:$0]  %s582_s17, 32, %s1011_s7, [#allocation3]  }
 0x2bb   :  { %783 = dma.done.wait [#allocation3], 32  }
 0x2bc   :  { %784 = vsyncadd [#allocation3], 4294967264 }
 0x2bd   :  { %588 = vsyncpa [#allocation3], 1 }

</bundles_post_ra>
